<compile_context>
chip_gen: v5e
topology: v5e:2x2
jax: 0.10.0
libtpu: 0.0.40
codegen_flags: <defaults>
</compile_context>

<pallas_src>
import jax
import jax.numpy as jnp
from jax import lax
from jax.experimental import pallas as pl
from jax.experimental.pallas import tpu as pltpu

LN_EPS = 1e-5  # PyTorch nn.LayerNorm default

# Row layout of the packed (8, hid) parameter block.
_B1, _G1, _BE1, _B2, _G2, _BE2, _W3, _B3 = range(8)


def _softq_kernel(xa_ref, w1_ref, w2_ref, misc_ref, o_ref):
    mm_dtype = w1_ref.dtype            # f32 or bf16 (matmul operands only)
    xa = xa_ref[...].astype(mm_dtype)

    def ln_relu(h, gamma, beta):
        # Centered two-pass LayerNorm (exact nn.LayerNorm semantics, f32).
        mu = jnp.mean(h, axis=-1, keepdims=True)
        d = h - mu
        var = jnp.mean(d * d, axis=-1, keepdims=True)
        h = d * lax.rsqrt(var + LN_EPS) * gamma + beta
        return jnp.maximum(h, 0.0)

    # Layer 1: Linear -> LayerNorm -> ReLU.
    h = (jnp.dot(xa, w1_ref[...], preferred_element_type=jnp.float32)
         + misc_ref[_B1:_B1 + 1, :])
    h = ln_relu(h, misc_ref[_G1:_G1 + 1, :], misc_ref[_BE1:_BE1 + 1, :])

    # Layer 2: Linear -> LayerNorm -> ReLU.
    h = (jnp.dot(h.astype(mm_dtype), w2_ref[...],
                 preferred_element_type=jnp.float32)
         + misc_ref[_B2:_B2 + 1, :])
    h = ln_relu(h, misc_ref[_G2:_G2 + 1, :], misc_ref[_BE2:_BE2 + 1, :])

    # Output head (hid -> 1): M=1 dot contracting over hid -> lane-dense (1, bt).
    w3 = misc_ref[_W3:_W3 + 1, :]                         # (1, hid), f32
    q = lax.dot_general(w3, h, dimension_numbers=(((1,), (1,)), ((), ())),
                        preferred_element_type=jnp.float32)   # (1, bt)
    b3 = misc_ref[_B3:_B3 + 1, 0:1]                       # (1, 1), broadcast add
    o_ref[...] = (q + b3).astype(o_ref.dtype)


def soft_q_forward_stacked(x, a, params, *, batch_tile=None,
                           matmul_dtype=jnp.float32):
    """Evaluate C stacked SoftQNetwork critics in a single pallas_call.

    x: [B, state_dim], a: [B, action_dim]
    params: (w1 [C, d_in, hid], w2 [C, hid, hid], misc [C, 8, hid])
    returns q: [C, B, 1] (f32)
    """
    w1, w2, misc = params
    C, d_in, hid = w1.shape
    B, sd = x.shape
    ad = a.shape[1]
    assert sd + ad == d_in
    assert w2.shape == (C, hid, hid) and misc.shape == (C, 8, hid)

    # Wrapper-side concat: trivial B*d_in copy in XLA, removes one input
    # stream from the overhead-bound kernel.
    xa = jnp.concatenate([x, a], axis=-1)

    if matmul_dtype != jnp.float32:
        w1 = w1.astype(matmul_dtype)
        w2 = w2.astype(matmul_dtype)

    # Batch tile: per-step compute is tiny, so the ~0.35us fixed grid-step
    # cost dominates -> prefer the biggest lane-aligned tile.
    if batch_tile is None:
        if B % 128 != 0 or B <= 1024:
            bt = B
        elif B % 1024 == 0:
            bt = 1024
        elif B % 512 == 0:
            bt = 512
        elif B % 256 == 0:
            bt = 256
        else:
            bt = 128
    else:
        bt = batch_tile
    assert B % bt == 0
    assert bt == B or bt % 128 == 0, "lane-dense output block needs bt % 128 == 0"
    nbt = B // bt

    wbytes = jnp.dtype(matmul_dtype).itemsize
    cost = pl.CostEstimate(
        flops=2 * C * B * (d_in * hid + hid * hid + hid),
        transcendentals=2 * C * B,                      # rsqrt per row per LN
        bytes_accessed=(4 * (B * d_in + C * B + C * 8 * hid)
                        + wbytes * C * (d_in * hid + hid * hid)))

    grid_spec = pltpu.PrefetchScalarGridSpec(
        num_scalar_prefetch=0,
        grid=(C, nbt),                                  # critic axis outermost
        in_specs=[
            pl.BlockSpec((bt, d_in), lambda c, i: (i, 0)),            # xa
            pl.BlockSpec((None, d_in, hid), lambda c, i: (c, 0, 0)),  # w1
            pl.BlockSpec((None, hid, hid), lambda c, i: (c, 0, 0)),   # w2
            pl.BlockSpec((None, 8, hid), lambda c, i: (c, 0, 0)),     # packed params
        ],
        out_specs=pl.BlockSpec((None, 1, bt), lambda c, i: (c, 0, i)),
    )

    q = pl.pallas_call(
        _softq_kernel,
        out_shape=jax.ShapeDtypeStruct((C, 1, B), jnp.float32),
        grid_spec=grid_spec,
        compiler_params=pltpu.CompilerParams(
            dimension_semantics=("parallel", "parallel")),
        cost_estimate=cost,
    )(xa, w1, w2, misc)

    return q.reshape(C, B, 1)


def soft_q_forward(x, a, params, **kwargs):
    """Single-critic convenience wrapper.

    params = (w1 [d_in, hid], w2 [hid, hid], misc [8, hid]) -> q [B, 1].
    """
    stacked = tuple(p[None] for p in params)
    return soft_q_forward_stacked(x, a, stacked, **kwargs)[0]


# ---------------------------------------------------------------------------
# Deterministic parameter init (matches nn.init.orthogonal_ + zero bias)
# ---------------------------------------------------------------------------
def _orthogonal(key, out_dim, in_dim, gain):
    rows, cols = (out_dim, in_dim) if out_dim >= in_dim else (in_dim, out_dim)
    m = jax.random.normal(key, (rows, cols), dtype=jnp.float32)
    q, r = jnp.linalg.qr(m)
    q = q * jnp.sign(jnp.diag(r))[None, :]
    if out_dim < in_dim:
        q = q.T
    return gain * q                                       # [out_dim, in_dim]


def init_params(key, state_dim, action_dim, hidden_size):
    """One critic's params in kernel layout: (w1 [d_in,hid], w2 [hid,hid], misc [8,hid])."""
    gain = jnp.sqrt(2.0)
    k1, k2, k3 = jax.random.split(key, 3)
    d_in = state_dim + action_dim

    w1 = _orthogonal(k1, hidden_size, d_in, gain).T         # [d_in, hid]
    w2 = _orthogonal(k2, hidden_size, hidden_size, gain).T  # [hid, hid]
    w3 = _orthogonal(k3, 1, hidden_size, gain)              # [1, hid]

    zeros = jnp.zeros((1, hidden_size), jnp.float32)
    ones = jnp.ones((1, hidden_size), jnp.float32)
    b3 = jnp.zeros((1, hidden_size), jnp.float32)           # bias=0, lane-replicated
    misc = jnp.concatenate(
        [zeros, ones, zeros,       # b1, gamma1, beta1
         zeros, ones, zeros,       # b2, gamma2, beta2
         w3, b3], axis=0)          # w3 row, b3 (replicated)
    return (w1, w2, misc)


# Pure-JAX reference for the correctness check.
def _reference(x, a, params):
    w1, w2, misc = params
    b1, g1, be1, b2, g2, be2, w3, b3r = (misc[i] for i in range(8))

    def ln(h, g, b):
        mu = h.mean(-1, keepdims=True)
        var = ((h - mu) ** 2).mean(-1, keepdims=True)
        return (h - mu) / jnp.sqrt(var + LN_EPS) * g + b

    h = jnp.concatenate([x, a], axis=-1) @ w1 + b1
    h = jnp.maximum(ln(h, g1, be1), 0.0)
    h = h @ w2 + b2
    h = jnp.maximum(ln(h, g2, be2), 0.0)
    return h @ w3[:, None] + b3r[0]


if __name__ == "__main__":
    key = jax.random.PRNGKey(0)
    k_p1, k_p2, k_x, k_a = jax.random.split(key, 4)

    batch = 256
    state_dim = 16
    action_dim = 4
    hidden_size = 32

    p1 = init_params(k_p1, state_dim, action_dim, hidden_size)
    p2 = init_params(k_p2, state_dim, action_dim, hidden_size)
    # Twin SAC critics fused into one call: stack params along the critic axis.
    stacked = tuple(jnp.stack([a1, a2]) for a1, a2 in zip(p1, p2))

    x = jax.random.normal(k_x, (batch, state_dim), dtype=jnp.float32)
    a = jax.random.normal(k_a, (batch, action_dim), dtype=jnp.float32)

    q_ref = jnp.stack([_reference(x, a, p1), _reference(x, a, p2)])

    # f32 matmul operands: exact nn.LayerNorm-on-f32 semantics.
    q = jax.block_until_ready(soft_q_forward_stacked(x, a, stacked))
    assert q.shape == (2, batch, 1)
    assert jnp.allclose(q, q_ref, atol=1e-3, rtol=1e-3)

    # Multi-step grid path (bt=128 -> grid (2, 2)); same numerics.
    q_tiled = jax.block_until_ready(
        soft_q_forward_stacked(x, a, stacked, batch_tile=128))
    assert jnp.allclose(q_tiled, q_ref, atol=1e-3, rtol=1e-3)

    # bf16 matmul operands (MXU-native on v5e/v6e/v7x); LN/head stay in f32.
    q_bf16 = jax.block_until_ready(
        soft_q_forward_stacked(x, a, stacked, matmul_dtype=jnp.bfloat16))
    assert jnp.allclose(q_bf16, q_ref, atol=5e-2, rtol=5e-2)

    # Single-critic convenience wrapper.
    q1 = jax.block_until_ready(soft_q_forward(x, a, p1))
    assert jnp.allclose(q1, q_ref[0], atol=1e-3, rtol=1e-3)

    print("KERNEL_OK")
</pallas_src>

<mosaic_0001>
module attributes {stable_mosaic.version = 11 : i64} {
  func.func @_softq_kernel(%arg0: i32, %arg1: i32, %arg2: memref<256x20xf32, #tpu.memory_space<vmem>>, %arg3: memref<1x20x32xf32, #tpu.memory_space<vmem>>, %arg4: memref<1x32x32xf32, #tpu.memory_space<vmem>>, %arg5: memref<1x8x32xf32, #tpu.memory_space<vmem>>, %arg6: memref<1x1x256xf32, #tpu.memory_space<vmem>>) attributes {dimension_semantics = [#tpu.dimension_semantics<parallel>, #tpu.dimension_semantics<parallel>], iteration_bounds = array<i64: 2, 1>, scalar_prefetch = 0 : i64, scratch_operands = 0 : i64, tpu.core_type = #tpu.core_type<tc>, window_params = [{transform_indices = @transform_0, window_bounds = array<i64: 256, 20>}, {transform_indices = @transform_1, window_bounds = array<i64: 1, 20, 32>}, {transform_indices = @transform_2, window_bounds = array<i64: 1, 32, 32>}, {transform_indices = @transform_3, window_bounds = array<i64: 1, 8, 32>}, {transform_indices = @transform_4, window_bounds = array<i64: 1, 1, 256>}]} {
    %c0 = arith.constant 0 : index
    %c0_0 = arith.constant 0 : index
    %0 = vector.load %arg2[%c0, %c0_0] : memref<256x20xf32, #tpu.memory_space<vmem>>, vector<256x20xf32>
    %c0_1 = arith.constant 0 : index
    %c0_2 = arith.constant 0 : index
    %c0_3 = arith.constant 0 : index
    %1 = vector.load %arg3[%c0_1, %c0_2, %c0_3] : memref<1x20x32xf32, #tpu.memory_space<vmem>>, vector<1x20x32xf32>
    %2 = vector.shape_cast %1 : vector<1x20x32xf32> to vector<20x32xf32>
    %cst = arith.constant dense<0.000000e+00> : vector<256x32xf32>
    %3 = tpu.matmul %0, %2, %cst {dimension_numbers = #tpu.dot_dimension_numbers<[1], [0], [0], [1], [0, 0, 1, 1], [], []>} : vector<256x20xf32>, vector<20x32xf32>, vector<256x32xf32> -> vector<256x32xf32>
    %c0_4 = arith.constant 0 : index
    %c0_5 = arith.constant 0 : index
    %c0_6 = arith.constant 0 : index
    %4 = vector.load %arg5[%c0_4, %c0_5, %c0_6] : memref<1x8x32xf32, #tpu.memory_space<vmem>>, vector<1x1x32xf32>
    %5 = vector.shape_cast %4 : vector<1x1x32xf32> to vector<1x32xf32>
    %6 = vector.broadcast %5 : vector<1x32xf32> to vector<256x32xf32>
    %7 = arith.addf %3, %6 : vector<256x32xf32>
    %c0_7 = arith.constant 0 : index
    %c1 = arith.constant 1 : index
    %c0_8 = arith.constant 0 : index
    %8 = vector.load %arg5[%c0_7, %c1, %c0_8] : memref<1x8x32xf32, #tpu.memory_space<vmem>>, vector<1x1x32xf32>
    %9 = vector.shape_cast %8 : vector<1x1x32xf32> to vector<1x32xf32>
    %c0_9 = arith.constant 0 : index
    %c2 = arith.constant 2 : index
    %c0_10 = arith.constant 0 : index
    %10 = vector.load %arg5[%c0_9, %c2, %c0_10] : memref<1x8x32xf32, #tpu.memory_space<vmem>>, vector<1x1x32xf32>
    %11 = vector.shape_cast %10 : vector<1x1x32xf32> to vector<1x32xf32>
    %cst_11 = arith.constant dense<0.000000e+00> : vector<256xf32>
    %12 = vector.multi_reduction <add>, %7, %cst_11 [1] : vector<256x32xf32> to vector<256xf32>
    %13 = vector.shape_cast %12 : vector<256xf32> to vector<256x1xf32>
    %cst_12 = arith.constant 3.200000e+01 : f32
    %14 = vector.broadcast %cst_12 : f32 to vector<256x1xf32>
    %15 = arith.divf %13, %14 : vector<256x1xf32>
    %16 = vector.broadcast %15 : vector<256x1xf32> to vector<256x32xf32>
    %17 = arith.subf %7, %16 : vector<256x32xf32>
    %18 = arith.mulf %17, %17 : vector<256x32xf32>
    %cst_13 = arith.constant dense<0.000000e+00> : vector<256xf32>
    %19 = vector.multi_reduction <add>, %18, %cst_13 [1] : vector<256x32xf32> to vector<256xf32>
    %20 = vector.shape_cast %19 : vector<256xf32> to vector<256x1xf32>
    %cst_14 = arith.constant 3.200000e+01 : f32
    %21 = vector.broadcast %cst_14 : f32 to vector<256x1xf32>
    %22 = arith.divf %20, %21 : vector<256x1xf32>
    %cst_15 = arith.constant 9.99999974E-6 : f32
    %23 = vector.broadcast %cst_15 : f32 to vector<256x1xf32>
    %24 = arith.addf %22, %23 : vector<256x1xf32>
    %25 = math.rsqrt %24 : vector<256x1xf32>
    %26 = vector.broadcast %25 : vector<256x1xf32> to vector<256x32xf32>
    %27 = arith.mulf %17, %26 : vector<256x32xf32>
    %28 = vector.broadcast %9 : vector<1x32xf32> to vector<256x32xf32>
    %29 = arith.mulf %27, %28 : vector<256x32xf32>
    %30 = vector.broadcast %11 : vector<1x32xf32> to vector<256x32xf32>
    %31 = arith.addf %29, %30 : vector<256x32xf32>
    %cst_16 = arith.constant 0.000000e+00 : f32
    %32 = vector.broadcast %cst_16 : f32 to vector<256x32xf32>
    %33 = arith.maximumf %31, %32 : vector<256x32xf32>
    %c0_17 = arith.constant 0 : index
    %c0_18 = arith.constant 0 : index
    %c0_19 = arith.constant 0 : index
    %34 = vector.load %arg4[%c0_17, %c0_18, %c0_19] : memref<1x32x32xf32, #tpu.memory_space<vmem>>, vector<1x32x32xf32>
    %35 = vector.shape_cast %34 : vector<1x32x32xf32> to vector<32x32xf32>
    %cst_20 = arith.constant dense<0.000000e+00> : vector<256x32xf32>
    %36 = tpu.matmul %33, %35, %cst_20 {dimension_numbers = #tpu.dot_dimension_numbers<[1], [0], [0], [1], [0, 0, 1, 1], [], []>} : vector<256x32xf32>, vector<32x32xf32>, vector<256x32xf32> -> vector<256x32xf32>
    %c0_21 = arith.constant 0 : index
    %c3 = arith.constant 3 : index
    %c0_22 = arith.constant 0 : index
    %37 = vector.load %arg5[%c0_21, %c3, %c0_22] : memref<1x8x32xf32, #tpu.memory_space<vmem>>, vector<1x1x32xf32>
    %38 = vector.shape_cast %37 : vector<1x1x32xf32> to vector<1x32xf32>
    %39 = vector.broadcast %38 : vector<1x32xf32> to vector<256x32xf32>
    %40 = arith.addf %36, %39 : vector<256x32xf32>
    %c0_23 = arith.constant 0 : index
    %c4 = arith.constant 4 : index
    %c0_24 = arith.constant 0 : index
    %41 = vector.load %arg5[%c0_23, %c4, %c0_24] : memref<1x8x32xf32, #tpu.memory_space<vmem>>, vector<1x1x32xf32>
    %42 = vector.shape_cast %41 : vector<1x1x32xf32> to vector<1x32xf32>
    %c0_25 = arith.constant 0 : index
    %c5 = arith.constant 5 : index
    %c0_26 = arith.constant 0 : index
    %43 = vector.load %arg5[%c0_25, %c5, %c0_26] : memref<1x8x32xf32, #tpu.memory_space<vmem>>, vector<1x1x32xf32>
    %44 = vector.shape_cast %43 : vector<1x1x32xf32> to vector<1x32xf32>
    %cst_27 = arith.constant dense<0.000000e+00> : vector<256xf32>
    %45 = vector.multi_reduction <add>, %40, %cst_27 [1] : vector<256x32xf32> to vector<256xf32>
    %46 = vector.shape_cast %45 : vector<256xf32> to vector<256x1xf32>
    %cst_28 = arith.constant 3.200000e+01 : f32
    %47 = vector.broadcast %cst_28 : f32 to vector<256x1xf32>
    %48 = arith.divf %46, %47 : vector<256x1xf32>
    %49 = vector.broadcast %48 : vector<256x1xf32> to vector<256x32xf32>
    %50 = arith.subf %40, %49 : vector<256x32xf32>
    %51 = arith.mulf %50, %50 : vector<256x32xf32>
    %cst_29 = arith.constant dense<0.000000e+00> : vector<256xf32>
    %52 = vector.multi_reduction <add>, %51, %cst_29 [1] : vector<256x32xf32> to vector<256xf32>
    %53 = vector.shape_cast %52 : vector<256xf32> to vector<256x1xf32>
    %cst_30 = arith.constant 3.200000e+01 : f32
    %54 = vector.broadcast %cst_30 : f32 to vector<256x1xf32>
    %55 = arith.divf %53, %54 : vector<256x1xf32>
    %cst_31 = arith.constant 9.99999974E-6 : f32
    %56 = vector.broadcast %cst_31 : f32 to vector<256x1xf32>
    %57 = arith.addf %55, %56 : vector<256x1xf32>
    %58 = math.rsqrt %57 : vector<256x1xf32>
    %59 = vector.broadcast %58 : vector<256x1xf32> to vector<256x32xf32>
    %60 = arith.mulf %50, %59 : vector<256x32xf32>
    %61 = vector.broadcast %42 : vector<1x32xf32> to vector<256x32xf32>
    %62 = arith.mulf %60, %61 : vector<256x32xf32>
    %63 = vector.broadcast %44 : vector<1x32xf32> to vector<256x32xf32>
    %64 = arith.addf %62, %63 : vector<256x32xf32>
    %cst_32 = arith.constant 0.000000e+00 : f32
    %65 = vector.broadcast %cst_32 : f32 to vector<256x32xf32>
    %66 = arith.maximumf %64, %65 : vector<256x32xf32>
    %c0_33 = arith.constant 0 : index
    %c6 = arith.constant 6 : index
    %c0_34 = arith.constant 0 : index
    %67 = vector.load %arg5[%c0_33, %c6, %c0_34] : memref<1x8x32xf32, #tpu.memory_space<vmem>>, vector<1x1x32xf32>
    %68 = vector.shape_cast %67 : vector<1x1x32xf32> to vector<1x32xf32>
    %cst_35 = arith.constant dense<0.000000e+00> : vector<1x256xf32>
    %69 = tpu.matmul %68, %66, %cst_35 {dimension_numbers = #tpu.dot_dimension_numbers<[1], [1], [0], [0], [0, 0, 1, 0], [], []>} : vector<1x32xf32>, vector<256x32xf32>, vector<1x256xf32> -> vector<1x256xf32>
    %c0_36 = arith.constant 0 : index
    %c7 = arith.constant 7 : index
    %c0_37 = arith.constant 0 : index
    %70 = vector.load %arg5[%c0_36, %c7, %c0_37] : memref<1x8x32xf32, #tpu.memory_space<vmem>>, vector<1x1x1xf32>
    %71 = vector.shape_cast %70 : vector<1x1x1xf32> to vector<1x1xf32>
    %72 = vector.broadcast %71 : vector<1x1xf32> to vector<1x256xf32>
    %73 = arith.addf %69, %72 : vector<1x256xf32>
    %c0_38 = arith.constant 0 : index
    %c0_39 = arith.constant 0 : index
    %c0_40 = arith.constant 0 : index
    %74 = vector.load %arg6[%c0_38, %c0_39, %c0_40] : memref<1x1x256xf32, #tpu.memory_space<vmem>>, vector<1x1x256xf32>
    %75 = vector.shape_cast %74 : vector<1x1x256xf32> to vector<1x256xf32>
    %76 = vector.shape_cast %73 : vector<1x256xf32> to vector<1x1x256xf32>
    tpu.vector_store %arg6[%c0_38, %c0_39, %c0_40], %76 {strides = array<i32>} : memref<1x1x256xf32, #tpu.memory_space<vmem>>, vector<1x1x256xf32>,
    return
  }
  func.func @transform_0(%arg0: i32, %arg1: i32) -> (i32, i32) {
    %c0_i32 = arith.constant 0 : i32
    %c0_i32_0 = arith.constant 0 : i32
    return %arg1, %c0_i32 : i32, i32
  }
  func.func @transform_1(%arg0: i32, %arg1: i32) -> (i32, i32, i32) {
    %c0_i32 = arith.constant 0 : i32
    %c0_i32_0 = arith.constant 0 : i32
    %c0_i32_1 = arith.constant 0 : i32
    return %arg0, %c0_i32, %c0_i32_0 : i32, i32, i32
  }
  func.func @transform_2(%arg0: i32, %arg1: i32) -> (i32, i32, i32) {
    %c0_i32 = arith.constant 0 : i32
    %c0_i32_0 = arith.constant 0 : i32
    %c0_i32_1 = arith.constant 0 : i32
    return %arg0, %c0_i32, %c0_i32_0 : i32, i32, i32
  }
  func.func @transform_3(%arg0: i32, %arg1: i32) -> (i32, i32, i32) {
    %c0_i32 = arith.constant 0 : i32
    %c0_i32_0 = arith.constant 0 : i32
    %c0_i32_1 = arith.constant 0 : i32
    return %arg0, %c0_i32, %c0_i32_0 : i32, i32, i32
  }
  func.func @transform_4(%arg0: i32, %arg1: i32) -> (i32, i32, i32) {
    %c0_i32 = arith.constant 0 : i32
    %c0_i32_0 = arith.constant 0 : i32
    return %arg0, %c0_i32, %arg1 : i32, i32, i32
  }
}

</mosaic_0001>

<bundles_post_ra>
// kernel: tpu_custom_call.1
= control target key start
LH: loop header
LB: loop body
LE: loop exit
PB: predicated region body
PF: predicated region fallthrough
CT: control target
= control target key end

     0   :  { %9 = vsyncpa [#allocation3], 0  ;;  %s5340_s0 = inlined_call_operand.vmem [shape: f32[256,20], index: 0, kind: input, shape index: {}]   ;;  %s5341_s1 = inlined_call_operand.vmem [shape: f32[2,20,32], index: 1, kind: input, shape index: {}]   ;;  %s5342_s2 = inlined_call_operand.vmem [shape: f32[2,32,32], index: 2, kind: input, shape index: {}]   ;;  %s5343_s3 = inlined_call_operand.vmem [shape: f32[2,8,32], index: 3, kind: input, shape index: {}]   ;;  %s5344_s4 = inlined_call_operand.hbm [shape: f32[2,1,256], index: 4, kind: output, shape index: {}]  }
   0x1   :  { %11 = vsyncpa [#allocation3 + $0x1], 0  ;;  %s3063_s15 = smov 0   ;;  %s3065_s16 = smov 0  }
   0x2   :  { %s3067_s17 = smov 0   ;;  %s3069_s18 = smov 0  }
   0x3   :  { %s3071_s19 = smov 0   ;;  %s3073_s20 = smov 0  }
   0x4 LB: > { %s2635_s21 = sadd.s32 4294967295, %s3034_s20   ;;  %s2636_s22 = sadd.s32 4294967294, %s3034_s20   ;;  %s3034_s20 = sphi %s3073_s20, %s17_s20   ;;  %s3030_s19 = sphi %s3071_s19, %s5443_s19   ;;  %s3026_s18 = sphi %s3069_s18, %s5442_s18   ;;  %s3022_s17 = sphi %s3067_s17, %s5441_s17   ;;  %s3018_s16 = sphi %s3065_s16, %s5440_s16   ;;  %s3014_s15 = sphi %s3063_s15, %s5439_s15  }
   0x5   : > { %s29_s23 = sadd.s32 1, %s3030_s19  ;;  %s142_s24 = sadd.s32 1, %s3022_s17 }
   0x6   : > { %p31_p0 = scmp.ge.s32.totalorder %s29_s23, 2  ;;  %p152_p1 = scmp.ne.s32.totalorder %s3022_s17, %s3018_s16 }
   0x7   : > { %p153_p2 = scmp.eq.s32.totalorder %s2635_s21, 1  ;;  %p158_p3 = scmp.ne.s32.totalorder %s3018_s16, %s3014_s15 }
   0x8   : > { %s5445_s23 = smov (%p31_p0, %s29_s23), 0  ;;  %p159_p5 = scmp.eq.s32.totalorder %s2636_s22, 1 }
   0x9   : > { %p3103_p4 = por %p153_p2, %p152_p1  ;;  %s137_s26 = ssub.s32 %s3030_s19, %s5445_s23 }
   0xa   : > { %p2640_p6 = scmp.ge.s32.totalorder %s3034_s20, 1  ;;  %p140_p7 = scmp.eq.s32.totalorder %s137_s26, 0 }
   0xb   : > { %p3110_p8 = por %p159_p5, %p158_p3  ;;  %p209_p9 = scmp.lt.s32.totalorder %s3034_s20, 3 }
   0xc   : > { %s3116_s28 = scalar_select %p140_p7, %s3022_s17, %s142_s24  }
   0xd   : > { %p210_p10 = pnand %p2640_p6, %p209_p9 }
   0xf   : > { %213 = sbr.rel (%p210_p10) target bundleno = 1316 (0x524), region = 36 }
  0x14   : > { %p255_p11 = scmp.lt.s32.totalorder %s3026_s18, 1  ;;  %vm404_vm0 = vcmask 1043456   ;;  %v270_v3 = vld [vmem:[%s5340_s0] sm:$0xff]  ;;  %vm307_vm1 = vcmask 162816   ;;  %v287_v4 = vld [vmem:[%s5340_s0 + $0x88] sm:$0xff]  ;;  %v288_v6 = vld [vmem:[%s5340_s0 + $0x90] sm:$0xff] }
  0x15   : > { %v271_v5 = vld [vmem:[%s5340_s0 + $0x8] sm:$0xff]  ;;  %v272_v7 = vld [vmem:[%s5340_s0 + $0x10] sm:$0xff]  ;;  %v289_v8 = vld [vmem:[%s5340_s0 + $0x98] sm:$0xff]  ;;  %vm523_vm2 = vcmask 261120   ;;  %s2976_s6 = scalar_lea.hbm %s5344_s4, 4 }
  0x16   : > { %s3120_s29 = scalar_select %p255_p11, %s3026_s18, 1  ;;  %v273_v9 = vld [vmem:[%s5340_s0 + $0x18] sm:$0xff]  ;;  %v290_v10 = vld [vmem:[%s5340_s0 + $0xa0] sm:$0xff]  ;;  %v291_v12 = vld [vmem:[%s5340_s0 + $0xa8] sm:$0xff] }
  0x17   : > { %v274_v11 = vld [vmem:[%s5340_s0 + $0x20] sm:$0xff]  ;;  %v275_v13 = vld [vmem:[%s5340_s0 + $0x28] sm:$0xff]  ;;  %v292_v14 = vld [vmem:[%s5340_s0 + $0xb0] sm:$0xff] }
  0x18   : > { %s2757_s30 = smul.u32 24, %s3120_s29  ;;  %s2645_s5 = sshll.u32 %s3120_s29, 3  ;;  %v276_v15 = vld [vmem:[%s5340_s0 + $0x30] sm:$0xff]  ;;  %v293_v16 = vld [vmem:[%s5340_s0 + $0xb8] sm:$0xff]  ;;  %v294_v18 = vld [vmem:[%s5340_s0 + $0xc0] sm:$0xff] }
  0x19   : > { %s3127_s8 = scalar_lea.vmem %s5343_s3, %s2645_s5  ;;  %v277_v17 = vld [vmem:[%s5340_s0 + $0x38] sm:$0xff]  ;;  %v295_v19 = vld [vmem:[%s5340_s0 + $0xc8] sm:$0xff]  ;;  %v278_v20 = vld [vmem:[%s5340_s0 + $0x40] sm:$0xff]  ;;  %s2749_s5 = sshll.u32 %s3120_s29, 5 }
  0x1a   : > { %s259_s11 = scalar_lea.vmem %s5341_s1, %s2757_s30  ;;  %v296_v21 = vld [vmem:[%s5340_s0 + $0xd0] sm:$0xff]  ;;  %v279_v22 = vld [vmem:[%s5340_s0 + $0x48] sm:$0xff]  ;;  %v297_v23 = vld [vmem:[%s5340_s0 + $0xd8] sm:$0xff]  ;;  %s264_s9 = scalar_lea.vmem %s5342_s2, %s2749_s5 }
  0x1b   : > { %v304_v0 = vld [vmem:[%s259_s11 + $0x10] sm:$0xf]  ;;  %v303_v1 = vld [vmem:[%s259_s11 + $0x8] sm:$0xff]  ;;  %v302_v2 = vld [vmem:[%s259_s11] sm:$0xff]  ;;  %s246_s29 = sand.u32 1, %s3018_s16   ;;  %s2746_s11 = sshll.u32 %s3026_s18, 1 }
  0x1c   : > { %2646 = vmatpush.msk.msra.mxu0 %vm404_vm0, %v304_v0  ;;  %2750 = vmatpush.msk.msra.mxu3 %vm404_vm0, %v304_v0  ;;  %v280_v24 = vld [vmem:[%s5340_s0 + $0x50] sm:$0xff]  ;;  %v281_v25 = vld [vmem:[%s5340_s0 + $0x58] sm:$0xff]  ;;  %v298_v26 = vld [vmem:[%s5340_s0 + $0xe0] sm:$0xff]  ;;  %s2641_s10 = sshll.u32 %s246_s29, 1  ;;  %s2522_s14 = scalar_lea.hbm %s5344_s4, %s2746_s11 }
  0x1d   : > { %v3229_v27 = vld [vmem:[%s3127_s8] ss:$0 sm:$0xff]  ;;  %v299_v28 = vld [vmem:[%s5340_s0 + $0xe8] sm:$0xff]  ;;  %v300_v33 = vld [vmem:[%s5340_s0 + $0xf0] sm:$0xff]  ;;  %s2526_s22 = sshll.u32 %s2522_s14, 4  ;;  %s2510_s18 = scalar_lea.sflag [#allocation3], %s246_s29  ;;  %s2527_s22 = int_to_ptr.hbm [resolvable:$true] %s2526_s22 }
  0x1e   : > { %422 = vmatpush.msra.mxu0 %v303_v1  ;;  %2751 = vmatpush.msra.mxu3 %v303_v1  ;;  %v282_v40 = vld [vmem:[%s5340_s0 + $0x60] sm:$0xff]  ;;  %v283_v48 = vld [vmem:[%s5340_s0 + $0x68] sm:$0xff]  ;;  %v284_v53 = vld [vmem:[%s5340_s0 + $0x70] sm:$0xff]  ;;  %s2970_s24 = sshra.s32 %s2527_s22, 4  ;;  %s2971_s24 = int_to_ptr.hbm [resolvable:$true] %s2970_s24 }
  0x1f   : > { %v301_v56 = vld [vmem:[%s5340_s0 + $0xf8] sm:$0xff]  ;;  %s2972_s26 = scalar_lea.hbm %s2971_s24, 2  ;;  %p2977_p1 = scmp.lt.s32.totalorder %s2971_s24, %s5344_s4 }
  0x20   : > { %423 = vmatpush.msra.mxu0 %v302_v2  ;;  %2752 = vmatpush.msra.mxu3 %v302_v2  ;;  %p2973_p12 = scmp.ne.s32.totalorder %s2971_s24, %s2972_s26  ;;  %p2978_p2 = scmp.lt.s32.totalorder %s2976_s6, %s2972_s26 }
  0x21   : > { %2647 = vmatmul.msk.f32.vlgmr.msra.gmra.mxu0 %vm307_vm1, %v270_v3  ;;  %2664 = vmatmul.msk.f32.vlgmr.msra.gmra.mxu3 %vm307_vm1, %v287_v4  ;;  %v285_v4 = vld [vmem:[%s5340_s0 + $0x78] sm:$0xff] }
  0x22   : > { %p2974_p13 = pnand %p2973_p12, %p3103_p4  ;;  %p2979_p3 = por %p2978_p2, %p2977_p1 }
  0x24   : > { %p2975_p0 = pneg %p2974_p13 }
  0x26   : > { %p2980_p5 = pnand %p2979_p3, %p2975_p0 }
  0x29   : > { %2648 = vmatmul.msk.f32.gmra.mxu0 %vm307_vm1, %v271_v5  ;;  %2665 = vmatmul.msk.f32.gmra.mxu3 %vm307_vm1, %v288_v6 }
  0x31   : > { %2649 = vmatmul.msk.f32.gmra.mxu0 %vm307_vm1, %v272_v7  ;;  %2666 = vmatmul.msk.f32.gmra.mxu3 %vm307_vm1, %v289_v8 }
  0x39   : > { %2650 = vmatmul.msk.f32.gmra.mxu0 %vm307_vm1, %v273_v9  ;;  %2667 = vmatmul.msk.f32.gmra.mxu3 %vm307_vm1, %v290_v10 }
  0x41   : > { %2651 = vmatmul.msk.f32.gmra.mxu0 %vm307_vm1, %v274_v11  ;;  %2668 = vmatmul.msk.f32.gmra.mxu3 %vm307_vm1, %v291_v12 }
  0x49   : > { %2652 = vmatmul.msk.f32.gmra.mxu0 %vm307_vm1, %v275_v13  ;;  %2669 = vmatmul.msk.f32.gmra.mxu3 %vm307_vm1, %v292_v14 }
  0x51   : > { %2653 = vmatmul.msk.f32.gmra.mxu0 %vm307_vm1, %v276_v15  ;;  %2670 = vmatmul.msk.f32.gmra.mxu3 %vm307_vm1, %v293_v16 }
  0x59   : > { %2654 = vmatmul.msk.f32.gmra.mxu0 %vm307_vm1, %v277_v17  ;;  %2671 = vmatmul.msk.f32.gmra.mxu3 %vm307_vm1, %v294_v18 }
  0x61   : > { %2672 = vmatmul.msk.f32.gmra.mxu3 %vm307_vm1, %v295_v19  ;;  %2655 = vmatmul.msk.f32.gmra.mxu0 %vm307_vm1, %v278_v20 }
  0x69   : > { %2673 = vmatmul.msk.f32.gmra.mxu3 %vm307_vm1, %v296_v21  ;;  %2656 = vmatmul.msk.f32.gmra.mxu0 %vm307_vm1, %v279_v22 }
  0x71   : > { %2674 = vmatmul.msk.f32.gmra.mxu3 %vm307_vm1, %v297_v23  ;;  %2657 = vmatmul.msk.f32.gmra.mxu0 %vm307_vm1, %v280_v24 }
  0x79   : > { %2658 = vmatmul.msk.f32.gmra.mxu0 %vm307_vm1, %v281_v25  ;;  %2675 = vmatmul.msk.f32.gmra.mxu3 %vm307_vm1, %v298_v26 }
  0x81   : > { %2676 = vmatmul.msk.f32.gmra.mxu3 %vm307_vm1, %v299_v28  ;;  %2659 = vmatmul.msk.f32.gmra.mxu0 %vm307_vm1, %v282_v40 }
  0x89   : > { %2677 = vmatmul.msk.f32.gmra.mxu3 %vm307_vm1, %v300_v33  ;;  %2660 = vmatmul.msk.f32.gmra.mxu0 %vm307_vm1, %v283_v48 }
  0x91   : > { %2661 = vmatmul.msk.f32.gmra.mxu0 %vm307_vm1, %v284_v53  ;;  %2678 = vmatmul.msk.f32.gmra.mxu3 %vm307_vm1, %v301_v56 }
  0x99   : > { %2662 = vmatmul.msk.f32.gmra.mxu0 %vm307_vm1, %v285_v4  ;;  %v286_v4 = vld [vmem:[%s5340_s0 + $0x80] sm:$0xff] }
  0x9e   : > { %v425_v29 = vpop.f32.mrf.mxu0 }
  0x9f   : > { %v3236_v30 = vadd.f32 %v3229_v27, %v425_v29 }
  0xa1   : > { %v524_v31 = vsel %vm523_vm2, %v3236_v30, 0.0  ;;  %2663 = vmatmul.msk.f32.gmra.mxu0 %vm307_vm1, %v286_v4 }
  0xa2   : > { %525 = vadd.xlane.f32.xlu0 %v524_v31 }
  0xa4   : > { %v3240_v32 = vpop.f32.mrf.mxu3 }
  0xa6   : > { %v428_v34 = vpop.f32.mrf.mxu0 }
  0xa7   : > { %v3247_v35 = vadd.f32 %v3229_v27, %v428_v34 }
  0xa9   : > { %v527_v36 = vsel %vm523_vm2, %v3247_v35, 0.0 }
  0xaa   : > { %528 = vadd.xlane.f32.xlu0 %v527_v36 }
  0xac   : > { %v3251_v37 = vpop.f32.mrf.mxu3 }
  0xae   : > { %v431_v38 = vpop.f32.mrf.mxu0 }
  0xaf   : > { %v3254_v39 = vadd.f32 %v3229_v27, %v431_v38 }
  0xb1   : > { %v530_v41 = vsel %vm523_vm2, %v3254_v39, 0.0 }
  0xb2   : > { %531 = vadd.xlane.f32.xlu1 %v530_v41  ;;  %v3036_v41 = vmov 32.0  }
  0xb3   : > { %2823 = vrcp.f32 %v3036_v41 }
  0xb4   : > { %v482_v42 = vpop.f32.mrf.mxu3 }
  0xb5   : > { %v3263_v43 = vadd.f32 %v3229_v27, %v482_v42 }
  0xb6   : > { %v434_v44 = vpop.f32.mrf.mxu0 }
  0xb7   : > { %v3266_v45 = vadd.f32 %v3229_v27, %v434_v44  ;;  %v581_v47 = vsel %vm523_vm2, %v3263_v43, 0.0 }
  0xb9   : > { %v533_v46 = vsel %vm523_vm2, %v3266_v45, 0.0  ;;  %v2824_v44 = vpop.eup %2823 }
  0xba   : > { %534 = vadd.xlane.f32.xlu2 %v533_v46  ;;  %582 = vadd.xlane.f32.xlu1 %v581_v47  ;;  %v621_v46 = vmul.f32 32.0, %v2824_v44  ;;  %vm625_vm3 = vweird.f32 %v2824_v44 }
  0xbc   : > { %v485_v49 = vpop.f32.mrf.mxu3  ;;  %v622_v47 = vsub.f32 1.0, %v621_v46 }
  0xbd   : > { %v3277_v50 = vadd.f32 %v3229_v27, %v485_v49 }
  0xbe   : > { %v437_v51 = vpop.f32.mrf.mxu0  ;;  %v623_v48 = vmul.f32 %v2824_v44, %v622_v47 }
  0xbf   : > { %v3280_v52 = vadd.f32 %v3229_v27, %v437_v51  ;;  %v584_v54 = vsel %vm523_vm2, %v3277_v50, 0.0 }
  0xc0   : > { %v624_v49 = vadd.f32 %v2824_v44, %v623_v48 }
  0xc1   : > { %v536_v55 = vsel %vm523_vm2, %v3280_v52, 0.0 }
  0xc2   : > { %585 = vadd.xlane.f32.xlu2 %v584_v54  ;;  %537 = vadd.xlane.f32.xlu0 %v536_v55  ;;  %v3368_v51 = vsel %vm625_vm3, %v2824_v44, %v624_v49 }
  0xc4   : > { %v488_v57 = vpop.f32.mrf.mxu3 }
  0xc5   : > { %v3295_v58 = vadd.f32 %v3229_v27, %v488_v57 }
  0xc6   : > { %v440_v59 = vpop.f32.mrf.mxu0 }
  0xc7   : > { %v3298_v60 = vadd.f32 %v3229_v27, %v440_v59  ;;  %v587_v61 = vsel %vm523_vm2, %v3295_v58, 0.0 }
  0xc8   : > { %588 = vadd.xlane.f32.xlu1 %v587_v61 }
  0xc9   : > { %v539_v62 = vsel %vm523_vm2, %v3298_v60, 0.0 }
  0xca   : > { %540 = vadd.xlane.f32.xlu2 %v539_v62 }
  0xcc   : > { %v491_v63 = vpop.f32.mrf.mxu3 }
  0xcd   : > { %v3305_v0 = vadd.f32 %v3229_v27, %v491_v63 }
  0xce   : > { %v443_v1 = vpop.f32.mrf.mxu0 }
  0xcf   : > { %v3308_v2 = vadd.f32 %v3229_v27, %v443_v1  ;;  %v590_v3 = vsel %vm523_vm2, %v3305_v0, 0.0 }
  0xd0   : > { %591 = vadd.xlane.f32.xlu0 %v590_v3 }
  0xd1   : > { %v542_v5 = vsel %vm523_vm2, %v3308_v2, 0.0 }
  0xd2   : > { %543 = vadd.xlane.f32.xlu2 %v542_v5 }
  0xd4   : > { %v494_v6 = vpop.f32.mrf.mxu3 }
  0xd5   : > { %v3319_v7 = vadd.f32 %v3229_v27, %v494_v6 }
  0xd6   : > { %v446_v8 = vpop.f32.mrf.mxu0 }
  0xd7   : > { %v3322_v9 = vadd.f32 %v3229_v27, %v446_v8  ;;  %v593_v10 = vsel %vm523_vm2, %v3319_v7, 0.0 }
  0xd8   : > { %594 = vadd.xlane.f32.xlu0 %v593_v10 }
  0xd9   : > { %v545_v11 = vsel %vm523_vm2, %v3322_v9, 0.0 }
  0xda   : > { %546 = vadd.xlane.f32.xlu2 %v545_v11 }
  0xdc   : > { %v497_v12 = vpop.f32.mrf.mxu3 }
  0xdd   : > { %v3329_v13 = vadd.f32 %v3229_v27, %v497_v12 }
  0xde   : > { %v449_v14 = vpop.f32.mrf.mxu0 }
  0xdf   : > { %v596_v15 = vsel %vm523_vm2, %v3329_v13, 0.0  ;;  %v3334_v16 = vadd.f32 %v3229_v27, %v449_v14 }
  0xe0   : > { %597 = vadd.xlane.f32.xlu0 %v596_v15 }
  0xe1   : > { %v548_v19 = vsel %vm523_vm2, %v3334_v16, 0.0 }
  0xe4   : > { %v500_v17 = vpop.f32.mrf.mxu3 }
  0xe5   : > { %v3337_v18 = vadd.f32 %v3229_v27, %v500_v17 }
  0xe6   : > { %v452_v20 = vpop.f32.mrf.mxu0 }
  0xe7   : > { %v599_v21 = vsel %vm523_vm2, %v3337_v18, 0.0  ;;  %v3344_v22 = vadd.f32 %v3229_v27, %v452_v20 }
  0xe8   : > { %600 = vadd.xlane.f32.xlu1 %v599_v21  ;;  %549 = vadd.xlane.f32.xlu0 %v548_v19 }
  0xe9   : > { %v551_v25 = vsel %vm523_vm2, %v3344_v22, 0.0 }
  0xec   : > { %v503_v23 = vpop.f32.mrf.mxu3 }
  0xed   : > { %v3347_v24 = vadd.f32 %v3229_v27, %v503_v23 }
  0xee   : > { %v455_v26 = vpop.f32.mrf.mxu0 }
  0xef   : > { %v602_v28 = vsel %vm523_vm2, %v3347_v24, 0.0  ;;  %v3354_v29 = vadd.f32 %v3229_v27, %v455_v26 }
  0xf0   : > { %603 = vadd.xlane.f32.xlu2 %v602_v28  ;;  %552 = vadd.xlane.f32.xlu1 %v551_v25 }
  0xf1   : > { %v554_v34 = vsel %vm523_vm2, %v3354_v29, 0.0 }
  0xf4   : > { %v506_v31 = vpop.f32.mrf.mxu3 }
  0xf5   : > { %v3357_v33 = vadd.f32 %v3229_v27, %v506_v31 }
  0xf6   : > { %v458_v36 = vpop.f32.mrf.mxu0 }
  0xf7   : > { %v605_v38 = vsel %vm523_vm2, %v3357_v33, 0.0  ;;  %v3364_v40 = vadd.f32 %v3229_v27, %v458_v36 }
  0xf8   : > { %555 = vadd.xlane.f32.xlu2 %v554_v34  ;;  %606 = vadd.xlane.f32.xlu0 %v605_v38 }
  0xf9   : > { %v557_v42 = vsel %vm523_vm2, %v3364_v40, 0.0 }
  0xfc   : > { %v509_v6 = vpop.f32.mrf.mxu3 }
  0xfd   : > { %v3397_v14 = vadd.f32 %v3229_v27, %v509_v6 }
  0xff   : > { %v608_v19 = vsel %vm523_vm2, %v3397_v14, 0.0 }
 0x100   : > { %558 = vadd.xlane.f32.xlu0 %v557_v42 }
 0x104   : > { %v512_v34 = vpop.f32.mrf.mxu3 }
 0x105   : > { %v3431_v48 = vadd.f32 %v3229_v27, %v512_v34 }
 0x115   : > { %v526_v53 = vpop.xlane.xlu0 %525 }
 0x116   : > { %v627_v54 = vmul.f32 %v3368_v51, %v526_v53 }
 0x118   : > { %v3372_v55 = vsub.f32 %v3236_v30, %v627_v54 }
 0x11a   : > { %v691_v56 = vmul.f32 %v3372_v55, %v3372_v55 }
 0x11c   : > { %v723_v57 = vsel %vm523_vm2, %v691_v56, 0.0 }
 0x11d   : > { %724 = vadd.xlane.f32.xlu1 %v723_v57  ;;  %v529_v59 = vpop.xlane.xlu0 %528  ;;  %v515_v57 = vpop.f32.mrf.mxu3 }
 0x11e   : > { %v628_v61 = vmul.f32 %v3368_v51, %v529_v59 }
 0x120   : > { %v3379_v62 = vsub.f32 %v3247_v35, %v628_v61 }
 0x122   : > { %v692_v63 = vmul.f32 %v3379_v62, %v3379_v62 }
 0x124   : > { %v726_v1 = vsel %vm523_vm2, %v692_v63, 0.0 }
 0x125   : > { %v532_v3 = vpop.xlane.xlu1 %531  ;;  %727 = vadd.xlane.f32.xlu1 %v726_v1 }
 0x126   : > { %v629_v30 = vmul.f32 %v3368_v51, %v532_v3 }
 0x128   : > { %v3390_v5 = vsub.f32 %v3254_v39, %v629_v30 }
 0x12a   : > { %v693_v35 = vmul.f32 %v3390_v5, %v3390_v5 }
 0x12c   : > { %v729_v8 = vsel %vm523_vm2, %v693_v35, 0.0  ;;  %v461_v35 = vpop.f32.mrf.mxu0 }
 0x12d   : > { %v535_v10 = vpop.xlane.xlu2 %534  ;;  %v583_v11 = vpop.xlane.xlu1 %582  ;;  %730 = vadd.xlane.f32.xlu1 %v729_v8 }
 0x12e   : > { %v646_v12 = vmul.f32 %v3368_v51, %v583_v11  ;;  %v630_v15 = vmul.f32 %v3368_v51, %v535_v10 }
 0x130   : > { %v3401_v17 = vsub.f32 %v3263_v43, %v646_v12  ;;  %v3408_v20 = vsub.f32 %v3266_v45, %v630_v15  ;;  %v3465_v15 = vadd.f32 %v3229_v27, %v461_v35 }
 0x132   : > { %v710_v39 = vmul.f32 %v3401_v17, %v3401_v17  ;;  %v694_v31 = vmul.f32 %v3408_v20, %v3408_v20 }
 0x134   : > { %v780_v21 = vsel %vm523_vm2, %v710_v39, 0.0  ;;  %v732_v42 = vsel %vm523_vm2, %v694_v31, 0.0 }
 0x135   : > { %v586_v23 = vpop.xlane.xlu2 %585  ;;  %781 = vadd.xlane.f32.xlu2 %v780_v21  ;;  %609 = vadd.xlane.f32.xlu1 %v608_v19  ;;  %v538_v25 = vpop.xlane.xlu0 %537 }
 0x136   : > { %v647_v26 = vmul.f32 %v3368_v51, %v586_v23  ;;  %v631_v28 = vmul.f32 %v3368_v51, %v538_v25  ;;  %v560_v23 = vsel %vm523_vm2, %v3465_v15, 0.0 }
 0x138   : > { %v3413_v43 = vsub.f32 %v3277_v50, %v647_v26  ;;  %v3421_v38 = vsub.f32 %v3280_v52, %v631_v28  ;;  %v464_v26 = vpop.f32.mrf.mxu0 }
 0x13a   : > { %v711_v45 = vmul.f32 %v3413_v43, %v3413_v43  ;;  %v695_v49 = vmul.f32 %v3421_v38, %v3421_v38 }
 0x13b   : > { %v589_v36 = vpop.xlane.xlu1 %588 }
 0x13c   : > { %v648_v41 = vmul.f32 %v3368_v51, %v589_v36  ;;  %v783_v50 = vsel %vm523_vm2, %v711_v45, 0.0  ;;  %v735_v61 = vsel %vm523_vm2, %v695_v49, 0.0 }
 0x13d   : > { %v541_v44 = vpop.xlane.xlu2 %540  ;;  %733 = vadd.xlane.f32.xlu2 %v732_v42  ;;  %784 = vadd.xlane.f32.xlu0 %v783_v50 }
 0x13e   : > { %v3427_v46 = vsub.f32 %v3295_v58, %v648_v41  ;;  %v632_v47 = vmul.f32 %v3368_v51, %v541_v44  ;;  %v611_v58 = vsel %vm523_vm2, %v3431_v48, 0.0  ;;  %v3487_v41 = vadd.f32 %v3229_v27, %v464_v26 }
 0x140   : > { %v712_v52 = vmul.f32 %v3427_v46, %v3427_v46  ;;  %v3438_v53 = vsub.f32 %v3298_v60, %v632_v47  ;;  %v3449_v60 = vadd.f32 %v3229_v27, %v515_v57  ;;  %v563_v44 = vsel %vm523_vm2, %v3487_v41, 0.0  ;;  %v467_v47 = vpop.f32.mrf.mxu0 }
 0x142   : > { %v786_v54 = vsel %vm523_vm2, %v712_v52, 0.0  ;;  %v696_v3 = vmul.f32 %v3438_v53, %v3438_v53  ;;  %v614_v8 = vsel %vm523_vm2, %v3449_v60, 0.0 }
 0x143   : > { %787 = vadd.xlane.f32.xlu1 %v786_v54  ;;  %v592_v56 = vpop.xlane.xlu0 %591 }
 0x144   : > { %v649_v59 = vmul.f32 %v3368_v51, %v592_v56  ;;  %v738_v6 = vsel %vm523_vm2, %v696_v3, 0.0  ;;  %v518_v3 = vpop.f32.mrf.mxu3 }
 0x145   : > { %v544_v63 = vpop.xlane.xlu2 %543  ;;  %612 = vadd.xlane.f32.xlu2 %v611_v58  ;;  %736 = vadd.xlane.f32.xlu0 %v735_v61 }
 0x146   : > { %v3446_v1 = vsub.f32 %v3305_v0, %v649_v59  ;;  %v633_v30 = vmul.f32 %v3368_v51, %v544_v63  ;;  %v3506_v59 = vadd.f32 %v3229_v27, %v467_v47 }
 0x148   : > { %v713_v4 = vmul.f32 %v3446_v1, %v3446_v1  ;;  %v3460_v10 = vsub.f32 %v3308_v2, %v633_v30 }
 0x14a   : > { %v789_v12 = vsel %vm523_vm2, %v713_v4, 0.0  ;;  %v697_v2 = vmul.f32 %v3460_v10, %v3460_v10  ;;  %v566_v4 = vsel %vm523_vm2, %v3506_v59, 0.0 }
 0x14b   : > { %739 = vadd.xlane.f32.xlu1 %v738_v6  ;;  %v595_v0 = vpop.xlane.xlu0 %594 }
 0x14c   : > { %v650_v11 = vmul.f32 %v3368_v51, %v595_v0  ;;  %v741_v34 = vsel %vm523_vm2, %v697_v2, 0.0  ;;  %v3519_v0 = vadd.f32 %v3229_v27, %v518_v3  ;;  %v470_v2 = vpop.f32.mrf.mxu0 }
 0x14d   : > { %v547_v39 = vpop.xlane.xlu2 %546  ;;  %615 = vadd.xlane.f32.xlu0 %v614_v8  ;;  %790 = vadd.xlane.f32.xlu2 %v789_v12 }
 0x14e   : > { %v3468_v19 = vsub.f32 %v3319_v7, %v650_v11  ;;  %v634_v21 = vmul.f32 %v3368_v51, %v547_v39  ;;  %v617_v39 = vsel %vm523_vm2, %v3519_v0, 0.0 }
 0x150   : > { %v714_v25 = vmul.f32 %v3468_v19, %v3468_v19  ;;  %v3478_v31 = vsub.f32 %v3322_v9, %v634_v21 }
 0x152   : > { %v792_v45 = vsel %vm523_vm2, %v714_v25, 0.0  ;;  %v698_v9 = vmul.f32 %v3478_v31, %v3478_v31 }
 0x153   : > { %561 = vadd.xlane.f32.xlu1 %v560_v23  ;;  %v598_v28 = vpop.xlane.xlu0 %597 }
 0x154   : > { %v651_v7 = vmul.f32 %v3368_v51, %v598_v28  ;;  %v744_v58 = vsel %vm523_vm2, %v698_v9, 0.0  ;;  %v3534_v28 = vadd.f32 %v3229_v27, %v470_v2 }
 0x155   : > { %742 = vadd.xlane.f32.xlu2 %v741_v34  ;;  %793 = vadd.xlane.f32.xlu0 %v792_v45 }
 0x156   : > { %v3484_v36 = vsub.f32 %v3329_v13, %v651_v7  ;;  %v569_v9 = vsel %vm523_vm2, %v3534_v28, 0.0 }
 0x158   : > { %v715_v42 = vmul.f32 %v3484_v36, %v3484_v36 }
 0x15a   : > { %v795_v50 = vsel %vm523_vm2, %v715_v42, 0.0 }
 0x15b   : > { %v601_v52 = vpop.xlane.xlu1 %600  ;;  %796 = vadd.xlane.f32.xlu1 %v795_v50  ;;  %v550_v49 = vpop.xlane.xlu0 %549 }
 0x15c   : > { %v652_v13 = vmul.f32 %v3368_v51, %v601_v52  ;;  %v635_v54 = vmul.f32 %v3368_v51, %v550_v49 }
 0x15d   : > { %564 = vadd.xlane.f32.xlu2 %v563_v44  ;;  %745 = vadd.xlane.f32.xlu0 %v744_v58  ;;  %v1336_v58 = vld [vmem:[%s264_s9 + $0x18] sm:$0xff] }
 0x15e   : > { %v3500_v56 = vsub.f32 %v3337_v18, %v652_v13  ;;  %v3503_v57 = vsub.f32 %v3334_v16, %v635_v54  ;;  %1447 = vmatpush.msra.mxu1 %v1336_v58  ;;  %2753 = vmatpush.msra.mxu2 %v1336_v58 }
 0x160   : > { %v699_v61 = vmul.f32 %v3503_v57, %v3503_v57  ;;  %v716_v63 = vmul.f32 %v3500_v56, %v3500_v56 }
 0x162   : > { %v747_v30 = vsel %vm523_vm2, %v699_v61, 0.0  ;;  %v798_v8 = vsel %vm523_vm2, %v716_v63, 0.0  ;;  %v1335_v61 = vld [vmem:[%s264_s9 + $0x10] sm:$0xff]  ;;  %v1334_v63 = vld [vmem:[%s264_s9 + $0x8] sm:$0xff] }
 0x163   : > { %v604_v18 = vpop.xlane.xlu2 %603  ;;  %v553_v35 = vpop.xlane.xlu1 %552  ;;  %748 = vadd.xlane.f32.xlu1 %v747_v30  ;;  %1448 = vmatpush.msra.mxu1 %v1335_v61 }
 0x164   : > { %v653_v16 = vmul.f32 %v3368_v51, %v604_v18  ;;  %v636_v6 = vmul.f32 %v3368_v51, %v553_v35  ;;  %2754 = vmatpush.msra.mxu2 %v1335_v61 }
 0x165   : > { %799 = vadd.xlane.f32.xlu2 %v798_v8  ;;  %567 = vadd.xlane.f32.xlu0 %v566_v4 }
 0x166   : > { %v3522_v11 = vsub.f32 %v3347_v24, %v653_v16  ;;  %v3525_v12 = vsub.f32 %v3344_v22, %v636_v6  ;;  %1449 = vmatpush.msra.mxu1 %v1334_v63  ;;  %2755 = vmatpush.msra.mxu2 %v1334_v63 }
 0x168   : > { %v700_v21 = vmul.f32 %v3525_v12, %v3525_v12  ;;  %v717_v23 = vmul.f32 %v3522_v11, %v3522_v11 }
 0x16a   : > { %v750_v7 = vsel %vm523_vm2, %v700_v21, 0.0  ;;  %v801_v34 = vsel %vm523_vm2, %v717_v23, 0.0 }
 0x16b   : > { %v556_v25 = vpop.xlane.xlu2 %555  ;;  %618 = vadd.xlane.f32.xlu1 %v617_v39  ;;  %v607_v26 = vpop.xlane.xlu0 %606 }
 0x16c   : > { %v637_v24 = vmul.f32 %v3368_v51, %v556_v25  ;;  %v654_v22 = vmul.f32 %v3368_v51, %v607_v26 }
 0x16d   : > { %751 = vadd.xlane.f32.xlu2 %v750_v7  ;;  %802 = vadd.xlane.f32.xlu0 %v801_v34  ;;  %v3569_v34 = vld [vmem:[%s3127_s8 + $0x1] ss:$0 sm:$0xff] }
 0x16e   : > { %v3541_v45 = vsub.f32 %v3354_v29, %v637_v24  ;;  %v3544_v42 = vsub.f32 %v3357_v33, %v654_v22 }
 0x170   : > { %v701_v50 = vmul.f32 %v3541_v45, %v3541_v45  ;;  %v718_v44 = vmul.f32 %v3544_v42, %v3544_v42 }
 0x172   : > { %v753_v29 = vsel %vm523_vm2, %v701_v50, 0.0  ;;  %v804_v49 = vsel %vm523_vm2, %v718_v44, 0.0  ;;  %v3572_v44 = vld [vmem:[%s3127_s8 + $0x2] ss:$0 sm:$0xff] }
 0x173   : > { %570 = vadd.xlane.f32.xlu1 %v569_v9  ;;  %v559_v47 = vpop.xlane.xlu0 %558 }
 0x174   : > { %v638_v52 = vmul.f32 %v3368_v51, %v559_v47 }
 0x175   : > { %754 = vadd.xlane.f32.xlu2 %v753_v29  ;;  %805 = vadd.xlane.f32.xlu0 %v804_v49 }
 0x176   : > { %v3556_v33 = vsub.f32 %v3364_v40, %v638_v52  ;;  %v1333_v40 = vld [vmem:[%s264_s9] sm:$0xff] }
 0x177   : > { %1450 = vmatpush.msra.mxu1 %v1333_v40  ;;  %2756 = vmatpush.msra.mxu2 %v1333_v40 }
 0x178   : > { %v702_v13 = vmul.f32 %v3556_v33, %v3556_v33 }
 0x17a   : > { %v756_v54 = vsel %vm523_vm2, %v702_v13, 0.0 }
 0x17b   : > { %757 = vadd.xlane.f32.xlu1 %v756_v54 }
 0x190   : > { %v725_v3 = vpop.xlane.xlu1 %724 }
 0x191   : > { %v819_v30 = vmul.f32 %v725_v3, %v3368_v51 }
 0x193   : > { %v851_v4 = vadd.f32 1e-05, %v819_v30 }
 0x195   : > { %2825 = vrsqrt.f32 %v851_v4  ;;  %vm889_vm5 = vweird.f32 %v851_v4 }
 0x198   : > { %v728_v18 = vpop.xlane.xlu1 %727 }
 0x199   : > { %v820_v35 = vmul.f32 %v728_v18, %v3368_v51 }
 0x19b   : > { %v2826_v16 = vpop.eup %2825  ;;  %v852_v6 = vadd.f32 1e-05, %v820_v35 }
 0x19c   : > { %v884_v8 = vmul.f32 %v2826_v16, %v851_v4  ;;  %vm890_vm4 = vweird.f32 %v2826_v16 }
 0x19d   : > { %2827 = vrsqrt.f32 %v852_v6  ;;  %vm891_vm6 = vmor %vm889_vm5, %vm890_vm4  ;;  %vm899_vm8 = vweird.f32 %v852_v6 }
 0x19e   : > { %v885_v39 = vmul.f32 %v2826_v16, %v884_v8 }
 0x1a0   : > { %v886_v21 = vmul.f32 0.5, %v885_v39  ;;  %v731_v23 = vpop.xlane.xlu1 %730 }
 0x1a1   : > { %v821_v2 = vmul.f32 %v731_v23, %v3368_v51 }
 0x1a2   : > { %v887_v25 = vsub.f32 1.5, %v886_v21 }
 0x1a3   : > { %v2828_v26 = vpop.eup %2827  ;;  %v853_v24 = vadd.f32 1e-05, %v821_v2 }
 0x1a4   : > { %v888_v22 = vmul.f32 %v2826_v16, %v887_v25  ;;  %v894_v7 = vmul.f32 %v2828_v26, %v852_v6  ;;  %vm900_vm7 = vweird.f32 %v2828_v26 }
 0x1a5   : > { %2829 = vrsqrt.f32 %v853_v24  ;;  %vm901_vm9 = vmor %vm899_vm8, %vm900_vm7  ;;  %vm909_vm11 = vweird.f32 %v853_v24 }
 0x1a6   : > { %v892_v9 = vsel %vm891_vm6, %v2826_v16, %v888_v22  ;;  %v895_v50 = vmul.f32 %v2828_v26, %v894_v7 }
 0x1a7   : > { %v1203_v47 = vmul.f32 %v892_v9, %v3372_v55 }
 0x1a8   : > { %v896_v52 = vmul.f32 0.5, %v895_v50  ;;  %v782_v29 = vpop.xlane.xlu2 %781  ;;  %v610_v49 = vpop.xlane.xlu1 %609 }
 0x1a9   : > { %v838_v13 = vmul.f32 %v782_v29, %v3368_v51  ;;  %v655_v54 = vmul.f32 %v3368_v51, %v610_v49  ;;  %v1236_v58 = vmul.f32 %v3569_v34, %v1203_v47 }
 0x1aa   : > { %v897_v61 = vsub.f32 1.5, %v896_v52 }
 0x1ab   : > { %v2830_v63 = vpop.eup %2829  ;;  %v870_v40 = vadd.f32 1e-05, %v838_v13  ;;  %v3579_v3 = vsub.f32 %v3397_v14, %v655_v54  ;;  %v1269_v30 = vadd.f32 %v3572_v44, %v1236_v58 }
 0x1ac   : > { %v898_v4 = vmul.f32 %v2828_v26, %v897_v61  ;;  %v904_v55 = vmul.f32 %v2830_v63, %v853_v24  ;;  %vm910_vm10 = vweird.f32 %v2830_v63 }
 0x1ad   : > { %2831 = vrsqrt.f32 %v870_v40  ;;  %v1301_v18 = vmax.f32 %v1269_v30, 0.0  ;;  %v719_v35 = vmul.f32 %v3579_v3, %v3579_v3  ;;  %vm911_vm12 = vmor %vm909_vm11, %vm910_vm10  ;;  %v473_v30 = vpop.f32.mrf.mxu0  ;;  %vm1079_vm14 = vweird.f32 %v870_v40 }
 0x1ae   : > { %v902_v16 = vsel %vm901_vm9, %v2828_v26, %v898_v4  ;;  %v905_v8 = vmul.f32 %v2830_v63, %v904_v55 }
 0x1af   : > { %2679 = vmatmul.msk.f32.vlgmr.msra.gmra.mxu1 %vm523_vm2, %v1301_v18  ;;  %v807_v39 = vsel %vm523_vm2, %v719_v35, 0.0  ;;  %v1204_v14 = vmul.f32 %v902_v16, %v3379_v62 }
 0x1b0   : > { %v906_v21 = vmul.f32 0.5, %v905_v8  ;;  %v734_v23 = vpop.xlane.xlu2 %733  ;;  %808 = vadd.xlane.f32.xlu2 %v807_v39  ;;  %v785_v2 = vpop.xlane.xlu0 %784  ;;  %v3607_v8 = vadd.f32 %v3229_v27, %v3240_v32 }
 0x1b1   : > { %v822_v6 = vmul.f32 %v734_v23, %v3368_v51  ;;  %v839_v25 = vmul.f32 %v785_v2, %v3368_v51  ;;  %v1237_v22 = vmul.f32 %v3569_v34, %v1204_v14  ;;  %v3618_v23 = vadd.f32 %v3229_v27, %v473_v30 }
 0x1b2   : > { %v907_v7 = vsub.f32 1.5, %v906_v21 }
 0x1b3   : > { %v2832_v26 = vpop.eup %2831  ;;  %v3590_v9 = vadd.f32 1e-05, %v822_v6  ;;  %v3592_v50 = vadd.f32 1e-05, %v839_v25  ;;  %v1270_v47 = vadd.f32 %v3572_v44, %v1237_v22  ;;  %v572_v30 = vsel %vm523_vm2, %v3618_v23, 0.0 }
 0x1b4   : > { %v908_v62 = vmul.f32 %v2830_v63, %v907_v7  ;;  %v1074_v52 = vmul.f32 %v2832_v26, %v870_v40  ;;  %vm1080_vm13 = vweird.f32 %v2832_v26 }
 0x1b5   : > { %2833 = vrsqrt.f32 %v3590_v9  ;;  %v1302_v29 = vmax.f32 %v1270_v47, 0.0  ;;  %vm1081_vm15 = vmor %vm1079_vm14, %vm1080_vm13  ;;  %vm919_vm0 = vweird.f32 %v3590_v9  ;;  %vm1089_vm1 = vweird.f32 %v3592_v50 }
 0x1b6   : > { %v912_v49 = vsel %vm911_vm12, %v2830_v63, %v908_v62  ;;  %v1075_v13 = vmul.f32 %v2832_v26, %v1074_v52  ;;  %2835 = vrsqrt.f32 %v3592_v50  ;;  %v788_v54 = vpop.xlane.xlu1 %787 }
 0x1b7   : > { %v840_v58 = vmul.f32 %v788_v54, %v3368_v51  ;;  %2680 = vmatmul.msk.f32.gmra.mxu1 %vm523_vm2, %v1302_v29  ;;  %v1205_v61 = vmul.f32 %v912_v49, %v3390_v5 }
 0x1b8   : > { %v1076_v4 = vmul.f32 0.5, %v1075_v13  ;;  %v613_v55 = vpop.xlane.xlu2 %612  ;;  %v737_v24 = vpop.xlane.xlu0 %736  ;;  %v3636_v13 = vsel %vm523_vm2, %v3607_v8, 0.0 }
 0x1b9   : > { %v3600_v18 = vadd.f32 1e-05, %v840_v58  ;;  %v656_v35 = vmul.f32 %v3368_v51, %v613_v55  ;;  %v823_v63 = vmul.f32 %v737_v24, %v3368_v51  ;;  %v1238_v16 = vmul.f32 %v3569_v34, %v1205_v61 }
 0x1ba   : > { %v1077_v39 = vsub.f32 1.5, %v1076_v4 }
 0x1bb   : > { %v3609_v14 = vpop.eup %2833  ;;  %2837 = vrsqrt.f32 %v3600_v18  ;;  %v3613_v5 = vsub.f32 %v3431_v48, %v656_v35  ;;  %v3615_v21 = vadd.f32 1e-05, %v823_v63  ;;  %v1271_v25 = vadd.f32 %v3572_v44, %v1238_v16 }
 0x1bc   : > { %v3620_v2 = vpop.eup %2835  ;;  %v1078_v6 = vmul.f32 %v2832_v26, %v1077_v39  ;;  %v914_v32 = vmul.f32 %v3609_v14, %v3590_v9  ;;  %vm920_vm3 = vweird.f32 %v3609_v14  ;;  %vm1099_vm5 = vweird.f32 %v3600_v18 }
 0x1bd   : > { %v1084_v22 = vmul.f32 %v3620_v2, %v3592_v50  ;;  %2839 = vrsqrt.f32 %v3615_v21  ;;  %v1303_v62 = vmax.f32 %v1271_v25, 0.0  ;;  %v720_v52 = vmul.f32 %v3613_v5, %v3613_v5  ;;  %vm921_vm6 = vmor %vm919_vm0, %vm920_vm3 }
 0x1be   : > { %v1082_v48 = vsel %vm1081_vm15, %v2832_v26, %v1078_v6  ;;  %v915_v7 = vmul.f32 %v3609_v14, %v914_v32  ;;  %v740_v47 = vpop.xlane.xlu1 %739  ;;  %vm1090_vm4 = vweird.f32 %v3620_v2  ;;  %vm929_vm7 = vweird.f32 %v3615_v21 }
 0x1bf   : > { %v1085_v40 = vmul.f32 %v3620_v2, %v1084_v22  ;;  %v824_v29 = vmul.f32 %v740_v47, %v3368_v51  ;;  %v1222_v49 = vmul.f32 %v1082_v48, %v3401_v17  ;;  %2681 = vmatmul.msk.f32.gmra.mxu1 %vm523_vm2, %v1303_v62  ;;  %v810_v58 = vsel %vm523_vm2, %v720_v52, 0.0  ;;  %vm3673_vm8 = vmor %vm1089_vm1, %vm1090_vm4 }
 0x1c0   : > { %v916_v54 = vmul.f32 0.5, %v915_v7  ;;  %v791_v26 = vpop.xlane.xlu2 %790  ;;  %v616_v61 = vpop.xlane.xlu0 %615  ;;  %811 = vadd.xlane.f32.xlu1 %v810_v58 }
 0x1c1   : > { %v3643_v4 = vpop.eup %2837  ;;  %v1086_v55 = vmul.f32 0.5, %v1085_v40  ;;  %v3646_v17 = vadd.f32 1e-05, %v824_v29  ;;  %v841_v24 = vmul.f32 %v791_v26, %v3368_v51  ;;  %v1255_v16 = vmul.f32 %v3569_v34, %v1222_v49 }
 0x1c2   : > { %v917_v35 = vsub.f32 1.5, %v916_v54  ;;  %v1094_v63 = vmul.f32 %v3643_v4, %v3600_v18  ;;  %v657_v47 = vmul.f32 %v3368_v51, %v616_v61  ;;  %vm1100_vm9 = vweird.f32 %v3643_v4 }
 0x1c3   : > { %v3653_v39 = vpop.eup %2839  ;;  %v1087_v6 = vsub.f32 1.5, %v1086_v55  ;;  %2841 = vrsqrt.f32 %v3646_v17  ;;  %v3657_v32 = vadd.f32 1e-05, %v841_v24  ;;  %v1288_v49 = vadd.f32 %v3572_v44, %v1255_v16  ;;  %vm3712_vm11 = vmor %vm1099_vm5, %vm1100_vm9 }
 0x1c4   : > { %v918_v25 = vmul.f32 %v3609_v14, %v917_v35  ;;  %v1095_v22 = vmul.f32 %v3643_v4, %v1094_v63  ;;  %v924_v48 = vmul.f32 %v3653_v39, %v3615_v21  ;;  %vm930_vm10 = vweird.f32 %v3653_v39 }
 0x1c5   : > { %v1088_v7 = vmul.f32 %v3620_v2, %v1087_v6  ;;  %2843 = vrsqrt.f32 %v3657_v32  ;;  %v1320_v61 = vmax.f32 %v1288_v49, 0.0  ;;  %v3721_v49 = vsub.f32 %v3449_v60, %v657_v47  ;;  %vm3734_vm12 = vmor %vm929_vm7, %vm930_vm10 }
 0x1c6   : > { %v922_v62 = vsel %vm921_vm6, %v3609_v14, %v918_v25  ;;  %v1096_v40 = vmul.f32 0.5, %v1095_v22  ;;  %v925_v9 = vmul.f32 %v3653_v39, %v924_v48  ;;  %v562_v29 = vpop.xlane.xlu1 %561  ;;  %vm939_vm13 = vweird.f32 %v3646_v17 }
 0x1c7   : > { %v1092_v54 = vsel %vm3673_vm8, %v3620_v2, %v1088_v7  ;;  %v639_v14 = vmul.f32 %v3368_v51, %v562_v29  ;;  %v1206_v50 = vmul.f32 %v922_v62, %v3408_v20  ;;  %2698 = vmatmul.msk.f32.vlgmr.msra.gmra.mxu2 %vm523_vm2, %v1320_v61  ;;  %vm1109_vm15 = vweird.f32 %v3657_v32 }
 0x1c8   : > { %v1097_v26 = vsub.f32 1.5, %v1096_v40  ;;  %v926_v58 = vmul.f32 0.5, %v925_v9  ;;  %v743_v55 = vpop.xlane.xlu2 %742  ;;  %v794_v24 = vpop.xlane.xlu0 %793  ;;  %573 = vadd.xlane.f32.xlu1 %v572_v30  ;;  %v1223_v48 = vmul.f32 %v1092_v54, %v3413_v43  ;;  %v3725_v54 = vadd.f32 %v3229_v27, %v3251_v37 }
 0x1c9   : > { %v3686_v35 = vpop.eup %2841  ;;  %v3689_v63 = vsub.f32 %v3465_v15, %v639_v14  ;;  %v825_v2 = vmul.f32 %v743_v55, %v3368_v51  ;;  %v842_v16 = vmul.f32 %v794_v24, %v3368_v51  ;;  %v1239_v6 = vmul.f32 %v3569_v34, %v1206_v50 }
 0x1ca   : > { %v1098_v20 = vmul.f32 %v3643_v4, %v1097_v26  ;;  %v927_v25 = vsub.f32 1.5, %v926_v58  ;;  %v934_v22 = vmul.f32 %v3686_v35, %v3646_v17  ;;  %v1256_v26 = vmul.f32 %v3569_v34, %v1223_v48 }
 0x1cb   : > { %v3699_v7 = vpop.eup %2843  ;;  %v3701_v15 = vadd.f32 1e-05, %v825_v2  ;;  %v3703_v62 = vadd.f32 1e-05, %v842_v16  ;;  %v703_v30 = vmul.f32 %v3689_v63, %v3689_v63  ;;  %v1272_v52 = vadd.f32 %v3572_v44, %v1239_v6 }
 0x1cc   : > { %v928_v43 = vmul.f32 %v3653_v39, %v927_v25  ;;  %v935_v9 = vmul.f32 %v3686_v35, %v934_v22  ;;  %v1104_v29 = vmul.f32 %v3699_v7, %v3657_v32  ;;  %v1102_v18 = vsel %vm3712_vm11, %v3643_v4, %v1098_v20 }
 0x1cd   : > { %2845 = vrsqrt.f32 %v3701_v15  ;;  %v759_v47 = vsel %vm523_vm2, %v703_v30, 0.0  ;;  %v1304_v50 = vmax.f32 %v1272_v52, 0.0  ;;  %v1289_v6 = vadd.f32 %v3572_v44, %v1256_v26 }
 0x1ce   : > { %v932_v27 = vsel %vm3734_vm12, %v3653_v39, %v928_v43  ;;  %v936_v37 = vmul.f32 0.5, %v935_v9  ;;  %v1105_v60 = vmul.f32 %v3699_v7, %v1104_v29  ;;  %2847 = vrsqrt.f32 %v3703_v62  ;;  %v797_v4 = vpop.xlane.xlu1 %796  ;;  %760 = vadd.xlane.f32.xlu0 %v759_v47 }
 0x1cf   : > { %v843_v21 = vmul.f32 %v797_v4, %v3368_v51  ;;  %v721_v39 = vmul.f32 %v3721_v49, %v3721_v49  ;;  %v1207_v2 = vmul.f32 %v932_v27, %v3421_v38  ;;  %2682 = vmatmul.msk.f32.gmra.mxu1 %vm523_vm2, %v1304_v50  ;;  %vm940_vm14 = vweird.f32 %v3686_v35 }
 0x1d0   : > { %v937_v58 = vsub.f32 1.5, %v936_v37  ;;  %v1106_v61 = vmul.f32 0.5, %v1105_v60  ;;  %v565_v55 = vpop.xlane.xlu2 %564  ;;  %v746_v24 = vpop.xlane.xlu0 %745  ;;  %576 = vadd.xlane.f32.xlu1 %v3636_v13  ;;  %v1224_v30 = vmul.f32 %v1102_v18, %v3427_v46  ;;  %v1321_v40 = vmax.f32 %v1289_v6, 0.0  ;;  %vm3786_vm3 = vmor %vm939_vm13, %vm940_vm14 }
 0x1d1   : > { %v3751_v16 = vadd.f32 1e-05, %v843_v21  ;;  %v640_v20 = vmul.f32 %v3368_v51, %v565_v55  ;;  %v826_v25 = vmul.f32 %v746_v24, %v3368_v51  ;;  %v1240_v48 = vmul.f32 %v3569_v34, %v1207_v2 }
 0x1d2   : > { %v1107_v22 = vsub.f32 1.5, %v1106_v61  ;;  %v938_v52 = vmul.f32 %v3686_v35, %v937_v58  ;;  %vm1110_vm0 = vweird.f32 %v3699_v7  ;;  %vm949_vm1 = vweird.f32 %v3701_v15  ;;  %2699 = vmatmul.msk.f32.gmra.mxu2 %vm523_vm2, %v1321_v40 }
 0x1d3   : > { %v3761_v38 = vpop.eup %2845  ;;  %2849 = vrsqrt.f32 %v3751_v16  ;;  %v3766_v43 = vsub.f32 %v3487_v41, %v640_v20  ;;  %v3778_v29 = vadd.f32 1e-05, %v826_v25  ;;  %v813_v41 = vsel %vm523_vm2, %v721_v39, 0.0  ;;  %vm3809_vm4 = vmor %vm1109_vm15, %vm1110_vm0 }
 0x1d4   : > { %v3768_v13 = vpop.eup %2847  ;;  %v944_v9 = vmul.f32 %v3761_v38, %v3701_v15  ;;  %v1273_v18 = vadd.f32 %v3572_v44, %v1240_v48  ;;  %v1108_v27 = vmul.f32 %v3699_v7, %v1107_v22  ;;  %v1257_v4 = vmul.f32 %v3569_v34, %v1224_v30 }
 0x1d5   : > { %v1114_v46 = vmul.f32 %v3768_v13, %v3703_v62  ;;  %v704_v21 = vmul.f32 %v3766_v43, %v3766_v43  ;;  %v942_v47 = vsel %vm3786_vm3, %v3686_v35, %v938_v52  ;;  %2851 = vrsqrt.f32 %v3778_v29 }
 0x1d6   : > { %v945_v37 = vmul.f32 %v3761_v38, %v944_v9  ;;  %v749_v60 = vpop.xlane.xlu1 %748  ;;  %814 = vadd.xlane.f32.xlu0 %v813_v41  ;;  %v1305_v58 = vmax.f32 %v1273_v18, 0.0  ;;  %v1290_v61 = vadd.f32 %v3572_v44, %v1257_v4  ;;  %v1112_v48 = vsel %vm3809_vm4, %v3699_v7, %v1108_v27 }
 0x1d7   : > { %v1115_v17 = vmul.f32 %v3768_v13, %v1114_v46  ;;  %v827_v50 = vmul.f32 %v749_v60, %v3368_v51  ;;  %v762_v55 = vsel %vm523_vm2, %v704_v21, 0.0  ;;  %vm950_vm5 = vweird.f32 %v3761_v38 }
 0x1d8   : > { %v946_v26 = vmul.f32 0.5, %v945_v37  ;;  %v800_v24 = vpop.xlane.xlu2 %799  ;;  %v568_v39 = vpop.xlane.xlu0 %567  ;;  %763 = vadd.xlane.f32.xlu2 %v762_v55  ;;  %vm1119_vm6 = vweird.f32 %v3703_v62  ;;  %2683 = vmatmul.msk.f32.gmra.mxu1 %vm523_vm2, %v1305_v58  ;;  %v1322_v40 = vmax.f32 %v1290_v61, 0.0  ;;  %v1208_v18 = vmul.f32 %v942_v47, %v3438_v53  ;;  %vm3838_vm7 = vmor %vm949_vm1, %vm950_vm5 }
 0x1d9   : > { %v3803_v2 = vpop.eup %2849  ;;  %v1116_v6 = vmul.f32 0.5, %v1115_v17  ;;  %v3813_v20 = vadd.f32 1e-05, %v827_v50  ;;  %v844_v25 = vmul.f32 %v800_v24, %v3368_v51  ;;  %v641_v22 = vmul.f32 %v3368_v51, %v568_v39 }
 0x1da   : > { %v947_v30 = vsub.f32 1.5, %v946_v26  ;;  %v1124_v32 = vmul.f32 %v3803_v2, %v3751_v16  ;;  %vm1120_vm8 = vweird.f32 %v3768_v13  ;;  %vm1129_vm9 = vweird.f32 %v3751_v16  ;;  %2700 = vmatmul.msk.f32.gmra.mxu2 %vm523_vm2, %v1322_v40 }
 0x1db   : > { %v1117_v52 = vsub.f32 1.5, %v1116_v6  ;;  %2853 = vrsqrt.f32 %v3813_v20  ;;  %v3826_v9 = vadd.f32 1e-05, %v844_v25  ;;  %v3831_v41 = vsub.f32 %v3506_v59, %v641_v22  ;;  %v3834_v14 = vpop.eup %2851  ;;  %vm3882_vm13 = vmor %vm1119_vm6, %vm1120_vm8 }
 0x1dc   : > { %v948_v46 = vmul.f32 %v3761_v38, %v947_v30  ;;  %v1125_v7 = vmul.f32 %v3803_v2, %v1124_v32  ;;  %v1225_v59 = vmul.f32 %v1112_v48, %v3446_v1  ;;  %vm1130_vm10 = vweird.f32 %v3803_v2 }
 0x1dd   : > { %2855 = vrsqrt.f32 %v3826_v9  ;;  %v954_v15 = vmul.f32 %v3834_v14, %v3778_v29  ;;  %vm959_vm11 = vweird.f32 %v3778_v29  ;;  %v1118_v4 = vmul.f32 %v3768_v13, %v1117_v52  ;;  %vm3896_vm14 = vmor %vm1129_vm9, %vm1130_vm10 }
 0x1de   : > { %v952_v53 = vsel %vm3838_vm7, %v3761_v38, %v948_v46  ;;  %v1126_v37 = vmul.f32 0.5, %v1125_v7  ;;  %v619_v60 = vpop.xlane.xlu1 %618  ;;  %v1241_v47 = vmul.f32 %v3569_v34, %v1208_v18  ;;  %v1258_v1 = vmul.f32 %v3569_v34, %v1225_v59 }
 0x1df   : > { %v658_v21 = vmul.f32 %v3368_v51, %v619_v60  ;;  %v955_v38 = vmul.f32 %v3834_v14, %v954_v15  ;;  %vm960_vm12 = vweird.f32 %v3834_v14  ;;  %v705_v26 = vmul.f32 %v3831_v41, %v3831_v41 }
 0x1e0   : > { %v1127_v17 = vsub.f32 1.5, %v1126_v37  ;;  %v752_v50 = vpop.xlane.xlu2 %751  ;;  %v803_v58 = vpop.xlane.xlu0 %802  ;;  %v1274_v55 = vadd.f32 %v3572_v44, %v1241_v47  ;;  %v1291_v24 = vadd.f32 %v3572_v44, %v1258_v1  ;;  %v1209_v35 = vmul.f32 %v952_v53, %v3460_v10  ;;  %vm3920_vm0 = vmor %vm959_vm11, %vm960_vm12 }
 0x1e1   : > { %v3862_v61 = vpop.eup %2853  ;;  %v828_v39 = vmul.f32 %v752_v50, %v3368_v51  ;;  %v956_v25 = vmul.f32 0.5, %v955_v38  ;;  %v3874_v48 = vsub.f32 %v3519_v0, %v658_v21  ;;  %v765_v46 = vsel %vm523_vm2, %v705_v26, 0.0 }
 0x1e2   : > { %v3869_v6 = vmul.f32 %v3803_v2, %v1127_v17  ;;  %v964_v22 = vmul.f32 %v3862_v61, %v3813_v20  ;;  %v1306_v10 = vmax.f32 %v1274_v55, 0.0  ;;  %v1323_v52 = vmax.f32 %v1291_v24, 0.0  ;;  %766 = vadd.xlane.f32.xlu2 %v765_v46 }
 0x1e3   : > { %v3876_v30 = vpop.eup %2855  ;;  %v3886_v40 = vadd.f32 1e-05, %v828_v39  ;;  %v1122_v0 = vsel %vm3882_vm13, %v3768_v13, %v1118_v4  ;;  %v957_v7 = vsub.f32 1.5, %v956_v25  ;;  %vm970_vm15 = vweird.f32 %v3862_v61 }
 0x1e4   : > { %v965_v18 = vmul.f32 %v3862_v61, %v964_v22  ;;  %v1134_v27 = vmul.f32 %v3876_v30, %v3826_v9  ;;  %v1132_v13 = vsel %vm3896_vm14, %v3803_v2, %v3869_v6  ;;  %2684 = vmatmul.msk.f32.gmra.mxu1 %vm523_vm2, %v1306_v10  ;;  %2701 = vmatmul.msk.f32.gmra.mxu2 %vm523_vm2, %v1323_v52  ;;  %vm1140_vm1 = vweird.f32 %v3876_v30 }
 0x1e5   : > { %2857 = vrsqrt.f32 %v3886_v40  ;;  %v845_v16 = vmul.f32 %v803_v58, %v3368_v51  ;;  %v958_v59 = vmul.f32 %v3834_v14, %v957_v7  ;;  %v722_v60 = vmul.f32 %v3874_v48, %v3874_v48 }
 0x1e6   : > { %v966_v53 = vmul.f32 0.5, %v965_v18  ;;  %v1135_v37 = vmul.f32 %v3876_v30, %v1134_v27  ;;  %v571_v15 = vpop.xlane.xlu1 %570  ;;  %v1242_v47 = vmul.f32 %v3569_v34, %v1209_v35  ;;  %v1226_v1 = vmul.f32 %v1122_v0, %v3468_v19 }
 0x1e7   : > { %v3924_v4 = vadd.f32 1e-05, %v845_v16  ;;  %v642_v21 = vmul.f32 %v3368_v51, %v571_v15  ;;  %v962_v17 = vsel %vm3920_vm0, %v3834_v14, %v958_v59  ;;  %v816_v29 = vsel %vm523_vm2, %v722_v60, 0.0 }
 0x1e8   : > { %v967_v38 = vsub.f32 1.5, %v966_v53  ;;  %v1136_v50 = vmul.f32 0.5, %v1135_v37  ;;  %v755_v26 = vpop.xlane.xlu2 %754  ;;  %v806_v58 = vpop.xlane.xlu0 %805  ;;  %817 = vadd.xlane.f32.xlu0 %v816_v29  ;;  %v1275_v19 = vadd.f32 %v3572_v44, %v1242_v47  ;;  %v1259_v14 = vmul.f32 %v3569_v34, %v1226_v1 }
 0x1e9   : > { %2859 = vrsqrt.f32 %v3924_v4  ;;  %v3936_v55 = vsub.f32 %v3534_v28, %v642_v21  ;;  %v829_v35 = vmul.f32 %v755_v26, %v3368_v51  ;;  %v846_v22 = vmul.f32 %v806_v58, %v3368_v51 }
 0x1ea   : > { %v968_v24 = vmul.f32 %v3862_v61, %v967_v38  ;;  %v1137_v39 = vsub.f32 1.5, %v1136_v50  ;;  %v1307_v25 = vmax.f32 %v1275_v19, 0.0  ;;  %v1210_v28 = vmul.f32 %v962_v17, %v3478_v31 }
 0x1eb   : > { %v3942_v6 = vpop.eup %2857  ;;  %v706_v32 = vmul.f32 %v3936_v55, %v3936_v55  ;;  %vm969_vm3 = vweird.f32 %v3813_v20  ;;  %vm1139_vm4 = vweird.f32 %v3826_v9  ;;  %v1292_v0 = vadd.f32 %v3572_v44, %v1259_v14 }
 0x1ec   : > { %v1138_v10 = vmul.f32 %v3876_v30, %v1137_v39  ;;  %v974_v52 = vmul.f32 %v3942_v6, %v3886_v40  ;;  %vm3955_vm5 = vmor %vm969_vm3, %vm970_vm15  ;;  %2685 = vmatmul.msk.f32.gmra.mxu1 %vm523_vm2, %v1307_v25  ;;  %v3961_v31 = vadd.f32 1e-05, %v829_v35  ;;  %v3963_v20 = vadd.f32 1e-05, %v846_v22 }
 0x1ed   : > { %v768_v62 = vsel %vm523_vm2, %v706_v32, 0.0  ;;  %vm3968_vm6 = vmor %vm1139_vm4, %vm1140_vm1  ;;  %v1243_v27 = vmul.f32 %v3569_v34, %v1210_v28  ;;  %v1227_v16 = vmul.f32 %v1132_v13, %v3484_v36  ;;  %v972_v53 = vsel %vm3955_vm5, %v3862_v61, %v968_v24 }
 0x1ee   : > { %v975_v7 = vmul.f32 %v3942_v6, %v974_v52  ;;  %v758_v18 = vpop.xlane.xlu1 %757  ;;  %769 = vadd.xlane.f32.xlu2 %v768_v62  ;;  %v1142_v37 = vsel %vm3968_vm6, %v3876_v30, %v1138_v10  ;;  %v1324_v15 = vmax.f32 %v1292_v0, 0.0  ;;  %2861 = vrsqrt.f32 %v3961_v31 }
 0x1ef   : > { %v2860_v59 = vpop.eup %2859  ;;  %2863 = vrsqrt.f32 %v3963_v20  ;;  %v578_v36 = vsel %vm523_vm2, %v3725_v54, 0.0  ;;  %vm980_vm7 = vweird.f32 %v3942_v6  ;;  %v830_v61 = vmul.f32 %v758_v18, %v3368_v51 }
 0x1f0   : > { %v976_v60 = vmul.f32 0.5, %v975_v7  ;;  %v1144_v2 = vmul.f32 %v2860_v59, %v3924_v4  ;;  %2702 = vmatmul.msk.f32.gmra.mxu2 %vm523_vm2, %v1324_v15  ;;  %579 = vadd.xlane.f32.xlu0 %v578_v36  ;;  %v1276_v30 = vadd.f32 %v3572_v44, %v1243_v27  ;;  %v1260_v13 = vmul.f32 %v3569_v34, %v1227_v16 }
 0x1f1   : > { %v1211_v1 = vmul.f32 %v972_v53, %v3503_v57  ;;  %v1228_v17 = vmul.f32 %v1142_v37, %v3500_v56  ;;  %v3993_v38 = vadd.f32 1e-05, %v830_v61  ;;  %vm979_vm8 = vweird.f32 %v3886_v40 }
 0x1f2   : > { %v977_v21 = vsub.f32 1.5, %v976_v60  ;;  %v1145_v47 = vmul.f32 %v2860_v59, %v1144_v2  ;;  %v1308_v50 = vmax.f32 %v1276_v30, 0.0  ;;  %v1293_v29 = vadd.f32 %v3572_v44, %v1260_v13  ;;  %vm981_vm9 = vmor %vm979_vm8, %vm980_vm7 }
 0x1f3   : > { %v1244_v19 = vmul.f32 %v3569_v34, %v1211_v1  ;;  %2865 = vrsqrt.f32 %v3993_v38  ;;  %v1261_v56 = vmul.f32 %v3569_v34, %v1228_v17  ;;  %vm1150_vm10 = vweird.f32 %v2860_v59 }
 0x1f4   : > { %v978_v26 = vmul.f32 %v3942_v6, %v977_v21  ;;  %v1146_v58 = vmul.f32 0.5, %v1145_v47  ;;  %v2862_v24 = vpop.eup %2861  ;;  %2686 = vmatmul.msk.f32.gmra.mxu1 %vm523_vm2, %v1308_v50  ;;  %v1325_v25 = vmax.f32 %v1293_v29, 0.0  ;;  %vm1149_vm11 = vweird.f32 %v3924_v4 }
 0x1f5   : > { %v2864_v57 = vpop.eup %2863  ;;  %v984_v40 = vmul.f32 %v2862_v24, %v3961_v31  ;;  %v1277_v22 = vadd.f32 %v3572_v44, %v1244_v19  ;;  %vm1151_vm12 = vmor %vm1149_vm11, %vm1150_vm10  ;;  %vm990_vm13 = vweird.f32 %v2862_v24  ;;  %vm989_vm15 = vweird.f32 %v3961_v31 }
 0x1f6   : > { %v982_v39 = vsel %vm981_vm9, %v3942_v6, %v978_v26  ;;  %v1147_v14 = vsub.f32 1.5, %v1146_v58  ;;  %v1154_v35 = vmul.f32 %v2864_v57, %v3963_v20  ;;  %v1294_v6 = vadd.f32 %v3572_v44, %v1261_v56  ;;  %vm991_vm0 = vmor %vm989_vm15, %vm990_vm13 }
 0x1f7   : > { %v985_v28 = vmul.f32 %v2862_v24, %v984_v40  ;;  %v1212_v10 = vmul.f32 %v982_v39, %v3525_v12  ;;  %v1309_v18 = vmax.f32 %v1277_v22, 0.0  ;;  %vm1160_vm14 = vweird.f32 %v2864_v57 }
 0x1f8   : > { %v1148_v32 = vmul.f32 %v2860_v59, %v1147_v14  ;;  %v1155_v52 = vmul.f32 %v2864_v57, %v1154_v35  ;;  %2703 = vmatmul.msk.f32.gmra.mxu2 %vm523_vm2, %v1325_v25  ;;  %v1326_v53 = vmax.f32 %v1294_v6, 0.0  ;;  %vm1159_vm1 = vweird.f32 %v3963_v20 }
 0x1f9   : > { %v986_v0 = vmul.f32 0.5, %v985_v28  ;;  %v1245_v62 = vmul.f32 %v3569_v34, %v1212_v10  ;;  %v2866_v9 = vpop.eup %2865  ;;  %vm1161_vm3 = vmor %vm1159_vm1, %vm1160_vm14  ;;  %vm999_vm5 = vweird.f32 %v3993_v38 }
 0x1fa   : > { %v1152_v46 = vsel %vm1151_vm12, %v2860_v59, %v1148_v32  ;;  %v1156_v7 = vmul.f32 0.5, %v1155_v52  ;;  %v994_v12 = vmul.f32 %v2866_v9, %v3993_v38  ;;  %vm1000_vm4 = vweird.f32 %v2866_v9 }
 0x1fb   : > { %v1229_v27 = vmul.f32 %v1152_v46, %v3522_v11  ;;  %v987_v16 = vsub.f32 1.5, %v986_v0  ;;  %v1278_v37 = vadd.f32 %v3572_v44, %v1245_v62  ;;  %vm1001_vm6 = vmor %vm999_vm5, %vm1000_vm4 }
 0x1fc   : > { %v1157_v4 = vsub.f32 1.5, %v1156_v7  ;;  %2687 = vmatmul.msk.f32.gmra.mxu1 %vm523_vm2, %v1309_v18  ;;  %v995_v60 = vmul.f32 %v2866_v9, %v994_v12 }
 0x1fd   : > { %v1262_v59 = vmul.f32 %v3569_v34, %v1229_v27  ;;  %v988_v15 = vmul.f32 %v2862_v24, %v987_v16  ;;  %v1310_v30 = vmax.f32 %v1278_v37, 0.0 }
 0x1fe   : > { %v1158_v2 = vmul.f32 %v2864_v57, %v1157_v4  ;;  %v996_v36 = vmul.f32 0.5, %v995_v60 }
 0x1ff   : > { %v992_v11 = vsel %vm991_vm0, %v2862_v24, %v988_v15  ;;  %v1295_v13 = vadd.f32 %v3572_v44, %v1262_v59 }
 0x200   : > { %v1162_v61 = vsel %vm1161_vm3, %v2864_v57, %v1158_v2  ;;  %2704 = vmatmul.msk.f32.gmra.mxu2 %vm523_vm2, %v1326_v53  ;;  %v1213_v21 = vmul.f32 %v992_v11, %v3541_v45  ;;  %v997_v47 = vsub.f32 1.5, %v996_v36 }
 0x201   : > { %v1230_v31 = vmul.f32 %v1162_v61, %v3544_v42  ;;  %v1327_v20 = vmax.f32 %v1295_v13, 0.0 }
 0x202   : > { %v1246_v1 = vmul.f32 %v3569_v34, %v1213_v21  ;;  %v998_v17 = vmul.f32 %v2866_v9, %v997_v47 }
 0x203   : > { %v1263_v29 = vmul.f32 %v3569_v34, %v1230_v31 }
 0x204   : > { %2688 = vmatmul.msk.f32.gmra.mxu1 %vm523_vm2, %v1310_v30  ;;  %v1279_v50 = vadd.f32 %v3572_v44, %v1246_v1  ;;  %v1002_v26 = vsel %vm1001_vm6, %v2866_v9, %v998_v17 }
 0x205   : > { %v1214_v45 = vmul.f32 %v1002_v26, %v3556_v33  ;;  %v1296_v42 = vadd.f32 %v3572_v44, %v1263_v29 }
 0x206   : > { %v1311_v58 = vmax.f32 %v1279_v50, 0.0 }
 0x207   : > { %v1247_v19 = vmul.f32 %v3569_v34, %v1214_v45  ;;  %v1328_v38 = vmax.f32 %v1296_v42, 0.0 }
 0x208   : > { %2705 = vmatmul.msk.f32.gmra.mxu2 %vm523_vm2, %v1327_v20 }
 0x209   : > { %v1280_v24 = vadd.f32 %v3572_v44, %v1247_v19 }
 0x20b   : > { %v1312_v56 = vmax.f32 %v1280_v24, 0.0 }
 0x20c   : > { %2689 = vmatmul.msk.f32.gmra.mxu1 %vm523_vm2, %v1311_v58 }
 0x210   : > { %2706 = vmatmul.msk.f32.gmra.mxu2 %vm523_vm2, %v1328_v38 }
 0x214   : > { %2690 = vmatmul.msk.f32.gmra.mxu1 %vm523_vm2, %v1312_v56 }
 0x223   : > { %v809_v57 = vpop.xlane.xlu2 %808 }
 0x224   : > { %v847_v33 = vmul.f32 %v809_v57, %v3368_v51 }
 0x226   : > { %v879_v39 = vadd.f32 1e-05, %v847_v33 }
 0x228   : > { %2867 = vrsqrt.f32 %v879_v39  ;;  %vm1169_vm8 = vweird.f32 %v879_v39 }
 0x22c   : > { %v4038_v25 = vpop.f32.mrf.mxu1 }
 0x22e   : > { %v2868_v14 = vpop.eup %2867 }
 0x22f   : > { %v1164_v40 = vmul.f32 %v2868_v14, %v879_v39  ;;  %vm1170_vm7 = vweird.f32 %v2868_v14 }
 0x230   : > { %vm1171_vm9 = vmor %vm1169_vm8, %vm1170_vm7 }
 0x231   : > { %v1165_v35 = vmul.f32 %v2868_v14, %v1164_v40  ;;  %v4075_v40 = vld [vmem:[%s3127_s8 + $0x3] ss:$0 sm:$0xff] }
 0x233   : > { %v1166_v22 = vmul.f32 0.5, %v1165_v35  ;;  %v812_v32 = vpop.xlane.xlu1 %811 }
 0x234   : > { %v848_v10 = vmul.f32 %v812_v32, %v3368_v51  ;;  %v4042_v62 = vpop.f32.mrf.mxu1 }
 0x235   : > { %v1167_v28 = vsub.f32 1.5, %v1166_v22 }
 0x236   : > { %v880_v6 = vadd.f32 1e-05, %v848_v10 }
 0x237   : > { %v1168_v52 = vmul.f32 %v2868_v14, %v1167_v28 }
 0x238   : > { %2869 = vrsqrt.f32 %v880_v6  ;;  %vm1179_vm11 = vweird.f32 %v880_v6 }
 0x239   : > { %v1172_v46 = vsel %vm1171_vm9, %v2868_v14, %v1168_v52 }
 0x23a   : > { %v1231_v0 = vmul.f32 %v1172_v46, %v3579_v3 }
 0x23b   : > { %v574_v9 = vpop.xlane.xlu1 %573 }
 0x23c   : > { %v1264_v7 = vmul.f32 %v3569_v34, %v1231_v0  ;;  %v643_v18 = vmul.f32 %v3368_v51, %v574_v9  ;;  %v4056_v61 = vpop.f32.mrf.mxu1 }
 0x23e   : > { %v1297_v27 = vadd.f32 %v3572_v44, %v1264_v7  ;;  %v2870_v16 = vpop.eup %2869  ;;  %v4048_v12 = vsub.f32 %v3618_v23, %v643_v18 }
 0x23f   : > { %v1174_v4 = vmul.f32 %v2870_v16, %v880_v6  ;;  %vm1180_vm10 = vweird.f32 %v2870_v16 }
 0x240   : > { %v1329_v53 = vmax.f32 %v1297_v27, 0.0  ;;  %v707_v37 = vmul.f32 %v4048_v12, %v4048_v12  ;;  %vm1181_vm12 = vmor %vm1179_vm11, %vm1180_vm10 }
 0x241   : > { %v1175_v59 = vmul.f32 %v2870_v16, %v1174_v4  ;;  %v761_v3 = vpop.xlane.xlu0 %760 }
 0x242   : > { %2707 = vmatmul.msk.f32.gmra.mxu2 %vm523_vm2, %v1329_v53  ;;  %v771_v15 = vsel %vm523_vm2, %v707_v37, 0.0  ;;  %v831_v2 = vmul.f32 %v761_v3, %v3368_v51  ;;  %v4090_v37 = vld [vmem:[%s3127_s8 + $0x1] ss:$0 sm:$0xff] }
 0x243   : > { %v1176_v60 = vmul.f32 0.5, %v1175_v59  ;;  %772 = vadd.xlane.f32.xlu1 %v771_v15  ;;  %v577_v11 = vpop.xlane.xlu1 %576 }
 0x244   : > { %v644_v36 = vmul.f32 %v3368_v51, %v577_v11  ;;  %v863_v30 = vadd.f32 1e-05, %v831_v2 }
 0x245   : > { %v1177_v23 = vsub.f32 1.5, %v1176_v60 }
 0x246   : > { %v4059_v13 = vsub.f32 %v3607_v8, %v644_v36  ;;  %2871 = vrsqrt.f32 %v863_v30  ;;  %vm1009_vm14 = vweird.f32 %v863_v30 }
 0x247   : > { %v1178_v21 = vmul.f32 %v2870_v16, %v1177_v23 }
 0x248   : > { %v708_v47 = vmul.f32 %v4059_v13, %v4059_v13 }
 0x249   : > { %v1182_v31 = vsel %vm1181_vm12, %v2870_v16, %v1178_v21  ;;  %v815_v1 = vpop.xlane.xlu0 %814 }
 0x24a   : > { %v774_v17 = vsel %vm523_vm2, %v708_v47, 0.0  ;;  %v1232_v20 = vmul.f32 %v1182_v31, %v3613_v5  ;;  %v849_v50 = vmul.f32 %v815_v1, %v3368_v51  ;;  %v4068_v42 = vpop.f32.mrf.mxu2 }
 0x24b   : > { %v764_v29 = vpop.xlane.xlu2 %763  ;;  %775 = vadd.xlane.f32.xlu2 %v774_v17 }
 0x24c   : > { %v832_v8 = vmul.f32 %v764_v29, %v3368_v51  ;;  %v1265_v26 = vmul.f32 %v3569_v34, %v1232_v20  ;;  %v2872_v45 = vpop.eup %2871  ;;  %v881_v58 = vadd.f32 1e-05, %v849_v50  ;;  %v4070_v19 = vpop.f32.mrf.mxu1 }
 0x24d   : > { %v1004_v38 = vmul.f32 %v2872_v45, %v863_v30  ;;  %vm1010_vm13 = vweird.f32 %v2872_v45 }
 0x24e   : > { %v864_v24 = vadd.f32 1e-05, %v832_v8  ;;  %2873 = vrsqrt.f32 %v881_v58  ;;  %v1298_v5 = vadd.f32 %v3572_v44, %v1265_v26  ;;  %vm1011_vm15 = vmor %vm1009_vm14, %vm1010_vm13  ;;  %vm1189_vm3 = vweird.f32 %v881_v58 }
 0x24f   : > { %v1005_v56 = vmul.f32 %v2872_v45, %v1004_v38 }
 0x250   : > { %2875 = vrsqrt.f32 %v864_v24  ;;  %v1330_v57 = vmax.f32 %v1298_v5, 0.0  ;;  %vm1019_vm5 = vweird.f32 %v864_v24 }
 0x251   : > { %v1006_v33 = vmul.f32 0.5, %v1005_v56 }
 0x252   : > { %2708 = vmatmul.msk.f32.gmra.mxu2 %vm523_vm2, %v1330_v57 }
 0x253   : > { %v1007_v39 = vsub.f32 1.5, %v1006_v33 }
 0x254   : > { %v2874_v34 = vpop.eup %2873 }
 0x255   : > { %v1008_v35 = vmul.f32 %v2872_v45, %v1007_v39  ;;  %v1184_v22 = vmul.f32 %v2874_v34, %v881_v58  ;;  %v767_v32 = vpop.xlane.xlu2 %766  ;;  %v1512_v44 = vpop.f32.mrf.mxu2  ;;  %vm1190_vm0 = vweird.f32 %v2874_v34 }
 0x256   : > { %v2876_v14 = vpop.eup %2875  ;;  %v833_v10 = vmul.f32 %v767_v32, %v3368_v51  ;;  %v4078_v52 = vpop.f32.mrf.mxu1  ;;  %v4081_v0 = vadd.f32 %v4075_v40, %v1512_v44  ;;  %vm1191_vm4 = vmor %vm1189_vm3, %vm1190_vm0 }
 0x257   : > { %v1014_v28 = vmul.f32 %v2876_v14, %v864_v24  ;;  %v1012_v6 = vsel %vm1011_vm15, %v2872_v45, %v1008_v35  ;;  %v1185_v46 = vmul.f32 %v2874_v34, %v1184_v22  ;;  %vm1020_vm1 = vweird.f32 %v2876_v14 }
 0x258   : > { %v4083_v7 = vadd.f32 1e-05, %v833_v10  ;;  %v1215_v18 = vmul.f32 %v1012_v6, %v3689_v63  ;;  %v1610_v16 = vsel %vm523_vm2, %v4081_v0, 0.0  ;;  %v4095_v63 = vld [vmem:[%s3127_s8 + $0x2] ss:$0 sm:$0xff]  ;;  %vm1021_vm6 = vmor %vm1019_vm5, %vm1020_vm1 }
 0x259   : > { %v1015_v9 = vmul.f32 %v2876_v14, %v1014_v28  ;;  %v1186_v27 = vmul.f32 0.5, %v1185_v46  ;;  %1611 = vadd.xlane.f32.xlu2 %v1610_v16 }
 0x25a   : > { %2877 = vrsqrt.f32 %v4083_v7  ;;  %v1248_v59 = vmul.f32 %v4090_v37, %v1215_v18  ;;  %vm1029_vm8 = vweird.f32 %v4083_v7 }
 0x25b   : > { %v1016_v4 = vmul.f32 0.5, %v1015_v9  ;;  %v818_v53 = vpop.xlane.xlu0 %817  ;;  %v1187_v3 = vsub.f32 1.5, %v1186_v27 }
 0x25c   : > { %v850_v15 = vmul.f32 %v818_v53, %v3368_v51  ;;  %v1281_v2 = vadd.f32 %v4095_v63, %v1248_v59 }
 0x25d   : > { %v1017_v60 = vsub.f32 1.5, %v1016_v4  ;;  %v1188_v11 = vmul.f32 %v2874_v34, %v1187_v3  ;;  %v4100_v30 = vpop.f32.mrf.mxu2 }
 0x25e   : > { %v4098_v36 = vadd.f32 1e-05, %v850_v15  ;;  %v1313_v21 = vmax.f32 %v1281_v2, 0.0  ;;  %v4146_v2 = vadd.f32 %v4075_v40, %v4078_v52 }
 0x25f   : > { %v1018_v23 = vmul.f32 %v2876_v14, %v1017_v60  ;;  %v1192_v47 = vsel %vm1191_vm4, %v2874_v34, %v1188_v11 }
 0x260   : > { %2879 = vrsqrt.f32 %v4098_v36  ;;  %v2878_v1 = vpop.eup %2877  ;;  %2691 = vmatmul.msk.f32.gmra.mxu1 %vm523_vm2, %v1313_v21  ;;  %v1233_v29 = vmul.f32 %v1192_v47, %v3721_v49  ;;  %vm1199_vm11 = vweird.f32 %v4098_v36 }
 0x261   : > { %v770_v31 = vpop.xlane.xlu2 %769  ;;  %v1022_v17 = vsel %vm1021_vm6, %v2876_v14, %v1018_v23  ;;  %v1467_v20 = vpop.f32.mrf.mxu1  ;;  %v1024_v8 = vmul.f32 %v2878_v1, %v4083_v7  ;;  %vm1030_vm7 = vweird.f32 %v2878_v1 }
 0x262   : > { %v834_v50 = vmul.f32 %v770_v31, %v3368_v51  ;;  %v4108_v26 = vadd.f32 %v4075_v40, %v1467_v20  ;;  %v1216_v45 = vmul.f32 %v1022_v17, %v3766_v43  ;;  %v1266_v24 = vmul.f32 %v4090_v37, %v1233_v29  ;;  %vm1031_vm9 = vmor %vm1029_vm8, %vm1030_vm7 }
 0x263   : > { %v580_v38 = vpop.xlane.xlu0 %579  ;;  %v1025_v5 = vmul.f32 %v2878_v1, %v1024_v8 }
 0x264   : > { %v4111_v58 = vadd.f32 1e-05, %v834_v50  ;;  %v1565_v56 = vsel %vm523_vm2, %v4108_v26, 0.0  ;;  %v645_v57 = vmul.f32 %v3368_v51, %v580_v38  ;;  %v1249_v49 = vmul.f32 %v4090_v37, %v1216_v45 }
 0x265   : > { %1566 = vadd.xlane.f32.xlu1 %v1565_v56  ;;  %v1299_v33 = vadd.f32 %v4095_v63, %v1266_v24  ;;  %v1026_v43 = vmul.f32 0.5, %v1025_v5  ;;  %v4162_v38 = vadd.f32 %v4075_v40, %v4100_v30 }
 0x266   : > { %2881 = vrsqrt.f32 %v4111_v58  ;;  %v2880_v39 = vpop.eup %2879  ;;  %v4121_v34 = vsub.f32 %v3725_v54, %v645_v57  ;;  %v1282_v14 = vadd.f32 %v4095_v63, %v1249_v49  ;;  %vm1039_vm14 = vweird.f32 %v4111_v58 }
 0x267   : > { %v1194_v35 = vmul.f32 %v2880_v39, %v4098_v36  ;;  %v1518_v22 = vpop.f32.mrf.mxu2  ;;  %v1331_v32 = vmax.f32 %v1299_v33, 0.0  ;;  %v1027_v28 = vsub.f32 1.5, %v1026_v43  ;;  %vm1200_vm10 = vweird.f32 %v2880_v39 }
 0x268   : > { %v4126_v44 = vadd.f32 %v4075_v40, %v1518_v22  ;;  %v709_v10 = vmul.f32 %v4121_v34, %v4121_v34  ;;  %v1314_v6 = vmax.f32 %v1282_v14, 0.0  ;;  %vm1201_vm12 = vmor %vm1199_vm11, %vm1200_vm10  ;;  %v1613_v30 = vsel %vm523_vm2, %v4162_v38, 0.0 }
 0x269   : > { %v1195_v46 = vmul.f32 %v2880_v39, %v1194_v35  ;;  %v1470_v9 = vpop.f32.mrf.mxu1  ;;  %2709 = vmatmul.msk.f32.gmra.mxu2 %vm523_vm2, %v1331_v32  ;;  %v1028_v54 = vmul.f32 %v2878_v1, %v1027_v28 }
 0x26a   : > { %v4133_v18 = vadd.f32 %v4075_v40, %v1470_v9  ;;  %v777_v27 = vsel %vm523_vm2, %v709_v10, 0.0  ;;  %2692 = vmatmul.msk.f32.gmra.mxu1 %vm523_vm2, %v1314_v6  ;;  %v1616_v3 = vsel %vm523_vm2, %v4126_v44, 0.0 }
 0x26b   : > { %v1196_v4 = vmul.f32 0.5, %v1195_v46  ;;  %778 = vadd.xlane.f32.xlu0 %v777_v27  ;;  %v1032_v53 = vsel %vm1031_vm9, %v2878_v1, %v1028_v54 }
 0x26c   : > { %v2882_v16 = vpop.eup %2881  ;;  %v1568_v7 = vsel %vm523_vm2, %v4133_v18, 0.0  ;;  %v1217_v60 = vmul.f32 %v1032_v53, %v3831_v41  ;;  %v1562_v41 = vsel %vm523_vm2, %v4146_v2, 0.0 }
 0x26d   : > { %v1034_v59 = vmul.f32 %v2882_v16, %v4111_v58  ;;  %v1197_v15 = vsub.f32 1.5, %v1196_v4  ;;  %1617 = vadd.xlane.f32.xlu1 %v1616_v3  ;;  %1569 = vadd.xlane.f32.xlu2 %v1568_v7  ;;  %vm1040_vm13 = vweird.f32 %v2882_v16 }
 0x26e   : > { %v1250_v21 = vmul.f32 %v4090_v37, %v1217_v60  ;;  %vm1041_vm15 = vmor %vm1039_vm14, %vm1040_vm13 }
 0x26f   : > { %v1035_v11 = vmul.f32 %v2882_v16, %v1034_v59  ;;  %v1198_v23 = vmul.f32 %v2880_v39, %v1197_v15 }
 0x270   : > { %v1283_v17 = vadd.f32 %v4095_v63, %v1250_v21 }
 0x271   : > { %v1036_v47 = vmul.f32 0.5, %v1035_v11  ;;  %v1202_v31 = vsel %vm1201_vm12, %v2880_v39, %v1198_v23  ;;  %v1473_v1 = vpop.f32.mrf.mxu1 }
 0x272   : > { %v1234_v52 = vmul.f32 %v1202_v31, %v3874_v48  ;;  %v1315_v29 = vmax.f32 %v1283_v17, 0.0  ;;  %v4179_v35 = vadd.f32 %v4075_v40, %v1473_v1 }
 0x273   : > { %v1037_v20 = vsub.f32 1.5, %v1036_v47  ;;  %v1521_v50 = vpop.f32.mrf.mxu2  ;;  %1563 = vadd.xlane.f32.xlu0 %v1562_v41 }
 0x274   : > { %v4156_v36 = vadd.f32 %v4075_v40, %v1521_v50  ;;  %v1267_v45 = vmul.f32 %v4090_v37, %v1234_v52  ;;  %2693 = vmatmul.msk.f32.gmra.mxu1 %vm523_vm2, %v1315_v29  ;;  %v1571_v28 = vsel %vm523_vm2, %v4179_v35, 0.0 }
 0x275   : > { %v1038_v8 = vmul.f32 %v2882_v16, %v1037_v20 }
 0x276   : > { %v1619_v48 = vsel %vm523_vm2, %v4156_v36, 0.0  ;;  %v1300_v5 = vadd.f32 %v4095_v63, %v1267_v45 }
 0x277   : > { %v1042_v24 = vsel %vm1041_vm15, %v2882_v16, %v1038_v8  ;;  %1620 = vadd.xlane.f32.xlu2 %v1619_v48 }
 0x278   : > { %v1218_v58 = vmul.f32 %v1042_v24, %v3936_v55  ;;  %v1332_v56 = vmax.f32 %v1300_v5, 0.0 }
 0x279   : > { %v1476_v57 = vpop.f32.mrf.mxu1 }
 0x27a   : > { %v1251_v49 = vmul.f32 %v4090_v37, %v1218_v58  ;;  %v4170_v33 = vadd.f32 %v4075_v40, %v1476_v57  ;;  %2710 = vmatmul.msk.f32.gmra.mxu2 %vm523_vm2, %v1332_v56 }
 0x27b   : > { %v1524_v39 = vpop.f32.mrf.mxu2  ;;  %1614 = vadd.xlane.f32.xlu0 %v1613_v30 }
 0x27c   : > { %v1284_v43 = vadd.f32 %v4095_v63, %v1251_v49  ;;  %v1574_v14 = vsel %vm523_vm2, %v4170_v33, 0.0  ;;  %v4193_v9 = vadd.f32 %v4075_v40, %v1524_v39 }
 0x27d   : > { %1575 = vadd.xlane.f32.xlu1 %v1574_v14 }
 0x27e   : > { %v1316_v55 = vmax.f32 %v1284_v43, 0.0  ;;  %v1622_v16 = vsel %vm523_vm2, %v4193_v9, 0.0 }
 0x280   : > { %2694 = vmatmul.msk.f32.gmra.mxu1 %vm523_vm2, %v1316_v55 }
 0x281   : > { %v1479_v22 = vpop.f32.mrf.mxu1 }
 0x282   : > { %v4183_v32 = vadd.f32 %v4075_v40, %v1479_v22 }
 0x283   : > { %v1527_v10 = vpop.f32.mrf.mxu2  ;;  %1572 = vadd.xlane.f32.xlu0 %v1571_v28 }
 0x284   : > { %v4188_v6 = vadd.f32 %v4075_v40, %v1527_v10  ;;  %v1577_v46 = vsel %vm523_vm2, %v4183_v32, 0.0 }
 0x285   : > { %1578 = vadd.xlane.f32.xlu2 %v1577_v46 }
 0x286   : > { %v1625_v54 = vsel %vm523_vm2, %v4188_v6, 0.0 }
 0x287   : > { %1626 = vadd.xlane.f32.xlu1 %v1625_v54 }
 0x289   : > { %v1482_v27 = vpop.f32.mrf.mxu1 }
 0x28a   : > { %v4203_v59 = vadd.f32 %v4075_v40, %v1482_v27 }
 0x28b   : > { %v1530_v4 = vpop.f32.mrf.mxu2  ;;  %1623 = vadd.xlane.f32.xlu0 %v1622_v16 }
 0x28c   : > { %v4200_v53 = vadd.f32 %v4075_v40, %v1530_v4  ;;  %v1580_v60 = vsel %vm523_vm2, %v4203_v59, 0.0 }
 0x28e   : > { %v1628_v3 = vsel %vm523_vm2, %v4200_v53, 0.0 }
 0x28f   : > { %1629 = vadd.xlane.f32.xlu2 %v1628_v3 }
 0x291   : > { %v1485_v7 = vpop.f32.mrf.mxu1 }
 0x292   : > { %v4208_v15 = vadd.f32 %v4075_v40, %v1485_v7 }
 0x293   : > { %v1533_v11 = vpop.f32.mrf.mxu2  ;;  %1581 = vadd.xlane.f32.xlu0 %v1580_v60 }
 0x294   : > { %v1583_v23 = vsel %vm523_vm2, %v4208_v15, 0.0  ;;  %v4215_v21 = vadd.f32 %v4075_v40, %v1533_v11 }
 0x295   : > { %1584 = vadd.xlane.f32.xlu1 %v1583_v23 }
 0x296   : > { %v1631_v47 = vsel %vm523_vm2, %v4215_v21, 0.0 }
 0x29b   : > { %1632 = vadd.xlane.f32.xlu0 %v1631_v47 }
 0x2b6   : > { %v773_v31 = vpop.xlane.xlu1 %772 }
 0x2b7   : > { %v835_v1 = vmul.f32 %v773_v31, %v3368_v51 }
 0x2b9   : > { %v867_v17 = vadd.f32 1e-05, %v835_v1 }
 0x2bb   : > { %2883 = vrsqrt.f32 %v867_v17  ;;  %vm1049_vm1 = vweird.f32 %v867_v17 }
 0x2be   : > { %v776_v20 = vpop.xlane.xlu2 %775 }
 0x2bf   : > { %v836_v41 = vmul.f32 %v776_v20, %v3368_v51 }
 0x2c1   : > { %v2884_v52 = vpop.eup %2883  ;;  %v868_v50 = vadd.f32 1e-05, %v836_v41 }
 0x2c2   : > { %v1044_v29 = vmul.f32 %v2884_v52, %v867_v17  ;;  %vm1050_vm0 = vweird.f32 %v2884_v52 }
 0x2c3   : > { %2885 = vrsqrt.f32 %v868_v50  ;;  %vm1051_vm3 = vmor %vm1049_vm1, %vm1050_vm0  ;;  %vm1059_vm5 = vweird.f32 %v868_v50 }
 0x2c4   : > { %v1045_v8 = vmul.f32 %v2884_v52, %v1044_v29 }
 0x2c5   : > { %v1536_v45 = vpop.f32.mrf.mxu2 }
 0x2c6   : > { %v4222_v24 = vadd.f32 %v4075_v40, %v1536_v45  ;;  %v1046_v48 = vmul.f32 0.5, %v1045_v8 }
 0x2c8   : > { %v1634_v5 = vsel %vm523_vm2, %v4222_v24, 0.0  ;;  %v1047_v58 = vsub.f32 1.5, %v1046_v48 }
 0x2c9   : > { %1635 = vadd.xlane.f32.xlu1 %v1634_v5  ;;  %v2886_v56 = vpop.eup %2885 }
 0x2ca   : > { %v1048_v57 = vmul.f32 %v2884_v52, %v1047_v58  ;;  %v1054_v49 = vmul.f32 %v2886_v56, %v868_v50  ;;  %vm1060_vm4 = vweird.f32 %v2886_v56 }
 0x2cb   : > { %vm1061_vm6 = vmor %vm1059_vm5, %vm1060_vm4 }
 0x2cc   : > { %v1052_v30 = vsel %vm1051_vm3, %v2884_v52, %v1048_v57  ;;  %v1055_v39 = vmul.f32 %v2886_v56, %v1054_v49 }
 0x2cd   : > { %v1219_v43 = vmul.f32 %v1052_v30, %v4048_v12 }
 0x2ce   : > { %v1056_v14 = vmul.f32 0.5, %v1055_v39 }
 0x2cf   : > { %v1252_v55 = vmul.f32 %v4090_v37, %v1219_v43 }
 0x2d0   : > { %v1057_v22 = vsub.f32 1.5, %v1056_v14  ;;  %v4263_v14 = vadd.f32 %v4075_v40, %v4042_v62 }
 0x2d1   : > { %v1285_v28 = vadd.f32 %v4095_v63, %v1252_v55 }
 0x2d2   : > { %v1058_v10 = vmul.f32 %v2886_v56, %v1057_v22 }
 0x2d3   : > { %v1317_v46 = vmax.f32 %v1285_v28, 0.0  ;;  %v1553_v28 = vsel %vm523_vm2, %v4263_v14, 0.0 }
 0x2d4   : > { %v1062_v54 = vsel %vm1061_vm6, %v2886_v56, %v1058_v10 }
 0x2d5   : > { %2695 = vmatmul.msk.f32.gmra.mxu1 %vm523_vm2, %v1317_v46  ;;  %v1220_v27 = vmul.f32 %v1062_v54, %v4059_v13  ;;  %v1539_v31 = vpop.f32.mrf.mxu2 }
 0x2d6   : > { %v4241_v13 = vadd.f32 %v4075_v40, %v1539_v31 }
 0x2d7   : > { %v1253_v16 = vmul.f32 %v4090_v37, %v1220_v27  ;;  %v4282_v27 = vadd.f32 %v4075_v40, %v4068_v42  ;;  %v4298_v42 = vadd.f32 %v4075_v40, %v4038_v25 }
 0x2d8   : > { %v1637_v41 = vsel %vm523_vm2, %v4241_v13, 0.0 }
 0x2d9   : > { %v1286_v12 = vadd.f32 %v4095_v63, %v1253_v16  ;;  %v4286_v16 = vadd.f32 %v4075_v40, %v4070_v19 }
 0x2db   : > { %v1318_v4 = vmax.f32 %v1286_v12, 0.0  ;;  %v1607_v12 = vsel %vm523_vm2, %v4282_v27, 0.0 }
 0x2dd   : > { %2696 = vmatmul.msk.f32.gmra.mxu1 %vm523_vm2, %v1318_v4  ;;  %v1488_v7 = vpop.f32.mrf.mxu1  ;;  %v1559_v4 = vsel %vm523_vm2, %v4286_v16, 0.0 }
 0x2de   : > { %v779_v3 = vpop.xlane.xlu0 %778  ;;  %v4236_v11 = vadd.f32 %v4075_v40, %v1488_v7  ;;  %v1550_v7 = vsel %vm523_vm2, %v4298_v42, 0.0 }
 0x2df   : > { %v837_v60 = vmul.f32 %v779_v3, %v3368_v51  ;;  %v4294_v3 = vadd.f32 %v4075_v40, %v4056_v61 }
 0x2e0   : > { %v1586_v47 = vsel %vm523_vm2, %v4236_v11, 0.0 }
 0x2e1   : > { %v869_v23 = vadd.f32 1e-05, %v837_v60  ;;  %1587 = vadd.xlane.f32.xlu2 %v1586_v47  ;;  %v1556_v19 = vsel %vm523_vm2, %v4294_v3, 0.0  ;;  %v4308_v47 = vpop.xlane.xlu1 %1566 }
 0x2e3   : > { %2887 = vrsqrt.f32 %v869_v23  ;;  %vm1069_vm8 = vweird.f32 %v869_v23 }
 0x2e6   : > { %v4304_v60 = vpop.xlane.xlu0 %1563 }
 0x2e7   : > { %v1491_v1 = vpop.f32.mrf.mxu1 }
 0x2e8   : > { %v4244_v17 = vadd.f32 %v4075_v40, %v1491_v1 }
 0x2e9   : > { %v2888_v20 = vpop.eup %2887  ;;  %1638 = vadd.xlane.f32.xlu2 %v1637_v41  ;;  %v4310_v31 = vpop.xlane.xlu1 %1617 }
 0x2ea   : > { %v1064_v52 = vmul.f32 %v2888_v20, %v869_v23  ;;  %v1589_v50 = vsel %vm523_vm2, %v4244_v17, 0.0  ;;  %vm1070_vm7 = vweird.f32 %v2888_v20 }
 0x2eb   : > { %1590 = vadd.xlane.f32.xlu0 %v1589_v50  ;;  %vm1071_vm9 = vmor %vm1069_vm8, %vm1070_vm7 }
 0x2ec   : > { %v1065_v29 = vmul.f32 %v2888_v20, %v1064_v52  ;;  %v1542_v8 = vpop.f32.mrf.mxu2  ;;  %v4316_v52 = vpop.xlane.xlu2 %1611 }
 0x2ed   : > { %v4251_v48 = vadd.f32 %v4075_v40, %v1542_v8 }
 0x2ee   : > { %v1066_v45 = vmul.f32 0.5, %v1065_v29  ;;  %v4306_v23 = vpop.xlane.xlu0 %1614 }
 0x2ef   : > { %v1640_v57 = vsel %vm523_vm2, %v4251_v48, 0.0 }
 0x2f0   : > { %v1067_v5 = vsub.f32 1.5, %v1066_v45 }
 0x2f1   : > { %v1494_v56 = vpop.f32.mrf.mxu1  ;;  %v4312_v25 = vpop.xlane.xlu1 %1575 }
 0x2f2   : > { %v1068_v58 = vmul.f32 %v2888_v20, %v1067_v5  ;;  %v4256_v49 = vadd.f32 %v4075_v40, %v1494_v56 }
 0x2f3   : > { %1641 = vadd.xlane.f32.xlu0 %v1640_v57 }
 0x2f4   : > { %v1072_v30 = vsel %vm1071_vm9, %v2888_v20, %v1068_v58  ;;  %v1592_v39 = vsel %vm523_vm2, %v4256_v49, 0.0  ;;  %v4320_v8 = vpop.xlane.xlu2 %1569 }
 0x2f5   : > { %v1221_v43 = vmul.f32 %v1072_v30, %v4121_v34  ;;  %1593 = vadd.xlane.f32.xlu1 %v1592_v39 }
 0x2f6   : > { %v1573_v61 = vpop.xlane.xlu0 %1572 }
 0x2f7   : > { %v1254_v55 = vmul.f32 %v4090_v37, %v1221_v43 }
 0x2f9   : > { %v1287_v22 = vadd.f32 %v4095_v63, %v1254_v55 }
 0x2fa   : > { %v4314_v41 = vpop.xlane.xlu1 %1626 }
 0x2fb   : > { %1554 = vadd.xlane.f32.xlu0 %v1553_v28  ;;  %v1319_v10 = vmax.f32 %v1287_v22, 0.0 }
 0x2fc   : > { %v4334_v55 = vpop.xlane.xlu2 %1620 }
 0x2fd   : > { %v1497_v46 = vpop.f32.mrf.mxu1  ;;  %v1545_v54 = vpop.f32.mrf.mxu2  ;;  %2697 = vmatmul.msk.f32.gmra.mxu1 %vm523_vm2, %v1319_v10 }
 0x2fe   : > { %v4271_v34 = vadd.f32 %v4075_v40, %v1497_v46  ;;  %v4274_v62 = vadd.f32 %v4075_v40, %v1545_v54  ;;  %v1624_v1 = vpop.xlane.xlu0 %1623 }
 0x300   : > { %v1595_v37 = vsel %vm523_vm2, %v4271_v34, 0.0  ;;  %v1643_v63 = vsel %vm523_vm2, %v4274_v62, 0.0 }
 0x301   : > { %1596 = vadd.xlane.f32.xlu2 %v1595_v37  ;;  %1644 = vadd.xlane.f32.xlu1 %v1643_v63 }
 0x306   : > { %v1582_v20 = vpop.xlane.xlu0 %1581 }
 0x308   : > { %v4318_v50 = vpop.xlane.xlu1 %1584 }
 0x309   : > { %1608 = vadd.xlane.f32.xlu2 %v1607_v12  ;;  %1560 = vadd.xlane.f32.xlu1 %v1559_v4  ;;  %v1579_v4 = vpop.xlane.xlu2 %1578 }
 0x30e   : > { %v1633_v29 = vpop.xlane.xlu0 %1632 }
 0x30f   : > { %v1673_v45 = vmul.f32 %v1633_v29, %v3368_v51 }
 0x311   : > { %1557 = vadd.xlane.f32.xlu2 %v1556_v19  ;;  %1551 = vadd.xlane.f32.xlu1 %v1550_v7  ;;  %v4327_v56 = vsub.f32 %v4215_v21, %v1673_v45 }
 0x313   : > { %v1737_v43 = vmul.f32 %v4327_v56, %v4327_v56 }
 0x315   : > { %v1823_v46 = vsel %vm523_vm2, %v1737_v43, 0.0  ;;  %v1630_v43 = vpop.xlane.xlu2 %1629 }
 0x33c   : > { %v1636_v30 = vpop.xlane.xlu1 %1635 }
 0x33d   : > { %v1674_v39 = vmul.f32 %v1636_v30, %v3368_v51 }
 0x33f   : > { %v4340_v10 = vsub.f32 %v4222_v24, %v1674_v39 }
 0x341   : > { %v1738_v12 = vmul.f32 %v4340_v10, %v4340_v10 }
 0x343   : > { %v1826_v19 = vsel %vm523_vm2, %v1738_v12, 0.0 }
 0x352   : > { %v1500_v5 = vpop.f32.mrf.mxu1 }
 0x353   : > { %v4324_v58 = vadd.f32 %v4075_v40, %v1500_v5  ;;  %v1656_v5 = vmul.f32 %v1582_v20, %v3368_v51 }
 0x354   : > { %v1588_v12 = vpop.xlane.xlu2 %1587 }
 0x355   : > { %v1598_v57 = vsel %vm523_vm2, %v4324_v58, 0.0 }
 0x356   : > { %1599 = vadd.xlane.f32.xlu2 %v1598_v57 }
 0x35a   : > { %v1503_v22 = vpop.f32.mrf.mxu1 }
 0x35b   : > { %v4337_v28 = vadd.f32 %v4075_v40, %v1503_v22 }
 0x35d   : > { %v1601_v21 = vsel %vm523_vm2, %v4337_v28, 0.0 }
 0x35e   : > { %1602 = vadd.xlane.f32.xlu1 %v1601_v21  ;;  %1824 = vadd.xlane.f32.xlu2 %v1823_v46  ;;  %v1591_v54 = vpop.xlane.xlu0 %1590  ;;  %v4367_v21 = vsub.f32 %v4203_v59, %v1656_v5 }
 0x35f   : > { %v1659_v37 = vmul.f32 %v1591_v54, %v3368_v51  ;;  %v1670_v54 = vmul.f32 %v1624_v1, %v3368_v51  ;;  %v1653_v1 = vmul.f32 %v1573_v61, %v3368_v51 }
 0x361   : > { %v4347_v63 = vsub.f32 %v4244_v17, %v1659_v37  ;;  %v1720_v37 = vmul.f32 %v4367_v21, %v4367_v21  ;;  %v4399_v61 = vsub.f32 %v4179_v35, %v1653_v1  ;;  %v1667_v35 = vmul.f32 %v4306_v23, %v3368_v51 }
 0x363   : > { %v1723_v24 = vmul.f32 %v4347_v63, %v4347_v63 }
 0x365   : > { %v1781_v7 = vsel %vm523_vm2, %v1723_v24, 0.0  ;;  %v4377_v24 = vsub.f32 %v4193_v9, %v1670_v54 }
 0x366   : > { %1827 = vadd.xlane.f32.xlu1 %v1826_v19  ;;  %1782 = vadd.xlane.f32.xlu2 %v1781_v7  ;;  %v1642_v29 = vpop.xlane.xlu0 %1641  ;;  %v1772_v19 = vsel %vm523_vm2, %v1720_v37, 0.0  ;;  %v1672_v7 = vmul.f32 %v1630_v43, %v3368_v51  ;;  %v1717_v37 = vmul.f32 %v4399_v61, %v4399_v61 }
 0x367   : > { %v1676_v45 = vmul.f32 %v1642_v29, %v3368_v51  ;;  %v1734_v9 = vmul.f32 %v4377_v24, %v4377_v24 }
 0x368   : > { %v1594_v17 = vpop.xlane.xlu1 %1593 }
 0x369   : > { %v4358_v57 = vsub.f32 %v4251_v48, %v1676_v45  ;;  %v1660_v30 = vmul.f32 %v1594_v17, %v3368_v51  ;;  %v1658_v45 = vmul.f32 %v1588_v12, %v3368_v51 }
 0x36b   : > { %v1740_v39 = vmul.f32 %v4358_v57, %v4358_v57  ;;  %v4364_v22 = vsub.f32 %v4256_v49, %v1660_v30  ;;  %v4392_v30 = vsub.f32 %v4200_v53, %v1672_v7  ;;  %v4402_v43 = vsub.f32 %v4236_v11, %v1658_v45 }
 0x36d   : > { %v1832_v46 = vsel %vm523_vm2, %v1740_v39, 0.0  ;;  %v1724_v20 = vmul.f32 %v4364_v22, %v4364_v22  ;;  %v1736_v53 = vmul.f32 %v4392_v30, %v4392_v30  ;;  %v1722_v11 = vmul.f32 %v4402_v43, %v4402_v43 }
 0x36e   : > { %1833 = vadd.xlane.f32.xlu2 %v1832_v46 }
 0x36f   : > { %v1784_v48 = vsel %vm523_vm2, %v1724_v20, 0.0  ;;  %v1814_v20 = vsel %vm523_vm2, %v1734_v9, 0.0  ;;  %v1778_v23 = vsel %vm523_vm2, %v1722_v11, 0.0 }
 0x370   : > { %1785 = vadd.xlane.f32.xlu1 %v1784_v48  ;;  %v1639_v48 = vpop.xlane.xlu2 %1638 }
 0x371   : > { %v1675_v54 = vmul.f32 %v1639_v48, %v3368_v51  ;;  %v1657_v48 = vmul.f32 %v4318_v50, %v3368_v51  ;;  %v1666_v50 = vmul.f32 %v4316_v52, %v3368_v51 }
 0x374   : > { %v1645_v49 = vpop.xlane.xlu1 %1644 }
 0x375   : > { %v1677_v59 = vmul.f32 %v1645_v49, %v3368_v51  ;;  %v1820_v49 = vsel %vm523_vm2, %v1736_v53, 0.0 }
 0x376   : > { %1773 = vadd.xlane.f32.xlu2 %v1772_v19  ;;  %v1763_v19 = vsel %vm523_vm2, %v1717_v37, 0.0 }
 0x377   : > { %v4383_v29 = vsub.f32 %v4274_v62, %v1677_v59  ;;  %v4425_v59 = vsub.f32 %v4241_v13, %v1675_v54 }
 0x378   : > { %v1597_v7 = vpop.xlane.xlu2 %1596 }
 0x379   : > { %v1741_v5 = vmul.f32 %v4383_v29, %v4383_v29  ;;  %v1661_v45 = vmul.f32 %v1597_v7, %v3368_v51  ;;  %v1739_v13 = vmul.f32 %v4425_v59, %v4425_v59 }
 0x37a   : > { %v1506_v17 = vpop.f32.mrf.mxu1 }
 0x37b   : > { %v4395_v39 = vadd.f32 %v4075_v40, %v1506_v17  ;;  %v1835_v62 = vsel %vm523_vm2, %v1741_v5, 0.0  ;;  %v1655_v40 = vmul.f32 %v1579_v4, %v3368_v51  ;;  %v4422_v4 = vsub.f32 %v4162_v38, %v1667_v35 }
 0x37c   : > { %1836 = vadd.xlane.f32.xlu1 %v1835_v62  ;;  %v1650_v38 = vmul.f32 %v4304_v60, %v3368_v51  ;;  %v4448_v62 = vsub.f32 %v4271_v34, %v1661_v45  ;;  %v1829_v60 = vsel %vm523_vm2, %v1739_v13, 0.0 }
 0x37d   : > { %v1604_v46 = vsel %vm523_vm2, %v4395_v39, 0.0  ;;  %v4418_v12 = vsub.f32 %v4183_v32, %v1655_v40  ;;  %v1669_v32 = vmul.f32 %v4334_v55, %v3368_v51  ;;  %v1731_v5 = vmul.f32 %v4422_v4, %v4422_v4 }
 0x37e   : > { %1605 = vadd.xlane.f32.xlu0 %v1604_v46  ;;  %1815 = vadd.xlane.f32.xlu2 %v1814_v20  ;;  %v4445_v55 = vsub.f32 %v4146_v2, %v1650_v38  ;;  %v1652_v20 = vmul.f32 %v4320_v8, %v3368_v51  ;;  %v1725_v2 = vmul.f32 %v4448_v62, %v4448_v62 }
 0x37f   : > { %v1719_v1 = vmul.f32 %v4418_v12, %v4418_v12  ;;  %v4441_v9 = vsub.f32 %v4156_v36, %v1669_v32  ;;  %v1805_v46 = vsel %vm523_vm2, %v1731_v5, 0.0  ;;  %v4467_v8 = vsub.f32 %v4208_v15, %v1657_v48 }
 0x380   : > { %v1714_v34 = vmul.f32 %v4445_v55, %v4445_v55  ;;  %v4463_v40 = vsub.f32 %v4133_v18, %v1652_v20  ;;  %v1787_v35 = vsel %vm523_vm2, %v1725_v2, 0.0  ;;  %v1671_v18 = vmul.f32 %v4314_v41, %v3368_v51  ;;  %v1609_v20 = vpop.xlane.xlu2 %1608 }
 0x381   : > { %v1769_v17 = vsel %vm523_vm2, %v1719_v1, 0.0  ;;  %v1733_v36 = vmul.f32 %v4441_v9, %v4441_v9  ;;  %v1721_v37 = vmul.f32 %v4467_v8, %v4467_v8  ;;  %v4480_v15 = vsub.f32 %v4081_v0, %v1666_v50 }
 0x382   : > { %v1754_v54 = vsel %vm523_vm2, %v1714_v34, 0.0  ;;  %v1716_v11 = vmul.f32 %v4463_v40, %v4463_v40  ;;  %v1654_v32 = vmul.f32 %v4312_v25, %v3368_v51  ;;  %v1668_v25 = vmul.f32 %v4310_v31, %v3368_v51 }
 0x383   : > { %v1811_v53 = vsel %vm523_vm2, %v1733_v36, 0.0  ;;  %v1775_v52 = vsel %vm523_vm2, %v1721_v37, 0.0  ;;  %v1730_v41 = vmul.f32 %v4480_v15, %v4480_v15  ;;  %v1665_v48 = vmul.f32 %v1609_v20, %v3368_v51 }
 0x384   : > { %1821 = vadd.xlane.f32.xlu1 %v1820_v49  ;;  %v1760_v49 = vsel %vm523_vm2, %v1716_v11, 0.0  ;;  %v4499_v38 = vsub.f32 %v4170_v33, %v1654_v32 }
 0x385   : > { %v4525_v2 = vsub.f32 %v4282_v27, %v1665_v48 }
 0x386   : > { %1779 = vadd.xlane.f32.xlu0 %v1778_v23  ;;  %1764 = vadd.xlane.f32.xlu2 %v1763_v19  ;;  %v1561_v23 = vpop.xlane.xlu1 %1560  ;;  %v4484_v19 = vsub.f32 %v4188_v6, %v1671_v18  ;;  %v1802_v6 = vsel %vm523_vm2, %v1730_v41, 0.0  ;;  %v1718_v5 = vmul.f32 %v4499_v38, %v4499_v38 }
 0x387   : > { %v1649_v7 = vmul.f32 %v1561_v23, %v3368_v51  ;;  %5378 = vst [vmem:[#allocation6_spill] sm:$0xff] %v4525_v2 }
 0x388   : > { %v1735_v0 = vmul.f32 %v4484_v19, %v4484_v19  ;;  %v1766_v33 = vsel %vm523_vm2, %v1718_v5, 0.0  ;;  %v1558_v34 = vpop.xlane.xlu2 %1557 }
 0x389   : > { %v4495_v1 = vsub.f32 %v4286_v16, %v1649_v7 }
 0x38a   : > { %v1817_v45 = vsel %vm523_vm2, %v1735_v0, 0.0 }
 0x38b   : > { %5377 = vst [vmem:[#allocation5_spill] sm:$0xff] %v4495_v1  ;;  %v1713_v13 = vmul.f32 %v4495_v1, %v4495_v1 }
 0x38c   : > { %1770 = vadd.xlane.f32.xlu1 %v1769_v17  ;;  %v4510_v17 = vsub.f32 %v4126_v44, %v1668_v25 }
 0x38d   : > { %v1751_v16 = vsel %vm523_vm2, %v1713_v13, 0.0 }
 0x38e   : > { %1830 = vadd.xlane.f32.xlu0 %v1829_v60  ;;  %1806 = vadd.xlane.f32.xlu2 %v1805_v46  ;;  %v1651_v60 = vmul.f32 %v4308_v47, %v3368_v51  ;;  %v1732_v46 = vmul.f32 %v4510_v17, %v4510_v17  ;;  %v1552_v50 = vpop.xlane.xlu1 %1551 }
 0x38f   : > { %v1646_v41 = vmul.f32 %v1552_v50, %v3368_v51 }
 0x390   : > { %v4518_v31 = vsub.f32 %v4108_v26, %v1651_v60  ;;  %v1808_v36 = vsel %vm523_vm2, %v1732_v46, 0.0  ;;  %v1729_v26 = vmul.f32 %v4525_v2, %v4525_v2 }
 0x392   : > { %v1715_v44 = vmul.f32 %v4518_v31, %v4518_v31 }
 0x394   : > { %1812 = vadd.xlane.f32.xlu1 %v1811_v53  ;;  %v1757_v47 = vsel %vm523_vm2, %v1715_v44, 0.0  ;;  %v1648_v53 = vmul.f32 %v1558_v34, %v3368_v51 }
 0x396   : > { %1788 = vadd.xlane.f32.xlu0 %v1787_v35  ;;  %1755 = vadd.xlane.f32.xlu2 %v1754_v54  ;;  %v4532_v35 = vsub.f32 %v4294_v3, %v1648_v53  ;;  %v1799_v54 = vsel %vm523_vm2, %v1729_v26, 0.0 }
 0x398   : > { %5379 = vst [vmem:[#allocation7_spill] sm:$0xff] %v4532_v35  ;;  %v1712_v27 = vmul.f32 %v4532_v35, %v4532_v35 }
 0x39c   : > { %1761 = vadd.xlane.f32.xlu1 %v1760_v49  ;;  %v1748_v49 = vsel %vm523_vm2, %v1712_v27, 0.0 }
 0x39e   : > { %1776 = vadd.xlane.f32.xlu0 %v1775_v52 }
 0x3a4   : > { %1803 = vadd.xlane.f32.xlu1 %v1802_v6 }
 0x3a6   : > { %1818 = vadd.xlane.f32.xlu0 %v1817_v45  ;;  %v4554_v45 = vsub.f32 %v4298_v42, %v1646_v41 }
 0x3a8   : > { %5382 = vst [vmem:[#allocation10_spill] sm:$0xff] %v4554_v45 }
 0x3ac   : > { %1752 = vadd.xlane.f32.xlu1 %v1751_v16 }
 0x3ae   : > { %1767 = vadd.xlane.f32.xlu0 %v1766_v33  ;;  %v1710_v33 = vmul.f32 %v4554_v45, %v4554_v45 }
 0x3b0   : > { %v1742_v42 = vsel %vm523_vm2, %v1710_v33, 0.0 }
 0x3b6   : > { %1809 = vadd.xlane.f32.xlu0 %v1808_v36 }
 0x3be   : > { %1758 = vadd.xlane.f32.xlu0 %v1757_v47 }
 0x3c6   : > { %1800 = vadd.xlane.f32.xlu0 %v1799_v54 }
 0x3c9   : > { %v1600_v11 = vpop.xlane.xlu2 %1599 }
 0x3ca   : > { %v1662_v18 = vmul.f32 %v1600_v11, %v3368_v51  ;;  %v1555_v11 = vpop.xlane.xlu0 %1554 }
 0x3cc   : > { %v4539_v37 = vsub.f32 %v4324_v58, %v1662_v18 }
 0x3ce   : > { %5380 = vst [vmem:[#allocation8_spill] sm:$0xff] %v4539_v37  ;;  %1749 = vadd.xlane.f32.xlu0 %v1748_v49  ;;  %v1726_v3 = vmul.f32 %v4539_v37, %v4539_v37 }
 0x3d0   : > { %v1790_v58 = vsel %vm523_vm2, %v1726_v3, 0.0 }
 0x3d1   : > { %v1603_v23 = vpop.xlane.xlu1 %1602  ;;  %v1825_v52 = vpop.xlane.xlu2 %1824 }
 0x3d2   : > { %v1663_v7 = vmul.f32 %v1603_v23, %v3368_v51  ;;  %v1865_v0 = vmul.f32 %v1825_v52, %v3368_v51 }
 0x3d4   : > { %v4547_v32 = vsub.f32 %v4337_v28, %v1663_v7  ;;  %v4557_v25 = vadd.f32 1e-05, %v1865_v0  ;;  %v1647_v7 = vmul.f32 %v1555_v11, %v3368_v51 }
 0x3d6   : > { %5381 = vst [vmem:[#allocation9_spill] sm:$0xff] %v4547_v32  ;;  %1791 = vadd.xlane.f32.xlu0 %v1790_v58  ;;  %v1727_v6 = vmul.f32 %v4547_v32, %v4547_v32  ;;  %2889 = vrsqrt.f32 %v4557_v25  ;;  %vm2178_vm11 = vweird.f32 %v4557_v25 }
 0x3d8   : > { %v1793_v13 = vsel %vm523_vm2, %v1727_v6, 0.0 }
 0x3d9   : > { %1794 = vadd.xlane.f32.xlu1 %v1793_v13  ;;  %v1828_v5 = vpop.xlane.xlu1 %1827  ;;  %v1783_v16 = vpop.xlane.xlu2 %1782 }
 0x3da   : > { %v1866_v28 = vmul.f32 %v1828_v5, %v3368_v51  ;;  %v1851_v60 = vmul.f32 %v1783_v16, %v3368_v51 }
 0x3dc   : > { %v4564_v46 = vadd.f32 1e-05, %v1866_v28  ;;  %v4567_v20 = vadd.f32 1e-05, %v1851_v60  ;;  %v4571_v44 = vpop.eup %2889  ;;  %v4606_v60 = vsub.f32 %v4263_v14, %v1647_v7 }
 0x3dd   : > { %v2173_v26 = vmul.f32 %v4571_v44, %v4557_v25  ;;  %vm2179_vm10 = vweird.f32 %v4571_v44 }
 0x3de   : > { %2891 = vrsqrt.f32 %v4564_v46  ;;  %5383 = vst [vmem:[#allocation11_spill] sm:$0xff] %v4606_v60  ;;  %vm4632_vm12 = vmor %vm2178_vm11, %vm2179_vm10  ;;  %vm2188_vm13 = vweird.f32 %v4564_v46  ;;  %vm2038_vm4 = vweird.f32 %v4567_v20 }
 0x3df   : > { %2893 = vrsqrt.f32 %v4567_v20  ;;  %v2174_v18 = vmul.f32 %v4571_v44, %v2173_v26 }
 0x3e1   : > { %1743 = vadd.xlane.f32.xlu1 %v1742_v42  ;;  %v1834_v36 = vpop.xlane.xlu2 %1833  ;;  %v2175_v58 = vmul.f32 0.5, %v2174_v18 }
 0x3e2   : > { %v1868_v48 = vmul.f32 %v1834_v36, %v3368_v51 }
 0x3e3   : > { %v1786_v47 = vpop.xlane.xlu1 %1785 }
 0x3e4   : > { %v4573_v34 = vadd.f32 1e-05, %v1868_v48  ;;  %v1852_v53 = vmul.f32 %v1786_v47, %v3368_v51  ;;  %v4582_v50 = vpop.eup %2891  ;;  %v2176_v48 = vsub.f32 1.5, %v2175_v58 }
 0x3e5   : > { %v4586_v23 = vpop.eup %2893  ;;  %v2183_v52 = vmul.f32 %v4582_v50, %v4564_v46  ;;  %vm2189_vm14 = vweird.f32 %v4582_v50 }
 0x3e6   : > { %2895 = vrsqrt.f32 %v4573_v34  ;;  %v4580_v54 = vadd.f32 1e-05, %v1852_v53  ;;  %v2033_v6 = vmul.f32 %v4586_v23, %v4567_v20  ;;  %v2177_v7 = vmul.f32 %v4571_v44, %v2176_v48  ;;  %vm4666_vm1 = vmor %vm2188_vm13, %vm2189_vm14 }
 0x3e7   : > { %v2184_v13 = vmul.f32 %v4582_v50, %v2183_v52  ;;  %v1711_v52 = vmul.f32 %v4606_v60, %v4606_v60  ;;  %vm2039_vm0 = vweird.f32 %v4586_v23  ;;  %vm2208_vm3 = vweird.f32 %v4573_v34 }
 0x3e8   : > { %2897 = vrsqrt.f32 %v4580_v54  ;;  %v2034_v47 = vmul.f32 %v4586_v23, %v2033_v6  ;;  %vm4692_vm6 = vmor %vm2038_vm4, %vm2039_vm0  ;;  %vm2048_vm8 = vweird.f32 %v4580_v54 }
 0x3e9   : > { %v1774_v27 = vpop.xlane.xlu2 %1773  ;;  %v2185_v11 = vmul.f32 0.5, %v2184_v13 }
 0x3ea   : > { %v1848_v49 = vmul.f32 %v1774_v27, %v3368_v51 }
 0x3eb   : > { %v2186_v13 = vsub.f32 1.5, %v2185_v11 }
 0x3ec   : > { %v4591_v3 = vpop.eup %2895  ;;  %v4596_v0 = vadd.f32 1e-05, %v1848_v49 }
 0x3ed   : > { %v2203_v41 = vmul.f32 %v4591_v3, %v4573_v34  ;;  %vm2209_vm15 = vweird.f32 %v4591_v3 }
 0x3ee   : > { %v4603_v33 = vpop.eup %2897  ;;  %2899 = vrsqrt.f32 %v4596_v0  ;;  %vm4678_vm5 = vmor %vm2208_vm3, %vm2209_vm15  ;;  %vm2008_vm13 = vweird.f32 %v4596_v0 }
 0x3ef   : > { %v1837_v5 = vpop.xlane.xlu1 %1836  ;;  %v2204_v16 = vmul.f32 %v4591_v3, %v2203_v41  ;;  %v2043_v27 = vmul.f32 %v4603_v33, %v4580_v54  ;;  %v2035_v41 = vmul.f32 0.5, %v2034_v47  ;;  %vm2049_vm7 = vweird.f32 %v4603_v33 }
 0x3f0   : > { %v1869_v28 = vmul.f32 %v1837_v5, %v3368_v51  ;;  %vm4728_vm11 = vmor %vm2048_vm8, %vm2049_vm7 }
 0x3f1   : > { %v1606_v42 = vpop.xlane.xlu0 %1605  ;;  %v1816_v36 = vpop.xlane.xlu2 %1815  ;;  %v2205_v18 = vmul.f32 0.5, %v2204_v16  ;;  %v2044_v5 = vmul.f32 %v4603_v33, %v2043_v27  ;;  %v2181_v27 = vsel %vm4632_vm12, %v4571_v44, %v2177_v7  ;;  %v4658_v7 = vld [vmem:[%s3127_s8 + $0x4] ss:$0 sm:$0xff] }
 0x3f2   : > { %v4610_v53 = vadd.f32 1e-05, %v1869_v28  ;;  %v1664_v26 = vmul.f32 %v1606_v42, %v3368_v51  ;;  %v1862_v49 = vmul.f32 %v1816_v36, %v3368_v51 }
 0x3f3   : > { %v2206_v16 = vsub.f32 1.5, %v2205_v18  ;;  %v2036_v18 = vsub.f32 1.5, %v2035_v41  ;;  %v2045_v60 = vmul.f32 0.5, %v2044_v5 }
 0x3f4   : > { %2901 = vrsqrt.f32 %v4610_v53  ;;  %v4617_v14 = vsub.f32 %v4395_v39, %v1664_v26  ;;  %v4626_v6 = vpop.eup %2899  ;;  %v4637_v48 = vadd.f32 1e-05, %v1862_v49  ;;  %v1745_v26 = vsel %vm523_vm2, %v1711_v52, 0.0 }
 0x3f5   : > { %v2187_v49 = vmul.f32 %v4582_v50, %v2186_v13  ;;  %v2207_v45 = vmul.f32 %v4591_v3, %v2206_v16  ;;  %v2249_v13 = vmul.f32 %v2181_v27, %v4327_v56  ;;  %v2037_v16 = vmul.f32 %v4586_v23, %v2036_v18  ;;  %v4711_v56 = vld [vmem:[%s3127_s8 + $0x5] ss:$0 sm:$0xff] }
 0x3f6   : > { %5384 = vst [vmem:[#allocation12_spill] sm:$0xff] %v4617_v14  ;;  %v1728_v58 = vmul.f32 %v4617_v14, %v4617_v14  ;;  %2903 = vrsqrt.f32 %v4637_v48  ;;  %v2046_v27 = vsub.f32 1.5, %v2045_v60  ;;  %vm2218_vm10 = vweird.f32 %v4610_v53 }
 0x3f7   : > { %v1822_v39 = vpop.xlane.xlu1 %1821  ;;  %v2191_v36 = vsel %vm4666_vm1, %v4582_v50, %v2187_v49  ;;  %v2211_v34 = vsel %vm4678_vm5, %v4591_v3, %v2207_v45  ;;  %v2282_v60 = vmul.f32 %v4658_v7, %v2249_v13  ;;  %v2041_v45 = vsel %vm4692_vm6, %v4586_v23, %v2037_v16 }
 0x3f8   : > { %v1864_v28 = vmul.f32 %v1822_v39, %v3368_v51  ;;  %v1796_v42 = vsel %vm523_vm2, %v1728_v58, 0.0  ;;  %v2003_v58 = vmul.f32 %v4626_v6, %v4596_v0  ;;  %v2252_v5 = vmul.f32 %v2211_v34, %v4358_v57 }
 0x3f9   : > { %1797 = vadd.xlane.f32.xlu2 %v1796_v42  ;;  %v1780_v47 = vpop.xlane.xlu0 %1779  ;;  %v1765_v25 = vpop.xlane.xlu2 %1764  ;;  %v2047_v23 = vmul.f32 %v4603_v33, %v2046_v27  ;;  %v2235_v57 = vmul.f32 %v2041_v45, %v4347_v63  ;;  %vm2009_vm14 = vweird.f32 %v4626_v6  ;;  %vm2148_vm1 = vweird.f32 %v4637_v48 }
 0x3fa   : > { %v4640_v11 = vpop.eup %2901  ;;  %v4647_v39 = vadd.f32 1e-05, %v1864_v28  ;;  %v1850_v52 = vmul.f32 %v1780_v47, %v3368_v51  ;;  %v1845_v44 = vmul.f32 %v1765_v25, %v3368_v51  ;;  %v2004_v28 = vmul.f32 %v4626_v6, %v2003_v58  ;;  %vm4784_vm15 = vmor %vm2008_vm13, %vm2009_vm14 }
 0x3fb   : > { %v2213_v42 = vmul.f32 %v4640_v11, %v4610_v53  ;;  %vm2219_vm9 = vweird.f32 %v4640_v11  ;;  %v2285_v53 = vmul.f32 %v4658_v7, %v2252_v5 }
 0x3fc   : > { %2905 = vrsqrt.f32 %v4647_v39  ;;  %v4682_v47 = vadd.f32 1e-05, %v1850_v52  ;;  %v4687_v18 = vadd.f32 1e-05, %v1845_v44  ;;  %v2005_v3 = vmul.f32 0.5, %v2004_v28  ;;  %vm4742_vm12 = vmor %vm2218_vm10, %vm2219_vm9 }
 0x3fd   : > { %v2214_v41 = vmul.f32 %v4640_v11, %v2213_v42  ;;  %v2250_v44 = vmul.f32 %v2191_v36, %v4340_v10  ;;  %vm2168_vm5 = vweird.f32 %v4647_v39 }
 0x3fe   : > { %2907 = vrsqrt.f32 %v4682_v47  ;;  %v2006_v36 = vsub.f32 1.5, %v2005_v3  ;;  %v2268_v3 = vmul.f32 %v4658_v7, %v2235_v57  ;;  %vm2028_vm7 = vweird.f32 %v4682_v47 }
 0x3ff   : > { %v2215_v46 = vmul.f32 0.5, %v2214_v41  ;;  %v1771_v25 = vpop.xlane.xlu1 %1770  ;;  %v4702_v41 = vpop.eup %2903  ;;  %2909 = vrsqrt.f32 %v4687_v18  ;;  %vm1978_vm14 = vweird.f32 %v4687_v18 }
 0x400   : > { %v1847_v58 = vmul.f32 %v1771_v25, %v3368_v51  ;;  %v2143_v54 = vmul.f32 %v4702_v41, %v4637_v48  ;;  %vm2149_vm0 = vweird.f32 %v4702_v41 }
 0x401   : > { %v2216_v50 = vsub.f32 1.5, %v2215_v46  ;;  %1746 = vadd.xlane.f32.xlu2 %v1745_v26  ;;  %v1831_v49 = vpop.xlane.xlu0 %1830  ;;  %v1807_v42 = vpop.xlane.xlu2 %1806  ;;  %v2283_v46 = vmul.f32 %v4658_v7, %v2250_v44  ;;  %v2007_v44 = vmul.f32 %v4626_v6, %v2006_v36  ;;  %vm4878_vm10 = vmor %vm2148_vm1, %vm2149_vm0 }
 0x402   : > { %v1867_v52 = vmul.f32 %v1831_v49, %v3368_v51  ;;  %v1859_v26 = vmul.f32 %v1807_v42, %v3368_v51  ;;  %v4708_v13 = vpop.eup %2905  ;;  %v4715_v16 = vadd.f32 1e-05, %v1847_v58  ;;  %v2051_v58 = vsel %vm4728_vm11, %v4603_v33, %v2047_v23 }
 0x403   : > { %v2217_v28 = vmul.f32 %v4640_v11, %v2216_v50  ;;  %v2163_v27 = vmul.f32 %v4708_v13, %v4647_v39  ;;  %v4749_v49 = vadd.f32 %v4711_v56, %v2282_v60  ;;  %v2144_v5 = vmul.f32 %v4702_v41, %v2143_v54 }
 0x404   : > { %v4717_v10 = vadd.f32 1e-05, %v1867_v52  ;;  %v4736_v63 = vadd.f32 1e-05, %v1859_v26  ;;  %v4751_v42 = vpop.eup %2907  ;;  %v4765_v26 = vadd.f32 %v4711_v56, %v2283_v46  ;;  %v4770_v23 = vadd.f32 %v4711_v56, %v2285_v53 }
 0x405   : > { %v2221_v45 = vsel %vm4742_vm12, %v4640_v11, %v2217_v28  ;;  %v4759_v52 = vpop.eup %2909  ;;  %v2164_v11 = vmul.f32 %v4708_v13, %v2163_v27  ;;  %v2236_v28 = vmul.f32 %v2051_v58, %v4364_v22  ;;  %v2023_v36 = vmul.f32 %v4751_v42, %v4682_v47 }
 0x406   : > { %2911 = vrsqrt.f32 %v4717_v10  ;;  %v2253_v46 = vmul.f32 %v2221_v45, %v4383_v29  ;;  %v1973_v22 = vmul.f32 %v4759_v52, %v4687_v18  ;;  %v2011_v29 = vsel %vm4784_vm15, %v4626_v6, %v2007_v44 }
 0x407   : > { %v1813_v34 = vpop.xlane.xlu1 %1812  ;;  %2913 = vrsqrt.f32 %v4715_v16  ;;  %v2350_v37 = vmax.f32 %v4770_v23, 0.0  ;;  %v2269_v14 = vmul.f32 %v4658_v7, %v2236_v28  ;;  %v2165_v6 = vmul.f32 0.5, %v2164_v11 }
 0x408   : > { %v1861_v50 = vmul.f32 %v1813_v34, %v3368_v51  ;;  %2915 = vrsqrt.f32 %v4736_v63  ;;  %v2024_v44 = vmul.f32 %v4751_v42, %v2023_v36  ;;  %v1974_v54 = vmul.f32 %v4759_v52, %v1973_v22 }
 0x409   : > { %v1789_v33 = vpop.xlane.xlu0 %1788  ;;  %v1756_v0 = vpop.xlane.xlu2 %1755  ;;  %v4815_v32 = vmul.f32 %v2011_v29, %v4367_v21  ;;  %vm2169_vm3 = vweird.f32 %v4708_v13  ;;  %vm2198_vm6 = vweird.f32 %v4717_v10  ;;  %vm2029_vm9 = vweird.f32 %v4751_v42 }
 0x40a   : > { %v1853_v60 = vmul.f32 %v1789_v33, %v3368_v51  ;;  %v4777_v25 = vadd.f32 1e-05, %v1861_v50  ;;  %v4801_v50 = vadd.f32 %v4711_v56, %v2268_v3  ;;  %v2145_v33 = vmul.f32 0.5, %v2144_v5  ;;  %vm4900_vm13 = vmor %vm2168_vm5, %vm2169_vm3 }
 0x40b   : > { %v2286_v3 = vmul.f32 %v4658_v7, %v2253_v46  ;;  %v1842_v5 = vmul.f32 %v1756_v0, %v3368_v51  ;;  %v2166_v0 = vsub.f32 1.5, %v2165_v6  ;;  %v1975_v6 = vmul.f32 0.5, %v1974_v54  ;;  %vm4926_vm3 = vmor %vm2028_vm7, %vm2029_vm9 }
 0x40c   : > { %v4773_v57 = vpop.eup %2911  ;;  %v4779_v34 = vadd.f32 1e-05, %v1853_v60  ;;  %v2146_v46 = vsub.f32 1.5, %v2145_v33  ;;  %v4837_v33 = vadd.f32 %v4711_v56, %v2269_v14  ;;  %vm1979_vm11 = vweird.f32 %v4759_v52 }
 0x40d   : > { %v2193_v27 = vmul.f32 %v4773_v57, %v4717_v10  ;;  %v4793_v58 = vpop.eup %2913  ;;  %v2319_v28 = vadd.f32 %v4711_v56, %v2286_v3  ;;  %vm2199_vm4 = vweird.f32 %v4773_v57  ;;  %vm2118_vm5 = vweird.f32 %v4736_v63 }
 0x40e   : > { %2917 = vrsqrt.f32 %v4779_v34  ;;  %v4803_v45 = vpop.eup %2915  ;;  %v1993_v11 = vmul.f32 %v4793_v58, %v4715_v16  ;;  %vm4845_vm8 = vmor %vm2198_vm6, %vm2199_vm4  ;;  %vm2058_vm15 = vweird.f32 %v4779_v34  ;;  %vm1999_vm0 = vweird.f32 %v4793_v58 }
 0x40f   : > { %v2194_v60 = vmul.f32 %v4773_v57, %v2193_v27  ;;  %v1762_v53 = vpop.xlane.xlu1 %1761  ;;  %2919 = vrsqrt.f32 %v4777_v25  ;;  %v2113_v23 = vmul.f32 %v4803_v45, %v4736_v63  ;;  %v2351_v35 = vmax.f32 %v2319_v28, 0.0 }
 0x410   : > { %v1844_v21 = vmul.f32 %v1762_v53, %v3368_v51  ;;  %vm1998_vm4 = vweird.f32 %v4715_v16  ;;  %vm2119_vm6 = vweird.f32 %v4803_v45  ;;  %vm2138_vm7 = vweird.f32 %v4777_v25 }
 0x411   : > { %v2195_v20 = vmul.f32 0.5, %v2194_v60  ;;  %v1777_v27 = vpop.xlane.xlu0 %1776  ;;  %v2025_v60 = vmul.f32 0.5, %v2024_v44  ;;  %v1994_v44 = vmul.f32 %v4793_v58, %v1993_v11  ;;  %v2114_v10 = vmul.f32 %v4803_v45, %v2113_v23  ;;  %2728 = vmatpush.xpose.msk.msrb.mxu3 %vm523_vm2, %v2351_v35 }
 0x412   : > { %v1849_v36 = vmul.f32 %v1777_v27, %v3368_v51  ;;  %v4850_v27 = vadd.f32 1e-05, %v1842_v5  ;;  %v4857_v28 = vadd.f32 1e-05, %v1844_v21  ;;  %v4864_v23 = vmul.f32 %v4708_v13, %v2166_v0 }
 0x413   : > { %v2196_v22 = vsub.f32 1.5, %v2195_v20  ;;  %v2026_v5 = vsub.f32 1.5, %v2025_v60  ;;  %v2115_v3 = vmul.f32 0.5, %v2114_v10  ;;  %v1976_v60 = vsub.f32 1.5, %v1975_v6 }
 0x414   : > { %v4827_v29 = vpop.eup %2917  ;;  %v4830_v2 = vadd.f32 1e-05, %v1849_v36  ;;  %v4861_v36 = vmul.f32 %v4702_v41, %v2146_v46 }
 0x415   : > { %v2197_v1 = vmul.f32 %v4773_v57, %v2196_v22  ;;  %v2053_v20 = vmul.f32 %v4827_v29, %v4779_v34  ;;  %v4839_v53 = vpop.eup %2919  ;;  %2729 = vmatpush.xpose.msk.msrb.mxu3 %vm523_vm2, %v2350_v37  ;;  %vm2059_vm12 = vweird.f32 %v4827_v29  ;;  %v2171_v34 = vsel %vm4900_vm13, %v4708_v13, %v4864_v23  ;;  %vm5007_vm13 = vmor %vm1998_vm4, %vm1999_vm0 }
 0x416   : > { %2921 = vrsqrt.f32 %v4830_v2  ;;  %v2133_v35 = vmul.f32 %v4839_v53, %v4777_v25  ;;  %v2151_v37 = vsel %vm4878_vm10, %v4702_v41, %v4861_v36  ;;  %vm4912_vm1 = vmor %vm2058_vm15, %vm2059_vm12  ;;  %vm2018_vm9 = vweird.f32 %v4830_v2 }
 0x417   : > { %v2201_v14 = vsel %vm4845_vm8, %v4773_v57, %v2197_v1  ;;  %v2054_v54 = vmul.f32 %v4827_v29, %v2053_v20  ;;  %v1804_v11 = vpop.xlane.xlu1 %1803  ;;  %v1995_v20 = vmul.f32 0.5, %v1994_v44  ;;  %2923 = vrsqrt.f32 %v4850_v27  ;;  %vm4982_vm12 = vmor %vm1978_vm14, %vm1979_vm11 }
 0x418   : > { %v1858_v57 = vmul.f32 %v1804_v11, %v3368_v51  ;;  %v2251_v21 = vmul.f32 %v2201_v14, %v4425_v59  ;;  %2925 = vrsqrt.f32 %v4857_v28  ;;  %v2027_v44 = vmul.f32 %v4751_v42, %v2026_v5  ;;  %vm5025_vm15 = vmor %vm2118_vm5, %vm2119_vm6 }
 0x419   : > { %v2055_v1 = vmul.f32 0.5, %v2054_v54  ;;  %v1819_v22 = vpop.xlane.xlu0 %1818  ;;  %v2134_v54 = vmul.f32 %v4839_v53, %v2133_v35  ;;  %vm2139_vm14 = vweird.f32 %v4839_v53  ;;  %v5420_v25 = vmax.f32 %v4749_v49, 0.0 }
 0x41a   : > { %v1863_v46 = vmul.f32 %v1819_v22, %v3368_v51  ;;  %v4890_v48 = vadd.f32 1e-05, %v1858_v57  ;;  %v2284_v5 = vmul.f32 %v4658_v7, %v2251_v21  ;;  %v2116_v57 = vsub.f32 1.5, %v2115_v3  ;;  %vm5054_vm0 = vmor %vm2138_vm7, %vm2139_vm14 }
 0x41b   : > { %v2056_v59 = vsub.f32 1.5, %v2055_v1  ;;  %v1996_v1 = vsub.f32 1.5, %v1995_v20  ;;  %v4931_v21 = vmul.f32 %v4759_v52, %v1976_v60  ;;  %v2031_v47 = vsel %vm4926_vm3, %v4751_v42, %v2027_v44 }
 0x41c   : > { %v4892_v10 = vadd.f32 1e-05, %v1863_v46  ;;  %v4894_v14 = vpop.eup %2921  ;;  %v4956_v44 = vmul.f32 %v4803_v45, %v2116_v57  ;;  %vm1968_vm6 = vweird.f32 %v4857_v28  ;;  %vm2108_vm7 = vweird.f32 %v4890_v48 }
 0x41d   : > { %v2057_v11 = vmul.f32 %v4827_v29, %v2056_v59  ;;  %v2013_v22 = vmul.f32 %v4894_v14, %v4830_v2  ;;  %v4938_v23 = vpop.eup %2923  ;;  %v2317_v59 = vadd.f32 %v4711_v56, %v2284_v5  ;;  %v4953_v42 = vmul.f32 %v4793_v58, %v1996_v1 }
 0x41e   : > { %2927 = vrsqrt.f32 %v4892_v10  ;;  %v4947_v46 = vpop.eup %2925  ;;  %vm2019_vm8 = vweird.f32 %v4894_v14  ;;  %v2121_v63 = vsel %vm5025_vm15, %v4803_v45, %v4956_v44  ;;  %vm2158_vm3 = vweird.f32 %v4892_v10 }
 0x41f   : > { %v2061_v20 = vsel %vm4912_vm1, %v4827_v29, %v2057_v11  ;;  %v1753_v13 = vpop.xlane.xlu1 %1752  ;;  %v2014_v3 = vmul.f32 %v4894_v14, %v2013_v22  ;;  %2929 = vrsqrt.f32 %v4890_v48  ;;  %v2135_v29 = vmul.f32 0.5, %v2134_v54  ;;  %vm4998_vm11 = vmor %vm2018_vm9, %vm2019_vm8 }
 0x420   : > { %v1841_v60 = vmul.f32 %v1753_v13, %v3368_v51  ;;  %v2237_v11 = vmul.f32 %v2061_v20, %v4448_v62  ;;  %v1943_v54 = vmul.f32 %v4938_v23, %v4850_v27  ;;  %v2349_v35 = vmax.f32 %v2317_v59, 0.0 }
 0x421   : > { %v1768_v6 = vpop.xlane.xlu0 %1767  ;;  %v2015_v39 = vmul.f32 0.5, %v2014_v3  ;;  %v2248_v13 = vmul.f32 %v2171_v34, %v4392_v30  ;;  %v1963_v62 = vmul.f32 %v4947_v46, %v4857_v28  ;;  %v2136_v3 = vsub.f32 1.5, %v2135_v29 }
 0x422   : > { %v1846_v22 = vmul.f32 %v1768_v6, %v3368_v51  ;;  %v2270_v5 = vmul.f32 %v4658_v7, %v2237_v11  ;;  %v4972_v6 = vadd.f32 1e-05, %v1841_v60  ;;  %2730 = vmatpush.xpose.msk.msrb.mxu3 %vm523_vm2, %v2349_v35  ;;  %v2234_v60 = vmul.f32 %v2031_v47, %v4402_v43 }
 0x423   : > { %v2016_v1 = vsub.f32 1.5, %v2015_v39  ;;  %v1981_v11 = vsel %vm4982_vm12, %v4759_v52, %v4931_v21  ;;  %v1944_v18 = vmul.f32 %v4938_v23, %v1943_v54  ;;  %v2281_v35 = vmul.f32 %v4658_v7, %v2248_v13 }
 0x424   : > { %v4967_v57 = vadd.f32 1e-05, %v1846_v22  ;;  %v4969_v20 = vpop.eup %2927  ;;  %v2303_v59 = vadd.f32 %v4711_v56, %v2270_v5  ;;  %v1964_v47 = vmul.f32 %v4947_v46, %v1963_v62  ;;  %v2001_v13 = vsel %vm5007_vm13, %v4793_v58, %v4953_v42 }
 0x425   : > { %v4976_v30 = vpop.eup %2929  ;;  %v2017_v29 = vmul.f32 %v4894_v14, %v2016_v1  ;;  %v2153_v2 = vmul.f32 %v4969_v20, %v4892_v10  ;;  %v2137_v62 = vmul.f32 %v4839_v53, %v2136_v3  ;;  %v5417_v1 = vmax.f32 %v4765_v26, 0.0 }
 0x426   : > { %2931 = vrsqrt.f32 %v4967_v57  ;;  %v2335_v22 = vmax.f32 %v2303_v59, 0.0  ;;  %v2267_v59 = vmul.f32 %v4658_v7, %v2234_v60  ;;  %v2314_v26 = vadd.f32 %v4711_v56, %v2281_v35 }
 0x427   : > { %v2021_v54 = vsel %vm4998_vm11, %v4894_v14, %v2017_v29  ;;  %v2154_v5 = vmul.f32 %v4969_v20, %v2153_v2  ;;  %v2103_v14 = vmul.f32 %v4976_v30, %v4890_v48  ;;  %2933 = vrsqrt.f32 %v4972_v6  ;;  %2731 = vmatpush.xpose.msk.msrb.mxu3 %vm523_vm2, %v5417_v1 }
 0x428   : > { %2711 = vmatpush.xpose.msk.msrb.mxu2 %vm523_vm2, %v2335_v22  ;;  %v5043_v29 = vmul.f32 0.5, %v1944_v18  ;;  %v2334_v2 = vmax.f32 %v4837_v33, 0.0  ;;  %v2233_v39 = vmul.f32 %v2021_v54, %v4467_v8  ;;  %vm2159_vm1 = vweird.f32 %v4969_v20 }
 0x429   : > { %v1810_v58 = vpop.xlane.xlu0 %1809  ;;  %v2155_v42 = vmul.f32 0.5, %v2154_v5  ;;  %v1965_v5 = vmul.f32 0.5, %v1964_v47  ;;  %v2141_v8 = vsel %vm5054_vm0, %v4839_v53, %v2137_v62  ;;  %v2104_v33 = vmul.f32 %v4976_v30, %v2103_v14  ;;  %vm2160_vm5 = vmor %vm2158_vm3, %vm2159_vm1 }
 0x42a   : > { %v1860_v3 = vmul.f32 %v1810_v58, %v3368_v51  ;;  %v2333_v47 = vmax.f32 %v4801_v50, 0.0  ;;  %v2300_v53 = vadd.f32 %v4711_v56, %v2267_v59  ;;  %vm1969_vm4 = vweird.f32 %v4947_v46 }
 0x42b   : > { %v2156_v60 = vsub.f32 1.5, %v2155_v42  ;;  %2732 = vmatpush.xpose.msk.msrb.mxu3 %vm523_vm2, %v5420_v25  ;;  %v2346_v14 = vmax.f32 %v2314_v26, 0.0  ;;  %v2266_v1 = vmul.f32 %v4658_v7, %v2233_v39  ;;  %v1946_v50 = vsub.f32 1.5, %v5043_v29  ;;  %vm5136_vm14 = vmor %vm1968_vm6, %vm1969_vm4 }
 0x42c   : > { %v5048_v22 = vpop.eup %2931  ;;  %v5059_v18 = vadd.f32 1e-05, %v1860_v3  ;;  %2712 = vmatpush.xpose.msk.msrb.mxu2 %vm523_vm2, %v2334_v2  ;;  %v1966_v58 = vsub.f32 1.5, %v1965_v5  ;;  %v2246_v42 = vmul.f32 %v2151_v37, %v4377_v24  ;;  %v2105_v3 = vmul.f32 0.5, %v2104_v33 }
 0x42d   : > { %v1983_v35 = vmul.f32 %v5048_v22, %v4967_v57  ;;  %v2157_v54 = vmul.f32 %v4969_v20, %v2156_v60  ;;  %v5076_v62 = vpop.eup %2933  ;;  %v2265_v26 = vmul.f32 %v4658_v7, %v4815_v32  ;;  %v2332_v39 = vmax.f32 %v2300_v53, 0.0 }
 0x42e   : > { %2935 = vrsqrt.f32 %v5059_v18  ;;  %v2231_v24 = vmul.f32 %v2001_v13, %v4418_v12  ;;  %vm1989_vm10 = vweird.f32 %v5048_v22  ;;  %v2299_v36 = vadd.f32 %v4711_v56, %v2266_v1 }
 0x42f   : > { %v1984_v49 = vmul.f32 %v5048_v22, %v1983_v35  ;;  %v2161_v10 = vsel %vm2160_vm5, %v4969_v20, %v2157_v54  ;;  %2733 = vmatpush.xpose.msk.msrb.mxu3 %vm523_vm2, %v2346_v14  ;;  %v1933_v20 = vmul.f32 %v5076_v62, %v4972_v6  ;;  %v2279_v5 = vmul.f32 %v4658_v7, %v2246_v42 }
 0x430   : > { %2713 = vmatpush.xpose.msk.msrb.mxu2 %vm523_vm2, %v2333_v47  ;;  %v2247_v29 = vmul.f32 %v2161_v10, %v4484_v19  ;;  %v1967_v19 = vmul.f32 %v4947_v46, %v1966_v58  ;;  %v2245_v60 = vmul.f32 %v2141_v8, %v4441_v9  ;;  %vm1949_vm8 = vweird.f32 %v4938_v23 }
 0x431   : > { %v1985_v59 = vmul.f32 0.5, %v1984_v49  ;;  %v1759_v2 = vpop.xlane.xlu0 %1758  ;;  %v2106_v12 = vsub.f32 1.5, %v2105_v3  ;;  %vm1988_vm9 = vweird.f32 %v4967_v57  ;;  %v2298_v9 = vadd.f32 %v4711_v56, %v2265_v26 }
 0x432   : > { %v1843_v0 = vmul.f32 %v1759_v2, %v3368_v51  ;;  %v2280_v37 = vmul.f32 %v4658_v7, %v2247_v29  ;;  %vm1990_vm11 = vmor %vm1988_vm9, %vm1989_vm10  ;;  %v2264_v8 = vmul.f32 %v4658_v7, %v2231_v24  ;;  %vm1948_vm13 = vweird.f32 %v4850_v27 }
 0x433   : > { %v1986_v41 = vsub.f32 1.5, %v1985_v59  ;;  %v1934_v57 = vmul.f32 %v5076_v62, %v1933_v20  ;;  %v2331_v54 = vmax.f32 %v2299_v36, 0.0  ;;  %v2312_v49 = vadd.f32 %v4711_v56, %v2279_v5  ;;  %vm5197_vm5 = vmor %vm1948_vm13, %vm1949_vm8 }
 0x434   : > { %v5102_v43 = vpop.eup %2935  ;;  %v5106_v32 = vadd.f32 1e-05, %v1843_v0  ;;  %2714 = vmatpush.xpose.msk.msrb.mxu2 %vm523_vm2, %v2332_v39  ;;  %v2313_v35 = vadd.f32 %v4711_v56, %v2280_v37  ;;  %v2278_v14 = vmul.f32 %v4658_v7, %v2245_v60  ;;  %v5130_v58 = vmul.f32 %v4938_v23, %v1946_v50 }
 0x435   : > { %v1987_v13 = vmul.f32 %v5048_v22, %v1986_v41  ;;  %v2123_v33 = vmul.f32 %v5102_v43, %v5059_v18  ;;  %vm2109_vm0 = vweird.f32 %v4976_v30  ;;  %v1971_v28 = vsel %vm5136_vm14, %v4947_v46, %v1967_v19 }
 0x436   : > { %2937 = vrsqrt.f32 %v5106_v32  ;;  %v2345_v53 = vmax.f32 %v2313_v35, 0.0  ;;  %v2107_v50 = vmul.f32 %v4976_v30, %v2106_v12  ;;  %v2297_v59 = vadd.f32 %v4711_v56, %v2264_v8  ;;  %vm5166_vm12 = vmor %vm2108_vm7, %vm2109_vm0 }
 0x437   : > { %v1991_v25 = vsel %vm1990_vm11, %v5048_v22, %v1987_v13  ;;  %v2124_v47 = vmul.f32 %v5102_v43, %v2123_v33  ;;  %vm2129_vm1 = vweird.f32 %v5102_v43  ;;  %v2330_v34 = vmax.f32 %v2298_v9, 0.0 }
 0x438   : > { %v2230_v1 = vmul.f32 %v1991_v25, %v4499_v38  ;;  %2715 = vmatpush.xpose.msk.msrb.mxu2 %vm523_vm2, %v2331_v54  ;;  %v2229_v38 = vmul.f32 %v1981_v11, %v4399_v61  ;;  %2734 = vmatpush.xpose.msk.msrb.mxu3 %vm523_vm2, %v2345_v53  ;;  %v1935_v61 = vmul.f32 0.5, %v1934_v57  ;;  %v2344_v46 = vmax.f32 %v2312_v49, 0.0 }
 0x439   : > { %v2125_v22 = vmul.f32 0.5, %v2124_v47  ;;  %v1801_v42 = vpop.xlane.xlu0 %1800  ;;  %v2311_v11 = vadd.f32 %v4711_v56, %v2278_v14  ;;  %vm2128_vm3 = vweird.f32 %v5059_v18  ;;  %v2111_v24 = vsel %vm5166_vm12, %v4976_v30, %v2107_v50 }
 0x43a   : > { %v1857_v3 = vmul.f32 %v1801_v42, %v3368_v51  ;;  %v2263_v29 = vmul.f32 %v4658_v7, %v2230_v1  ;;  %v2262_v39 = vmul.f32 %v4658_v7, %v2229_v38  ;;  %vm2130_vm4 = vmor %vm2128_vm3, %vm2129_vm1  ;;  %v2329_v48 = vmax.f32 %v2297_v59, 0.0  ;;  %v5429_v59 = vld [vmem:[#allocation5_spill] sm:$0xff] }
 0x43b   : > { %v2126_v2 = vsub.f32 1.5, %v2125_v22  ;;  %v2243_v18 = vmul.f32 %v2121_v63, %v4422_v4  ;;  %v2228_v37 = vmul.f32 %v1971_v28, %v4463_v40  ;;  %v1936_v16 = vsub.f32 1.5, %v1935_v61 }
 0x43c   : > { %v5157_v52 = vpop.eup %2937  ;;  %v5159_v21 = vadd.f32 1e-05, %v1857_v3  ;;  %2716 = vmatpush.xpose.msk.msrb.mxu2 %vm523_vm2, %v2330_v34  ;;  %2735 = vmatpush.xpose.msk.msrb.mxu3 %vm523_vm2, %v2344_v46  ;;  %v2296_v30 = vadd.f32 %v4711_v56, %v2263_v29  ;;  %v2343_v5 = vmax.f32 %v2311_v11, 0.0  ;;  %v1951_v45 = vsel %vm5197_vm5, %v4938_v23, %v5130_v58 }
 0x43d   : > { %v2127_v20 = vmul.f32 %v5102_v43, %v2126_v2  ;;  %v1953_v0 = vmul.f32 %v5157_v52, %v5106_v32  ;;  %vm1938_vm15 = vweird.f32 %v4972_v6  ;;  %v2295_v27 = vadd.f32 %v4711_v56, %v2262_v39 }
 0x43e   : > { %2939 = vrsqrt.f32 %v5159_v21  ;;  %v2242_v60 = vmul.f32 %v2111_v24, %v4480_v15  ;;  %vm1959_vm6 = vweird.f32 %v5157_v52  ;;  %v2328_v23 = vmax.f32 %v2296_v30, 0.0 }
 0x43f   : > { %v2131_v41 = vsel %vm2130_vm4, %v5102_v43, %v2127_v20  ;;  %v1954_v36 = vmul.f32 %v5157_v52, %v1953_v0  ;;  %v2261_v13 = vmul.f32 %v4658_v7, %v2228_v37  ;;  %v1937_v35 = vmul.f32 %v5076_v62, %v1936_v16  ;;  %v5430_v0 = vld [vmem:[#allocation6_spill] sm:$0xff] }
 0x440   : > { %v2244_v4 = vmul.f32 %v2131_v41, %v4510_v17  ;;  %2717 = vmatpush.xpose.msk.msrb.mxu2 %vm523_vm2, %v2329_v48  ;;  %2736 = vmatpush.xpose.msk.msrb.mxu3 %vm523_vm2, %v2343_v5  ;;  %v2276_v17 = vmul.f32 %v4658_v7, %v2243_v18  ;;  %vm1939_vm10 = vweird.f32 %v5076_v62  ;;  %vm1958_vm7 = vweird.f32 %v5106_v32 }
 0x441   : > { %v1955_v40 = vmul.f32 0.5, %v1954_v36  ;;  %v1750_v44 = vpop.xlane.xlu0 %1749  ;;  %v2226_v25 = vmul.f32 %v1951_v45, %v4445_v55  ;;  %vm1960_vm8 = vmor %vm1958_vm7, %vm1959_vm6  ;;  %v2275_v53 = vmul.f32 %v4658_v7, %v2242_v60  ;;  %v2327_v1 = vmax.f32 %v2295_v27, 0.0 }
 0x442   : > { %v1840_v63 = vmul.f32 %v1750_v44, %v3368_v51  ;;  %v2277_v43 = vmul.f32 %v4658_v7, %v2244_v4  ;;  %v2309_v54 = vadd.f32 %v4711_v56, %v2276_v17  ;;  %vm5228_vm9 = vmor %vm1938_vm15, %vm1939_vm10  ;;  %v2294_v58 = vadd.f32 %v4711_v56, %v2261_v13  ;;  %v5431_v4 = vld [vmem:[#allocation7_spill] sm:$0xff] }
 0x443   : > { %v1956_v12 = vsub.f32 1.5, %v1955_v40  ;;  %v1941_v55 = vsel %vm5228_vm9, %v5076_v62, %v1937_v35  ;;  %v2308_v38 = vadd.f32 %v4711_v56, %v2275_v53  ;;  %v2259_v28 = vmul.f32 %v4658_v7, %v2226_v25 }
 0x444   : > { %v2940_v33 = vpop.eup %2939  ;;  %v1872_v9 = vadd.f32 1e-05, %v1840_v63  ;;  %v2310_v8 = vadd.f32 %v4711_v56, %v2277_v43  ;;  %2718 = vmatpush.xpose.msk.msrb.mxu2 %vm523_vm2, %v2328_v23  ;;  %v2341_v6 = vmax.f32 %v2309_v54, 0.0  ;;  %v2326_v3 = vmax.f32 %v2294_v58, 0.0 }
 0x445   : > { %v1957_v57 = vmul.f32 %v5157_v52, %v1956_v12  ;;  %v2093_v15 = vmul.f32 %v2940_v33, %v5159_v21  ;;  %vm2099_vm11 = vweird.f32 %v2940_v33  ;;  %v2225_v2 = vmul.f32 %v1941_v55, %v5429_v59 }
 0x446   : > { %2941 = vrsqrt.f32 %v1872_v9  ;;  %v2342_v47 = vmax.f32 %v2310_v8, 0.0  ;;  %vm2098_vm13 = vweird.f32 %v5159_v21  ;;  %v2340_v61 = vmax.f32 %v2308_v38, 0.0 }
 0x447   : > { %v1961_v32 = vsel %vm1960_vm8, %v5157_v52, %v1957_v57  ;;  %v2094_v14 = vmul.f32 %v2940_v33, %v2093_v15  ;;  %vm2100_vm14 = vmor %vm2098_vm13, %vm2099_vm11  ;;  %v2292_v26 = vadd.f32 %v4711_v56, %v2259_v28  ;;  %v2258_v20 = vmul.f32 %v4658_v7, %v2225_v2  ;;  %v2353_v2 = vld [vmem:[%s3127_s8 + $0x7] sm:$0x1] }
 0x448   : > { %2737 = vmatpush.xpose.msk.msrb.mxu3 %vm523_vm2, %v2342_v47  ;;  %v2227_v10 = vmul.f32 %v1961_v32, %v4518_v31  ;;  %2719 = vmatpush.xpose.msk.msrb.mxu2 %vm523_vm2, %v2327_v1  ;;  %vm1928_vm1 = vweird.f32 %v1872_v9 }
 0x449   : > { %v2095_v22 = vmul.f32 0.5, %v2094_v14  ;;  %v2324_v18 = vmax.f32 %v2292_v26, 0.0  ;;  %v2291_v41 = vadd.f32 %v4711_v56, %v2258_v20  ;;  %v1792_v40 = vpop.xlane.xlu0 %1791 }
 0x44a   : > { %v2260_v42 = vmul.f32 %v4658_v7, %v2227_v10  ;;  %v1854_v63 = vmul.f32 %v1792_v40, %v3368_v51 }
 0x44b   : > { %v2096_v50 = vsub.f32 1.5, %v2095_v22  ;;  %v2323_v5 = vmax.f32 %v2291_v41, 0.0 }
 0x44c   : > { %v2942_v62 = vpop.eup %2941  ;;  %2738 = vmatpush.xpose.msk.msrb.mxu3 %vm523_vm2, %v2341_v6  ;;  %v2293_v31 = vadd.f32 %v4711_v56, %v2260_v42  ;;  %2720 = vmatpush.xpose.msk.msrb.mxu2 %vm523_vm2, %v2326_v3  ;;  %v1795_v36 = vpop.xlane.xlu1 %1794  ;;  %v1886_v23 = vadd.f32 1e-05, %v1854_v63  ;;  %v2955_v63 = vld [vmem:[%s3127_s8 + $0x4] ss:$0 sm:$0xff] }
 0x44d   : > { %v2097_v34 = vmul.f32 %v2940_v33, %v2096_v50  ;;  %v1923_v29 = vmul.f32 %v2942_v62, %v1872_v9  ;;  %vm1929_vm0 = vweird.f32 %v2942_v62  ;;  %v1855_v44 = vmul.f32 %v1795_v36, %v3368_v51 }
 0x44e   : > { %v2325_v52 = vmax.f32 %v2293_v31, 0.0  ;;  %vm1930_vm12 = vmor %vm1928_vm1, %vm1929_vm0  ;;  %vm2068_vm10 = vweird.f32 %v1886_v23 }
 0x44f   : > { %v2101_v46 = vsel %vm2100_vm14, %v2940_v33, %v2097_v34  ;;  %v1924_v11 = vmul.f32 %v2942_v62, %v1923_v29  ;;  %v1887_v17 = vadd.f32 1e-05, %v1855_v44 }
 0x450   : > { %2739 = vmatpush.xpose.msk.msrb.mxu3 %vm523_vm2, %v2340_v61  ;;  %v2241_v39 = vmul.f32 %v2101_v46, %v5430_v0  ;;  %2721 = vmatpush.xpose.msk.msrb.mxu2 %vm523_vm2, %v2325_v52  ;;  %v5434_v0 = vld [vmem:[#allocation9_spill] sm:$0xff] }
 0x451   : > { %v1925_v24 = vmul.f32 0.5, %v1924_v11  ;;  %2943 = vrsqrt.f32 %v1887_v17  ;;  %vm2078_vm4 = vweird.f32 %v1887_v17 }
 0x452   : > { %v2274_v21 = vmul.f32 %v4658_v7, %v2241_v39  ;;  %2945 = vrsqrt.f32 %v1886_v23 }
 0x453   : > { %v1926_v48 = vsub.f32 1.5, %v1925_v24 }
 0x454   : > { %v2307_v30 = vadd.f32 %v4711_v56, %v2274_v21  ;;  %2722 = vmatpush.xpose.msk.msrb.mxu2 %vm523_vm2, %v2324_v18  ;;  %v1744_v60 = vpop.xlane.xlu1 %1743  ;;  %v5435_v18 = vld [vmem:[#allocation12_spill] sm:$0xff] }
 0x455   : > { %v1927_v37 = vmul.f32 %v2942_v62, %v1926_v48  ;;  %v1838_v13 = vmul.f32 %v1744_v60, %v3368_v51 }
 0x456   : > { %v2339_v19 = vmax.f32 %v2307_v30, 0.0 }
 0x457   : > { %v1931_v16 = vsel %vm1930_vm12, %v2942_v62, %v1927_v37  ;;  %v1870_v33 = vadd.f32 1e-05, %v1838_v13  ;;  %v2944_v35 = vpop.eup %2943  ;;  %v3037_v62 = vmov 0  }
 0x458   : > { %2740 = vmatpush.xpose.msk.msrb.mxu3 %vm523_vm2, %v2339_v19  ;;  %v2224_v45 = vmul.f32 %v1931_v16, %v5431_v4  ;;  %2723 = vmatpush.xpose.msk.msrb.mxu2 %vm523_vm2, %v2323_v5  ;;  %v2946_v9 = vpop.eup %2945  ;;  %v2073_v8 = vmul.f32 %v2944_v35, %v1887_v17  ;;  %vm2079_vm3 = vweird.f32 %v2944_v35  ;;  %v5436_v19 = vld [vmem:[#allocation8_spill] sm:$0xff]  ;;  %v5437_v17 = vld [vmem:[#allocation10_spill] sm:$0xff] }
 0x459   : > { %2947 = vrsqrt.f32 %v1870_v33  ;;  %v2063_v15 = vmul.f32 %v2946_v9, %v1886_v23  ;;  %2815 = vset.pattern.permute.xlu2 %v3037_v62  ;;  %2816 = vset.pattern.permute.xlu0 %v3037_v62  ;;  %vm2069_vm5 = vweird.f32 %v2946_v9  ;;  %vm2080_vm15 = vmor %vm2078_vm4, %vm2079_vm3  ;;  %vm1908_vm13 = vweird.f32 %v1870_v33 }
 0x45a   : > { %v2257_v27 = vmul.f32 %v4658_v7, %v2224_v45  ;;  %v2074_v47 = vmul.f32 %v2944_v35, %v2073_v8  ;;  %2356 = vperm.xlu2 %2815, %v2353_v2   ;;  %vm5273_vm7 = vmor %vm2068_vm10, %vm2069_vm5  ;;  %vm2501_vm3 = vcmask 1040384  }
 0x45b   : > { %v2064_v49 = vmul.f32 %v2946_v9, %v2063_v15 }
 0x45c   : > { %v2290_v43 = vadd.f32 %v4711_v56, %v2257_v27  ;;  %v2075_v32 = vmul.f32 0.5, %v2074_v47  ;;  %v2352_v47 = vld [vmem:[%s3127_s8 + $0x6] sm:$0x1]  ;;  %s248_s8 = scalar_lea.vmem [#allocation2], %s2641_s10 }
 0x45d   : > { %v2065_v58 = vmul.f32 0.5, %v2064_v49  ;;  %s2524_s21 = sshll.u32 %s248_s8, 4  ;;  %s2525_s21 = int_to_ptr.vmem [resolvable:$true] %s2524_s21 }
 0x45e   : > { %v2322_v12 = vmax.f32 %v2290_v43, 0.0  ;;  %v2076_v10 = vsub.f32 1.5, %v2075_v32  ;;  %v2504_v32 = vlaneseq }
 0x45f   : > { %v5267_v54 = vpop.eup %2947  ;;  %v2066_v28 = vsub.f32 1.5, %v2065_v58 }
 0x460   : > { %2724 = vmatpush.xpose.msk.msrb.mxu2 %vm523_vm2, %v2322_v12  ;;  %v1903_v14 = vmul.f32 %v5267_v54, %v1870_v33  ;;  %v2077_v50 = vmul.f32 %v2944_v35, %v2076_v10  ;;  %vm1909_vm11 = vweird.f32 %v5267_v54  ;;  %v5438_v12 = vld [vmem:[#allocation11_spill] sm:$0xff] }
 0x461   : > { %vm1910_vm14 = vmor %vm1908_vm13, %vm1909_vm11 }
 0x462   : > { %v1904_v22 = vmul.f32 %v5267_v54, %v1903_v14  ;;  %v2081_v34 = vsel %vm2080_vm15, %v2944_v35, %v2077_v50 }
 0x463   : > { %v2239_v39 = vmul.f32 %v2081_v34, %v5434_v0 }
 0x464   : > { %v1905_v3 = vmul.f32 0.5, %v1904_v22 }
 0x465   : > { %v2272_v37 = vmul.f32 %v4658_v7, %v2239_v39 }
 0x466   : > { %v1906_v29 = vsub.f32 1.5, %v1905_v3 }
 0x467   : > { %v2305_v27 = vadd.f32 %v4711_v56, %v2272_v37 }
 0x468   : > { %v1907_v24 = vmul.f32 %v5267_v54, %v1906_v29 }
 0x469   : > { %v2337_v13 = vmax.f32 %v2305_v27, 0.0 }
 0x46a   : > { %v1911_v5 = vsel %vm1910_vm14, %v5267_v54, %v1907_v24 }
 0x46b   : > { %v2222_v60 = vmul.f32 %v1911_v5, %v5437_v17 }
 0x46c   : > { %v1798_v57 = vpop.xlane.xlu2 %1797 }
 0x46d   : > { %v1856_v25 = vmul.f32 %v1798_v57, %v3368_v51 }
 0x46f   : > { %v1888_v53 = vadd.f32 1e-05, %v1856_v25 }
 0x471   : > { %2949 = vrsqrt.f32 %v1888_v53  ;;  %vm2088_vm8 = vweird.f32 %v1888_v53 }
 0x474   : > { %v1747_v1 = vpop.xlane.xlu2 %1746 }
 0x475   : > { %v1839_v55 = vmul.f32 %v1747_v1, %v3368_v51  ;;  %v2067_v51 = vmul.f32 %v2946_v9, %v2066_v28 }
 0x477   : > { %v2950_v6 = vpop.eup %2949  ;;  %v1871_v42 = vadd.f32 1e-05, %v1839_v55  ;;  %v2071_v20 = vsel %vm5273_vm7, %v2946_v9, %v2067_v51  ;;  %v2255_v9 = vmul.f32 %v2955_v63, %v2222_v60 }
 0x478   : > { %v2083_v38 = vmul.f32 %v2950_v6, %v1888_v53  ;;  %vm2089_vm6 = vweird.f32 %v2950_v6  ;;  %v2238_v16 = vmul.f32 %v2071_v20, %v5436_v19 }
 0x479   : > { %2951 = vrsqrt.f32 %v1871_v42  ;;  %vm2090_vm9 = vmor %vm2088_vm8, %vm2089_vm6  ;;  %vm1918_vm1 = vweird.f32 %v1871_v42  ;;  %v2288_v25 = vadd.f32 %v4711_v56, %v2255_v9 }
 0x47a   : > { %v2084_v59 = vmul.f32 %v2950_v6, %v2083_v38  ;;  %v2271_v43 = vmul.f32 %v2955_v63, %v2238_v16 }
 0x47b   : > { %v2320_v54 = vmax.f32 %v2288_v25, 0.0 }
 0x47c   : > { %v2085_v31 = vmul.f32 0.5, %v2084_v59  ;;  %v2304_v35 = vadd.f32 %v4711_v56, %v2271_v43 }
 0x47e   : > { %v2086_v52 = vsub.f32 1.5, %v2085_v31  ;;  %v2336_v15 = vmax.f32 %v2304_v35, 0.0 }
 0x47f   : > { %v2952_v61 = vpop.eup %2951 }
 0x480   : > { %v2087_v11 = vmul.f32 %v2950_v6, %v2086_v52  ;;  %v1913_v26 = vmul.f32 %v2952_v61, %v1871_v42  ;;  %vm1919_vm0 = vweird.f32 %v2952_v61 }
 0x481   : > { %vm1920_vm12 = vmor %vm1918_vm1, %vm1919_vm0 }
 0x482   : > { %v2091_v21 = vsel %vm2090_vm9, %v2950_v6, %v2087_v11  ;;  %v1914_v48 = vmul.f32 %v2952_v61, %v1913_v26 }
 0x483   : > { %v2240_v41 = vmul.f32 %v2091_v21, %v5435_v18 }
 0x484   : > { %v1915_v36 = vmul.f32 0.5, %v1914_v48 }
 0x485   : > { %v2273_v30 = vmul.f32 %v4658_v7, %v2240_v41 }
 0x486   : > { %v1916_v4 = vsub.f32 1.5, %v1915_v36 }
 0x487   : > { %v2306_v45 = vadd.f32 %v4711_v56, %v2273_v30 }
 0x488   : > { %v1917_v40 = vmul.f32 %v2952_v61, %v1916_v4 }
 0x489   : > { %v2338_v44 = vmax.f32 %v2306_v45, 0.0 }
 0x48a   : > { %v1921_v7 = vsel %vm1920_vm12, %v2952_v61, %v1917_v40 }
 0x48b   : > { %2741 = vmatpush.xpose.msk.msrb.mxu3 %vm523_vm2, %v2338_v44  ;;  %v2223_v23 = vmul.f32 %v1921_v7, %v5438_v12 }
 0x48d   : > { %v2256_v33 = vmul.f32 %v2955_v63, %v2223_v23 }
 0x48f   : > { %2742 = vmatpush.xpose.msk.msrb.mxu3 %vm523_vm2, %v2337_v13  ;;  %v2289_v8 = vadd.f32 %v4711_v56, %v2256_v33 }
 0x491   : > { %v2321_v57 = vmax.f32 %v2289_v8, 0.0 }
 0x493   : > { %2725 = vmatpush.xpose.msk.msrb.mxu2 %vm523_vm2, %v2321_v57  ;;  %2743 = vmatpush.xpose.msk.msrb.mxu3 %vm523_vm2, %v2336_v15 }
 0x496   : > { %2744 = vmatmul.msk.f32.vlgmr.msrb.gmra.mxu3 %vm523_vm2, %v2352_v47 }
 0x497   : > { %2726 = vmatpush.xpose.msk.msrb.mxu2 %vm523_vm2, %v2320_v54 }
 0x49a   : > { %2727 = vmatmul.msk.f32.vlgmr.msrb.gmra.mxu2 %vm523_vm2, %v2352_v47  ;;  %vm2506_vm2 = vcmp.lt.s32.totalorder %v2504_v32, 256 }
 0x4b4   : > { %v2357_v53 = vpop.permute.xlu2 %2356 }
 0x519   : > { %v2495_v49 = vpop.f32.mrf.mxu3 }
 0x51a   : > { %v2496_v56 = vadd.f32 %v2495_v49, %v2357_v53 }
 0x51c   : > { %v2500_v14 = vrot.slane %v2496_v56, 7 }
 0x51d   : > { %v2475_v1 = vpop.f32.mrf.mxu2 }
 0x51e   : > { %v2476_v58 = vadd.f32 %v2475_v1, %v2357_v53 }
 0x520   : > { %v2502_v55 = vsel %vm2501_vm3, %v2476_v58, %v2500_v14 }
 0x521   : > { %2508 = vst.msk [vmem:[%s248_s8] sm:$0x3] %vm2506_vm2, %v2502_v55 }
 0x522   : > { %2983 = shalt.err (!%p2980_p5)
}
 0x523   : > { %2758 = dma.vmem_to_hbm [thread:$0]  (%p3103_p4), %s2525_s21, 32, %s2527_s22, %s2510_s18  }
 0x524 PF: > { %p2764_p6 = scmp.ge.s32.totalorder %s3034_s20, 2  ;;  %s2538_s29 = sand.u32 1, %s3014_s15  }
 0x525   : > { %s2539_s10 = scalar_lea.sflag [#allocation3], %s2538_s29 }
 0x526   : > { %p2761_p7 = pnand %p2764_p6, %p3110_p8 }
 0x528   : > { %p2762_p9 = pneg %p2761_p7 }
 0x52a   : > { %3009 = dma.done.wait (%p2762_p9), %s2539_s10, 32  }
 0x52b   : > { %3011 = vsyncadd (%p2762_p9), %s2539_s10, 4294967264  ;;  %s17_s20 = sadd.s32 1, %s3034_s20   ;;  %s5439_s15 = smov %s3018_s16 }
 0x52c   : > { %p14_p10 = scmp.ge.s32.totalorder %s17_s20, 4   ;;  %s5440_s16 = smov %s3022_s17 }
 0x52d   : > { %s5441_s17 = smov %s3116_s28  ;;  %s5442_s18 = smov %s3030_s19 }
 0x52e   : > { %s5443_s19 = smov %s5445_s23  ;;  %16 = sbr.rel (!%p14_p10) target bundleno = 4 (0x4), region = 80 }
 0x533   :  { %2545 = vsyncpa [#allocation3], 1 }
 0x534   :  { %2547 = vsyncpa [#allocation3 + $0x1], 1 }

</bundles_post_ra>
